<compile_context>
chip_gen: v7x
topology: tpu7x:2x2x1
jax: 0.10.0
libtpu: 0.0.40
codegen_flags: <defaults>
</compile_context>

<pallas_src>
import functools

import jax
import jax.numpy as jnp
from jax import lax
from jax.experimental import pallas as pl
from jax.experimental.pallas import tpu as pltpu


def _convgru_kernel(xh_ref, h_ref, w_ref, b_ref, out_ref, *, H, W, K, C, Ch):
    """One batch element per grid step.

    xh_ref : (1, H+2p, W+2p, C)  bf16   zero-padded cat(x, h)
    h_ref  : (1, H, W, Ch)       f32    previous hidden state (for gating)
    w_ref  : (K*K, C, 4*Ch)      bf16   fused per-tap weights [w1 | w2 | w3]
    b_ref  : (1, 4*Ch)           f32    fused bias            [b1 | b2 | b3]
    out_ref: (1, H, W, Ch)
    """
    HW = H * W

    # Single fused accumulator, initialised with the broadcast fused bias.
    acc = jnp.broadcast_to(b_ref[...], (HW, 4 * Ch))          # f32 (HW, 4*Ch)

    # Unrolled loop over the K*K spatial taps: one (HW, C) x (C, 4*Ch) MXU
    # matmul per tap accumulating [A | conv2(x) | conv3(h)] in 128 lanes.
    t = 0
    for dy in range(K):
        for dx in range(K):
            patch = xh_ref[0, dy:dy + H, dx:dx + W, :].reshape(HW, C)  # bf16
            acc = acc + jnp.dot(patch, w_ref[t],
                                preferred_element_type=jnp.float32)
            t += 1

    # Gate math in f32 (v5e has no bf16 VPU/EUP anyway).
    z = jax.nn.sigmoid(acc[:, 0 * Ch:1 * Ch])
    r = jax.nn.sigmoid(acc[:, 1 * Ch:2 * Ch])
    c2 = acc[:, 2 * Ch:3 * Ch]
    c3 = acc[:, 3 * Ch:4 * Ch]
    g = jnp.tanh(c2 + r * c3)

    h = h_ref[0].reshape(HW, Ch).astype(jnp.float32)
    new_h = z * h + (1.0 - z) * g
    out_ref[0] = new_h.reshape(H, W, Ch).astype(out_ref.dtype)


def conv_gru_cell(x, h, params, *, kernel_size):
    """x: (B, H, W, Cin) NHWC, h: (B, H, W, Ch) NHWC -> new_h: (B, H, W, Ch)."""
    B, H, W, Cin = x.shape
    Ch = h.shape[-1]
    K = kernel_size
    C = Cin + Ch
    p = (K - 1) // 2
    Hp, Wp = H + 2 * p, W + 2 * p

    # --- wrapper-side glue (plain JAX): pad, fuse, cast -------------------
    xh = jnp.concatenate([x, h], axis=-1)                       # (B,H,W,C)
    xh_pad = jnp.pad(
        xh, ((0, 0), (p, p), (p, p), (0, 0))).astype(jnp.bfloat16)

    w1 = params['w1']                                           # (K,K,C,2Ch)
    w2 = params['w2']                                           # (K,K,Cin,Ch)
    w3 = params['w3']                                           # (K,K,Ch,Ch)
    # Fused weight: columns = [A (2Ch) | conv2(x) (Ch) | conv3(h) (Ch)],
    # rows = cat(x, h) input channels (zero-pad the rows each conv ignores).
    w2f = jnp.concatenate([w2, jnp.zeros((K, K, Ch, Ch), w2.dtype)], axis=2)
    w3f = jnp.concatenate([jnp.zeros((K, K, Cin, Ch), w3.dtype), w3], axis=2)
    w = jnp.concatenate([w1, w2f, w3f], axis=3)                 # (K,K,C,4Ch)
    w = w.reshape(K * K, C, 4 * Ch).astype(jnp.bfloat16)

    b = jnp.concatenate([params['b1'], params['b2'], params['b3']])
    b = b.reshape(1, 4 * Ch).astype(jnp.float32)

    kernel = functools.partial(_convgru_kernel, H=H, W=W, K=K, C=C, Ch=Ch)

    return pl.pallas_call(
        kernel,
        out_shape=jax.ShapeDtypeStruct((B, H, W, Ch), h.dtype),
        grid_spec=pltpu.PrefetchScalarGridSpec(
            num_scalar_prefetch=0,
            grid=(B,),
            in_specs=[
                pl.BlockSpec((1, Hp, Wp, C), lambda i: (i, 0, 0, 0)),   # xh_pad
                pl.BlockSpec((1, H, W, Ch), lambda i: (i, 0, 0, 0)),    # h
                pl.BlockSpec((K * K, C, 4 * Ch), lambda i: (0, 0, 0)),  # w
                pl.BlockSpec((1, 4 * Ch), lambda i: (0, 0)),            # b
            ],
            out_specs=pl.BlockSpec((1, H, W, Ch), lambda i: (i, 0, 0, 0)),
        ),
        compiler_params=pltpu.CompilerParams(
            dimension_semantics=("parallel",)),
    )(xh_pad, h, w, b)


# ----------------------------- reference --------------------------------
def _conv_ref(x, w, bias):
    y = lax.conv_general_dilated(
        x, w, window_strides=(1, 1), padding='SAME',
        dimension_numbers=('NHWC', 'HWIO', 'NHWC'),
        precision=lax.Precision.HIGHEST)
    return y + bias[None, None, None, :]


def conv_gru_ref(x, h, params, hidden, *, conv_dtype=None):
    """Plain-JAX reference.  If conv_dtype is given, conv operands are
    quantised to that dtype (matching the kernel's bf16 MXU feed); gating
    math stays f32, exactly as in the kernel."""
    if conv_dtype is not None:
        q = lambda a: a.astype(conv_dtype).astype(jnp.float32)
    else:
        q = lambda a: a
    xc, hc = q(x), q(h)
    A = _conv_ref(jnp.concatenate([xc, hc], -1), q(params['w1']), params['b1'])
    z = jax.nn.sigmoid(A[..., :hidden])
    r = jax.nn.sigmoid(A[..., hidden:])
    g = jnp.tanh(_conv_ref(xc, q(params['w2']), params['b2'])
                 + r * _conv_ref(hc, q(params['w3']), params['b3']))
    return z * h + (1.0 - z) * g


if __name__ == "__main__":
    # Small shapes consistent with the module's forward.
    B, H, W = 2, 16, 16
    Cin, Ch = 4, 32          # input_size=4, hidden_size=32
    K = 3                    # kernel_size=3, padding=1

    key = jax.random.PRNGKey(0)
    ks = jax.random.split(key, 8)
    scale = 0.1
    params = {
        'w1': scale * jax.random.normal(ks[0], (K, K, Cin + Ch, 2 * Ch), jnp.float32),
        'b1': scale * jax.random.normal(ks[1], (2 * Ch,), jnp.float32),
        'w2': scale * jax.random.normal(ks[2], (K, K, Cin, Ch), jnp.float32),
        'b2': scale * jax.random.normal(ks[3], (Ch,), jnp.float32),
        'w3': scale * jax.random.normal(ks[4], (K, K, Ch, Ch), jnp.float32),
        'b3': scale * jax.random.normal(ks[5], (Ch,), jnp.float32),
    }
    x = jax.random.normal(ks[6], (B, H, W, Cin), jnp.float32)
    h = jax.random.normal(ks[7], (B, H, W, Ch), jnp.float32)

    new_h = conv_gru_cell(x, h, params, kernel_size=K)
    new_h = jax.block_until_ready(new_h)

    # Compare against a reference with matching mixed precision (bf16 conv
    # operands, f32 accumulation / gate math).
    ref = conv_gru_ref(x, h, params, Ch, conv_dtype=jnp.bfloat16)
    assert new_h.shape == (B, H, W, Ch)
    err = jnp.max(jnp.abs(new_h - ref))
    assert jnp.allclose(new_h, ref, atol=2e-3, rtol=2e-3), f"max abs err {err}"

    print("KERNEL_OK")
</pallas_src>

<mosaic_0001>
module attributes {stable_mosaic.version = 11 : i64} {
  func.func @_convgru_kernel(%arg0: i32, %arg1: memref<1x18x18x36xbf16, #tpu.memory_space<vmem>>, %arg2: memref<1x16x16x32xf32, #tpu.memory_space<vmem>>, %arg3: memref<9x36x128xbf16, #tpu.memory_space<vmem>>, %arg4: memref<1x128xf32, #tpu.memory_space<vmem>>, %arg5: memref<1x16x16x32xf32, #tpu.memory_space<vmem>>) attributes {dimension_semantics = [#tpu.dimension_semantics<parallel>], iteration_bounds = array<i64: 2>, scalar_prefetch = 0 : i64, scratch_operands = 0 : i64, tpu.core_type = #tpu.core_type<tc>, window_params = [{transform_indices = @transform_0, window_bounds = array<i64: 1, 18, 18, 36>}, {transform_indices = @transform_1, window_bounds = array<i64: 1, 16, 16, 32>}, {pipeline_mode = #tpu.pipeline_mode<synchronous>, transform_indices = @transform_2, window_bounds = array<i64: 9, 36, 128>}, {pipeline_mode = #tpu.pipeline_mode<synchronous>, transform_indices = @transform_3, window_bounds = array<i64: 1, 128>}, {transform_indices = @transform_4, window_bounds = array<i64: 1, 16, 16, 32>}]} {
    %c0 = arith.constant 0 : index
    %c0_0 = arith.constant 0 : index
    %0 = vector.load %arg4[%c0, %c0_0] : memref<1x128xf32, #tpu.memory_space<vmem>>, vector<1x128xf32>
    %1 = vector.shape_cast %0 : vector<1x128xf32> to vector<1x128xf32>
    %2 = vector.broadcast %1 : vector<1x128xf32> to vector<256x128xf32>
    %c0_1 = arith.constant 0 : index
    %c0_2 = arith.constant 0 : index
    %c0_3 = arith.constant 0 : index
    %c0_4 = arith.constant 0 : index
    %3 = vector.load %arg1[%c0_1, %c0_2, %c0_3, %c0_4] : memref<1x18x18x36xbf16, #tpu.memory_space<vmem>>, vector<1x16x16x36xbf16>
    %4 = vector.shape_cast %3 : vector<1x16x16x36xbf16> to vector<16x16x36xbf16>
    %5 = vector.shape_cast %4 : vector<16x16x36xbf16> to vector<256x36xbf16>
    %c0_5 = arith.constant 0 : index
    %c0_6 = arith.constant 0 : index
    %c0_7 = arith.constant 0 : index
    %6 = vector.load %arg3[%c0_5, %c0_6, %c0_7] : memref<9x36x128xbf16, #tpu.memory_space<vmem>>, vector<1x36x128xbf16>
    %7 = vector.shape_cast %6 : vector<1x36x128xbf16> to vector<36x128xbf16>
    %cst = arith.constant dense<0.000000e+00> : vector<256x128xf32>
    %8 = tpu.matmul %5, %7, %cst {dimension_numbers = #tpu.dot_dimension_numbers<[1], [0], [0], [1], [0, 0, 1, 1], [], []>} : vector<256x36xbf16>, vector<36x128xbf16>, vector<256x128xf32> -> vector<256x128xf32>
    %9 = arith.addf %2, %8 : vector<256x128xf32>
    %c0_8 = arith.constant 0 : index
    %c0_9 = arith.constant 0 : index
    %c1 = arith.constant 1 : index
    %c0_10 = arith.constant 0 : index
    %10 = vector.load %arg1[%c0_8, %c0_9, %c1, %c0_10] : memref<1x18x18x36xbf16, #tpu.memory_space<vmem>>, vector<1x16x16x36xbf16>
    %11 = vector.shape_cast %10 : vector<1x16x16x36xbf16> to vector<16x16x36xbf16>
    %12 = vector.shape_cast %11 : vector<16x16x36xbf16> to vector<256x36xbf16>
    %c1_11 = arith.constant 1 : index
    %c0_12 = arith.constant 0 : index
    %c0_13 = arith.constant 0 : index
    %13 = vector.load %arg3[%c1_11, %c0_12, %c0_13] : memref<9x36x128xbf16, #tpu.memory_space<vmem>>, vector<1x36x128xbf16>
    %14 = vector.shape_cast %13 : vector<1x36x128xbf16> to vector<36x128xbf16>
    %cst_14 = arith.constant dense<0.000000e+00> : vector<256x128xf32>
    %15 = tpu.matmul %12, %14, %cst_14 {dimension_numbers = #tpu.dot_dimension_numbers<[1], [0], [0], [1], [0, 0, 1, 1], [], []>} : vector<256x36xbf16>, vector<36x128xbf16>, vector<256x128xf32> -> vector<256x128xf32>
    %16 = arith.addf %9, %15 : vector<256x128xf32>
    %c0_15 = arith.constant 0 : index
    %c0_16 = arith.constant 0 : index
    %c2 = arith.constant 2 : index
    %c0_17 = arith.constant 0 : index
    %17 = vector.load %arg1[%c0_15, %c0_16, %c2, %c0_17] : memref<1x18x18x36xbf16, #tpu.memory_space<vmem>>, vector<1x16x16x36xbf16>
    %18 = vector.shape_cast %17 : vector<1x16x16x36xbf16> to vector<16x16x36xbf16>
    %19 = vector.shape_cast %18 : vector<16x16x36xbf16> to vector<256x36xbf16>
    %c2_18 = arith.constant 2 : index
    %c0_19 = arith.constant 0 : index
    %c0_20 = arith.constant 0 : index
    %20 = vector.load %arg3[%c2_18, %c0_19, %c0_20] : memref<9x36x128xbf16, #tpu.memory_space<vmem>>, vector<1x36x128xbf16>
    %21 = vector.shape_cast %20 : vector<1x36x128xbf16> to vector<36x128xbf16>
    %cst_21 = arith.constant dense<0.000000e+00> : vector<256x128xf32>
    %22 = tpu.matmul %19, %21, %cst_21 {dimension_numbers = #tpu.dot_dimension_numbers<[1], [0], [0], [1], [0, 0, 1, 1], [], []>} : vector<256x36xbf16>, vector<36x128xbf16>, vector<256x128xf32> -> vector<256x128xf32>
    %23 = arith.addf %16, %22 : vector<256x128xf32>
    %c0_22 = arith.constant 0 : index
    %c1_23 = arith.constant 1 : index
    %c0_24 = arith.constant 0 : index
    %c0_25 = arith.constant 0 : index
    %24 = vector.load %arg1[%c0_22, %c1_23, %c0_24, %c0_25] : memref<1x18x18x36xbf16, #tpu.memory_space<vmem>>, vector<1x16x16x36xbf16>
    %25 = vector.shape_cast %24 : vector<1x16x16x36xbf16> to vector<16x16x36xbf16>
    %26 = vector.shape_cast %25 : vector<16x16x36xbf16> to vector<256x36xbf16>
    %c3 = arith.constant 3 : index
    %c0_26 = arith.constant 0 : index
    %c0_27 = arith.constant 0 : index
    %27 = vector.load %arg3[%c3, %c0_26, %c0_27] : memref<9x36x128xbf16, #tpu.memory_space<vmem>>, vector<1x36x128xbf16>
    %28 = vector.shape_cast %27 : vector<1x36x128xbf16> to vector<36x128xbf16>
    %cst_28 = arith.constant dense<0.000000e+00> : vector<256x128xf32>
    %29 = tpu.matmul %26, %28, %cst_28 {dimension_numbers = #tpu.dot_dimension_numbers<[1], [0], [0], [1], [0, 0, 1, 1], [], []>} : vector<256x36xbf16>, vector<36x128xbf16>, vector<256x128xf32> -> vector<256x128xf32>
    %30 = arith.addf %23, %29 : vector<256x128xf32>
    %c0_29 = arith.constant 0 : index
    %c1_30 = arith.constant 1 : index
    %c1_31 = arith.constant 1 : index
    %c0_32 = arith.constant 0 : index
    %31 = vector.load %arg1[%c0_29, %c1_30, %c1_31, %c0_32] : memref<1x18x18x36xbf16, #tpu.memory_space<vmem>>, vector<1x16x16x36xbf16>
    %32 = vector.shape_cast %31 : vector<1x16x16x36xbf16> to vector<16x16x36xbf16>
    %33 = vector.shape_cast %32 : vector<16x16x36xbf16> to vector<256x36xbf16>
    %c4 = arith.constant 4 : index
    %c0_33 = arith.constant 0 : index
    %c0_34 = arith.constant 0 : index
    %34 = vector.load %arg3[%c4, %c0_33, %c0_34] : memref<9x36x128xbf16, #tpu.memory_space<vmem>>, vector<1x36x128xbf16>
    %35 = vector.shape_cast %34 : vector<1x36x128xbf16> to vector<36x128xbf16>
    %cst_35 = arith.constant dense<0.000000e+00> : vector<256x128xf32>
    %36 = tpu.matmul %33, %35, %cst_35 {dimension_numbers = #tpu.dot_dimension_numbers<[1], [0], [0], [1], [0, 0, 1, 1], [], []>} : vector<256x36xbf16>, vector<36x128xbf16>, vector<256x128xf32> -> vector<256x128xf32>
    %37 = arith.addf %30, %36 : vector<256x128xf32>
    %c0_36 = arith.constant 0 : index
    %c1_37 = arith.constant 1 : index
    %c2_38 = arith.constant 2 : index
    %c0_39 = arith.constant 0 : index
    %38 = vector.load %arg1[%c0_36, %c1_37, %c2_38, %c0_39] : memref<1x18x18x36xbf16, #tpu.memory_space<vmem>>, vector<1x16x16x36xbf16>
    %39 = vector.shape_cast %38 : vector<1x16x16x36xbf16> to vector<16x16x36xbf16>
    %40 = vector.shape_cast %39 : vector<16x16x36xbf16> to vector<256x36xbf16>
    %c5 = arith.constant 5 : index
    %c0_40 = arith.constant 0 : index
    %c0_41 = arith.constant 0 : index
    %41 = vector.load %arg3[%c5, %c0_40, %c0_41] : memref<9x36x128xbf16, #tpu.memory_space<vmem>>, vector<1x36x128xbf16>
    %42 = vector.shape_cast %41 : vector<1x36x128xbf16> to vector<36x128xbf16>
    %cst_42 = arith.constant dense<0.000000e+00> : vector<256x128xf32>
    %43 = tpu.matmul %40, %42, %cst_42 {dimension_numbers = #tpu.dot_dimension_numbers<[1], [0], [0], [1], [0, 0, 1, 1], [], []>} : vector<256x36xbf16>, vector<36x128xbf16>, vector<256x128xf32> -> vector<256x128xf32>
    %44 = arith.addf %37, %43 : vector<256x128xf32>
    %c0_43 = arith.constant 0 : index
    %c2_44 = arith.constant 2 : index
    %c0_45 = arith.constant 0 : index
    %c0_46 = arith.constant 0 : index
    %45 = vector.load %arg1[%c0_43, %c2_44, %c0_45, %c0_46] : memref<1x18x18x36xbf16, #tpu.memory_space<vmem>>, vector<1x16x16x36xbf16>
    %46 = vector.shape_cast %45 : vector<1x16x16x36xbf16> to vector<16x16x36xbf16>
    %47 = vector.shape_cast %46 : vector<16x16x36xbf16> to vector<256x36xbf16>
    %c6 = arith.constant 6 : index
    %c0_47 = arith.constant 0 : index
    %c0_48 = arith.constant 0 : index
    %48 = vector.load %arg3[%c6, %c0_47, %c0_48] : memref<9x36x128xbf16, #tpu.memory_space<vmem>>, vector<1x36x128xbf16>
    %49 = vector.shape_cast %48 : vector<1x36x128xbf16> to vector<36x128xbf16>
    %cst_49 = arith.constant dense<0.000000e+00> : vector<256x128xf32>
    %50 = tpu.matmul %47, %49, %cst_49 {dimension_numbers = #tpu.dot_dimension_numbers<[1], [0], [0], [1], [0, 0, 1, 1], [], []>} : vector<256x36xbf16>, vector<36x128xbf16>, vector<256x128xf32> -> vector<256x128xf32>
    %51 = arith.addf %44, %50 : vector<256x128xf32>
    %c0_50 = arith.constant 0 : index
    %c2_51 = arith.constant 2 : index
    %c1_52 = arith.constant 1 : index
    %c0_53 = arith.constant 0 : index
    %52 = vector.load %arg1[%c0_50, %c2_51, %c1_52, %c0_53] : memref<1x18x18x36xbf16, #tpu.memory_space<vmem>>, vector<1x16x16x36xbf16>
    %53 = vector.shape_cast %52 : vector<1x16x16x36xbf16> to vector<16x16x36xbf16>
    %54 = vector.shape_cast %53 : vector<16x16x36xbf16> to vector<256x36xbf16>
    %c7 = arith.constant 7 : index
    %c0_54 = arith.constant 0 : index
    %c0_55 = arith.constant 0 : index
    %55 = vector.load %arg3[%c7, %c0_54, %c0_55] : memref<9x36x128xbf16, #tpu.memory_space<vmem>>, vector<1x36x128xbf16>
    %56 = vector.shape_cast %55 : vector<1x36x128xbf16> to vector<36x128xbf16>
    %cst_56 = arith.constant dense<0.000000e+00> : vector<256x128xf32>
    %57 = tpu.matmul %54, %56, %cst_56 {dimension_numbers = #tpu.dot_dimension_numbers<[1], [0], [0], [1], [0, 0, 1, 1], [], []>} : vector<256x36xbf16>, vector<36x128xbf16>, vector<256x128xf32> -> vector<256x128xf32>
    %58 = arith.addf %51, %57 : vector<256x128xf32>
    %c0_57 = arith.constant 0 : index
    %c2_58 = arith.constant 2 : index
    %c2_59 = arith.constant 2 : index
    %c0_60 = arith.constant 0 : index
    %59 = vector.load %arg1[%c0_57, %c2_58, %c2_59, %c0_60] : memref<1x18x18x36xbf16, #tpu.memory_space<vmem>>, vector<1x16x16x36xbf16>
    %60 = vector.shape_cast %59 : vector<1x16x16x36xbf16> to vector<16x16x36xbf16>
    %61 = vector.shape_cast %60 : vector<16x16x36xbf16> to vector<256x36xbf16>
    %c8 = arith.constant 8 : index
    %c0_61 = arith.constant 0 : index
    %c0_62 = arith.constant 0 : index
    %62 = vector.load %arg3[%c8, %c0_61, %c0_62] : memref<9x36x128xbf16, #tpu.memory_space<vmem>>, vector<1x36x128xbf16>
    %63 = vector.shape_cast %62 : vector<1x36x128xbf16> to vector<36x128xbf16>
    %cst_63 = arith.constant dense<0.000000e+00> : vector<256x128xf32>
    %64 = tpu.matmul %61, %63, %cst_63 {dimension_numbers = #tpu.dot_dimension_numbers<[1], [0], [0], [1], [0, 0, 1, 1], [], []>} : vector<256x36xbf16>, vector<36x128xbf16>, vector<256x128xf32> -> vector<256x128xf32>
    %65 = arith.addf %58, %64 : vector<256x128xf32>
    %66 = vector.extract_strided_slice %65 {offsets = [0, 0], sizes = [256, 32], strides = [1, 1]} : vector<256x128xf32> to vector<256x32xf32>
    %67 = arith.negf %66 : vector<256x32xf32>
    %68 = math.exp %67 : vector<256x32xf32>
    %cst_64 = arith.constant 1.000000e+00 : f32
    %69 = vector.broadcast %cst_64 : f32 to vector<256x32xf32>
    %70 = arith.addf %69, %68 : vector<256x32xf32>
    %71 = arith.divf %69, %70 : vector<256x32xf32>
    %72 = vector.extract_strided_slice %65 {offsets = [0, 32], sizes = [256, 32], strides = [1, 1]} : vector<256x128xf32> to vector<256x32xf32>
    %73 = arith.negf %72 : vector<256x32xf32>
    %74 = math.exp %73 : vector<256x32xf32>
    %cst_65 = arith.constant 1.000000e+00 : f32
    %75 = vector.broadcast %cst_65 : f32 to vector<256x32xf32>
    %76 = arith.addf %75, %74 : vector<256x32xf32>
    %77 = arith.divf %75, %76 : vector<256x32xf32>
    %78 = vector.extract_strided_slice %65 {offsets = [0, 64], sizes = [256, 32], strides = [1, 1]} : vector<256x128xf32> to vector<256x32xf32>
    %79 = vector.extract_strided_slice %65 {offsets = [0, 96], sizes = [256, 32], strides = [1, 1]} : vector<256x128xf32> to vector<256x32xf32>
    %80 = arith.mulf %77, %79 : vector<256x32xf32>
    %81 = arith.addf %78, %80 : vector<256x32xf32>
    %82 = math.tanh %81 : vector<256x32xf32>
    %c0_66 = arith.constant 0 : index
    %c0_67 = arith.constant 0 : index
    %c0_68 = arith.constant 0 : index
    %c0_69 = arith.constant 0 : index
    %83 = vector.load %arg2[%c0_66, %c0_67, %c0_68, %c0_69] : memref<1x16x16x32xf32, #tpu.memory_space<vmem>>, vector<1x16x16x32xf32>
    %84 = vector.shape_cast %83 : vector<1x16x16x32xf32> to vector<16x16x32xf32>
    %85 = vector.shape_cast %84 : vector<16x16x32xf32> to vector<256x32xf32>
    %86 = arith.mulf %71, %85 : vector<256x32xf32>
    %cst_70 = arith.constant 1.000000e+00 : f32
    %87 = vector.broadcast %cst_70 : f32 to vector<256x32xf32>
    %88 = arith.subf %87, %71 : vector<256x32xf32>
    %89 = arith.mulf %88, %82 : vector<256x32xf32>
    %90 = arith.addf %86, %89 : vector<256x32xf32>
    %91 = vector.shape_cast %90 : vector<256x32xf32> to vector<16x16x32xf32>
    %c0_71 = arith.constant 0 : index
    %c0_72 = arith.constant 0 : index
    %c0_73 = arith.constant 0 : index
    %c0_74 = arith.constant 0 : index
    %92 = vector.load %arg5[%c0_71, %c0_72, %c0_73, %c0_74] : memref<1x16x16x32xf32, #tpu.memory_space<vmem>>, vector<1x16x16x32xf32>
    %93 = vector.shape_cast %92 : vector<1x16x16x32xf32> to vector<16x16x32xf32>
    %94 = vector.shape_cast %91 : vector<16x16x32xf32> to vector<1x16x16x32xf32>
    tpu.vector_store %arg5[%c0_71, %c0_72, %c0_73, %c0_74], %94 {strides = array<i32>} : memref<1x16x16x32xf32, #tpu.memory_space<vmem>>, vector<1x16x16x32xf32>,
    return
  }
  func.func @transform_0(%arg0: i32) -> (i32, i32, i32, i32) {
    %c0_i32 = arith.constant 0 : i32
    %c0_i32_0 = arith.constant 0 : i32
    %c0_i32_1 = arith.constant 0 : i32
    %c0_i32_2 = arith.constant 0 : i32
    return %arg0, %c0_i32, %c0_i32_0, %c0_i32_1 : i32, i32, i32, i32
  }
  func.func @transform_1(%arg0: i32) -> (i32, i32, i32, i32) {
    %c0_i32 = arith.constant 0 : i32
    %c0_i32_0 = arith.constant 0 : i32
    %c0_i32_1 = arith.constant 0 : i32
    %c0_i32_2 = arith.constant 0 : i32
    return %arg0, %c0_i32, %c0_i32_0, %c0_i32_1 : i32, i32, i32, i32
  }
  func.func @transform_2(%arg0: i32) -> (i32, i32, i32) {
    %c0_i32 = arith.constant 0 : i32
    %c0_i32_0 = arith.constant 0 : i32
    %c0_i32_1 = arith.constant 0 : i32
    %c0_i32_2 = arith.constant 0 : i32
    return %c0_i32, %c0_i32_0, %c0_i32_1 : i32, i32, i32
  }
  func.func @transform_3(%arg0: i32) -> (i32, i32) {
    %c0_i32 = arith.constant 0 : i32
    %c0_i32_0 = arith.constant 0 : i32
    %c0_i32_1 = arith.constant 0 : i32
    return %c0_i32, %c0_i32_0 : i32, i32
  }
  func.func @transform_4(%arg0: i32) -> (i32, i32, i32, i32) {
    %c0_i32 = arith.constant 0 : i32
    %c0_i32_0 = arith.constant 0 : i32
    %c0_i32_1 = arith.constant 0 : i32
    %c0_i32_2 = arith.constant 0 : i32
    return %arg0, %c0_i32, %c0_i32_0, %c0_i32_1 : i32, i32, i32, i32
  }
}

</mosaic_0001>

<bundles_post_ra>
// kernel: tpu_custom_call.1
= control target key start
LH: loop header
LB: loop body
LE: loop exit
PB: predicated region body
PF: predicated region fallthrough
CT: control target
= control target key end

     0   :  { %9 = vsyncpa [#allocation3], 0  ;;  %s10221_s0 = inlined_call_operand.vmem [shape: bf16[2,18,18,36], index: 0, kind: input, shape index: {}]   ;;  %s10222_s1 = inlined_call_operand.vmem [shape: f32[2,16,16,32], index: 1, kind: input, shape index: {}]   ;;  %s10223_s2 = inlined_call_operand.vmem [shape: bf16[9,36,128], index: 2, kind: input, shape index: {}]   ;;  %s10224_s3 = inlined_call_operand.vmem [shape: f32[1,128], index: 3, kind: input, shape index: {}]   ;;  %s10225_s4 = inlined_call_operand.hbm [shape: f32[2,16,16,32], index: 4, kind: output, shape index: {}]  }
   0x1   :  { %11 = vsyncpa [#allocation3 + $0x1], 0  ;;  %s7904_s15 = smov 0   ;;  %s7906_s16 = smov 0  }
   0x2   :  { %s7908_s17 = smov 0   ;;  %s7910_s18 = smov 0  }
   0x3 LB: > { %s7925_s19 = sadd.s32 4294967295, %s7872_s18   ;;  %s6019_s20 = sadd.s32 4294967294, %s7872_s18   ;;  %s7872_s18 = sphi %s7910_s18, %s10285_s18   ;;  %s7868_s17 = sphi %s7908_s17, %s10284_s17   ;;  %s7864_s16 = sphi %s7906_s16, %s10283_s16   ;;  %s7860_s15 = sphi %s7904_s15, %s10282_s15  }
   0x4   : > { %s7929_s21 = sadd.s32 1, %s7872_s18   ;;  %s118_s22 = sadd.s32 1, %s7868_s17 }
   0x5   : > { %s115_s23 = ssub.s32 %s7872_s18, %s7929_s21  ;;  %p128_p0 = scmp.ne.s32.totalorder %s7868_s17, %s7864_s16 }
   0x6   : > { %p116_p1 = scmp.eq.s32.totalorder %s115_s23, 0  ;;  %p129_p2 = scmp.eq.s32.totalorder %s7925_s19, 1 }
   0x7   : > { %p134_p3 = scmp.ne.s32.totalorder %s7864_s16, %s7860_s15  ;;  %p135_p4 = scmp.eq.s32.totalorder %s6019_s20, 1 }
   0x8   : > { %s7940_s24 = scalar_select %p116_p1, %s7868_s17, %s118_s22  }
   0x9   : > { %p7942_p5 = por %p129_p2, %p128_p0  ;;  %p7946_p6 = por %p135_p4, %p134_p3 }
   0xa   : > { %p6022_p7 = scmp.ge.s32.totalorder %s7872_s18, 1  ;;  %p175_p8 = scmp.lt.s32.totalorder %s7872_s18, 3 }
   0xc   : > { %p176_p9 = pnand %p6022_p7, %p175_p8 }
   0xe   : > { %179 = sbr.rel (%p176_p9) target bundleno = 935 (0x3a7), region = 36 }
  0x15   : > { %v7523_v0 = vld [vmem:[%s10223_s2] sm:$0xff]   ;;  %v7524_v1 = vld [vmem:[%s10223_s2 + $0x8] sm:$0xff]   ;;  %p206_p10 = scmp.lt.s32.totalorder %s7925_s19, 1  ;;  %v7525_v2 = vld [vmem:[%s10223_s2 + $0x50] sm:$0xff]   ;;  %vm405_vm0 = vcmask 1041408   ;;  %vm356_vm1 = vcmask 293888  }
  0x16   : > { %6833 = vmatprep.subr.bf16.mxu1 %v7523_v0  ;;  %v7526_v3 = vld [vmem:[%s10223_s2 + $0x10] ss:$0 sps:$4 sm:$0x33]   ;;  %v7527_v4 = vld [vmem:[%s10223_s2 + $0x58] sm:$0xff]   ;;  %6985 = vmatprep.subr.bf16.mxu0 %v7525_v2  ;;  %vm650_vm2 = vsmask.f32 3328 }
  0x17   : > { %6834 = vmatpush3.bf16.msra.mxu1 %v7523_v0  ;;  %s7969_s11 = scalar_select %p206_p10, %s7925_s19, 1  ;;  %6986 = vmatpush3.bf16.msra.mxu0 %v7525_v2  ;;  %v7530_v5 = vld [vmem:[%s10223_s2 + $0x60] ss:$0 sps:$4 sm:$0x33]   ;;  %v407_v6 = vsel %vm405_vm0, %v7526_v3, 0  ;;  %v7531_v7 = vld [vmem:[%s10223_s2 + $0x14] sm:$0xff]  }
  0x18   : > { %6835 = vmatprep.subr.bf16.mxu1 %v7524_v1  ;;  %6987 = vmatprep.subr.bf16.mxu0 %v7527_v4  ;;  %vm651_vm3 = vsmask.f32 7440  ;;  %v7988_v8 = vld [vmem:[%s10223_s2 + $0x64] sm:$0xff]   ;;  %v7994_v11 = vsel %vm405_vm0, %v7530_v5, 0  ;;  %vm1414_vm5 = vcmask 1042432   ;;  %vm1415_vm6 = vcmask 1046532  }
  0x19   : > { %s7479_s14 = smul.u32 216, %s7969_s11  ;;  %vm8026_vm4 = vmor %vm650_vm2, %vm651_vm3  ;;  %s7874_s5 = smov 64   ;;  %vm5898_vm8 = vcmask 261120  }
  0x1a   : > { %vm8161_vm7 = vmor %vm1414_vm5, %vm1415_vm6  ;;  %s7875_s6 = smov 32   ;;  %s6660_s7 = sshll.u32 %s7969_s11, 8 }
  0x1b   : > { %6836 = vmatpush3.bf16.msra.mxu1 %v7524_v1  ;;  %s7983_s28 = scalar_lea.vmem %s10221_s0, %s7479_s14  ;;  %6988 = vmatpush3.bf16.msra.mxu0 %v7527_v4  ;;  %s10002_s10 = scalar_lea.vmem %s10222_s1, %s6660_s7 }
  0x1c   : > { %7469 = vmatprep.subr.msk.bf16.mxu1 %vm405_vm0, %v7526_v3  ;;  %v7528_v9 = vld [vmem:[%s7983_s28] sm:$0xff]   ;;  %v7529_v10 = vld [vmem:[%s7983_s28 + $0xc] sm:$0xff]   ;;  %7473 = vmatprep.subr.msk.bf16.mxu0 %vm405_vm0, %v7530_v5  ;;  %v8002_v14 = vld [vmem:[%s7983_s28 + $0x14] sm:$0x1]  ;;  %s203_s12 = sand.u32 1, %s7864_s16   ;;  %s6661_s14 = sshll.u32 %s7925_s19, 12 }
  0x1d   : > { %6839 = vmatprep.mubr.msk.bf16.mxu1 %vm356_vm1, %v7528_v9  ;;  %v6231_v12 = vld [vmem:[%s7983_s28 + $0xc] sm:$0xf]  ;;  %v7999_v13 = vld [vmem:[%s7983_s28 + $0x10] sm:$0xf]  ;;  %v6234_v19 = vld [vmem:[%s7983_s28 + $0x18] sm:$0xf]  ;;  %s10170_s27 = scalar_lea.hbm %s10225_s4, %s6661_s14 }
  0x1e   : > { %v2269_v15 = vshrl.u32 %v6231_v12, 16  ;;  %v2272_v16 = vshll.u32 %v6231_v12, 16  ;;  %v2278_v17 = vshll.u32 %v7999_v13, 16  ;;  %v2282_v18 = vshrl.u32 %v7999_v13, 16  ;;  %v8012_v23 = vld [vmem:[%s7983_s28 + $0x1c] sm:$0xf] }
  0x1f   : > { %6838 = vmatpush3.bf16.msra.mxu1 %v407_v6  ;;  %6990 = vmatpush3.bf16.msra.mxu0 %v7994_v11  ;;  %v2288_v20 = vshll.u32 %v8002_v14, 16  ;;  %v3031_v21 = vrot.slane %v7999_v13, 5  ;;  %v3034_v22 = vrot.slane %v8002_v14, 5  ;;  %v2293_v24 = vshrl.u32 %v6234_v19, 16  ;;  %v8017_v29 = vld [vmem:[%s7983_s28 + $0x20] sm:$0x1] }
  0x20   : > { %6871 = vmatprep.subr.bf16.mxu1 %v7531_v7  ;;  %v2271_v25 = vrot.slane %v2269_v15, 4  ;;  %v2274_v26 = vrot.slane %v2272_v16, 5  ;;  %v2280_v27 = vrot.slane %v2278_v17, 5  ;;  %v2284_v28 = vrot.slane %v2282_v18, 4  ;;  %7023 = vmatprep.subr.bf16.mxu0 %v7988_v8  ;;  %v7533_v38 = vld [vmem:[%s7983_s28 + $0x18] sm:$0xff]   ;;  %v7534_v39 = vld [vmem:[%s7983_s28 + $0x24] sm:$0xff]  }
  0x21   : > { %v2290_v30 = vrot.slane %v2288_v20, 5  ;;  %v2295_v31 = vrot.slane %v2293_v24, 4  ;;  %v2296_v32 = vshll.u32 %v6234_v19, 16  ;;  %v2302_v33 = vshll.u32 %v8012_v23, 16  ;;  %v6237_v51 = vld [vmem:[%s7983_s28 + $0x24] sm:$0xf] }
  0x22   : > { %6840 = vmatmul.mubr.msk.bf16.vlgmr.msra.gmra.mrb[0].mxu1 %vm356_vm1, %v7529_v10  ;;  %v2275_v34 = vor.u32 %v2274_v26, %v2271_v25  ;;  %v2285_v35 = vor.u32 %v2284_v28, %v2280_v27  ;;  %v2306_v36 = vshrl.u32 %v8012_v23, 16  ;;  %v2312_v37 = vshll.u32 %v8017_v29, 16  ;;  %v8039_v52 = vld [vmem:[%s7983_s28 + $0x28] sm:$0xf]  ;;  %v7535_v53 = vld [vmem:[%s7983_s28 + $0x30] sm:$0xff]   ;;  %v7537_v19 = vld [vmem:[%s7983_s28 + $0x3c] sm:$0xff]  }
  0x23   : > { %6872 = vmatpush3.bf16.msra.mxu1 %v7531_v7  ;;  %v2298_v41 = vrot.slane %v2296_v32, 5  ;;  %v2304_v42 = vrot.slane %v2302_v33, 5  ;;  %v3038_v43 = vrot.slane %v8012_v23, 5  ;;  %v3041_v44 = vrot.slane %v8017_v29, 5  ;;  %6843 = vmatprep.mubr.msk.bf16.mxu1 %vm356_vm1, %v7533_v38  ;;  %v8047_v57 = vld [vmem:[%s7983_s28 + $0x2c] sm:$0x1] }
  0x24   : > { %v2276_v45 = vrot.slane %v2275_v34, 4  ;;  %v2286_v46 = vrot.slane %v2285_v35, 4  ;;  %v2308_v47 = vrot.slane %v2306_v36, 4  ;;  %v2314_v48 = vrot.slane %v2312_v37, 5  ;;  %v6240_v59 = vld [vmem:[%s7983_s28 + $0x30] sm:$0xf] }
  0x25   : > { %v2299_v49 = vor.u32 %v2298_v41, %v2295_v31  ;;  %v8035_v50 = vrot.slane %v3038_v43, 4  ;;  %v2317_v58 = vshrl.u32 %v6237_v51, 16  ;;  %v2320_v62 = vshll.u32 %v6237_v51, 16  ;;  %v8052_v0 = vld [vmem:[%s7983_s28 + $0x34] sm:$0xf]  ;;  %v7536_v12 = vld [vmem:[%s10223_s2 + $0x6c] sm:$0xff]  }
  0x26   : > { %v2281_v54 = vsel %vm8026_vm4, %v2276_v45, %v2280_v27  ;;  %v2291_v55 = vsel %vm8026_vm4, %v2286_v46, %v2290_v30  ;;  %v2309_v56 = vor.u32 %v2308_v47, %v2304_v42  ;;  %v2326_v63 = vshll.u32 %v8039_v52, 16  ;;  %v8058_v5 = vld [vmem:[%s7983_s28 + $0x38] sm:$0x1]  ;;  %v7540_v20 = vld [vmem:[%s10223_s2 + $0x1c] sm:$0xff]   ;;  %v7538_v33 = vld [vmem:[%s7983_s28 + $0x48] sm:$0xff]   ;;  %s6023_s13 = sshll.u32 %s203_s12, 8 }
  0x27   : > { %v6284_v60 = vcombine.low %v2281_v54, %v2291_v55  ;;  %v2300_v61 = vrot.slane %v2299_v49, 4  ;;  %v2319_v2 = vrot.slane %v2317_v58, 4  ;;  %v2330_v3 = vshrl.u32 %v8039_v52, 16  ;;  %6873 = vmatprep.subr.bf16.mxu1 %v7540_v20  ;;  %v6243_v36 = vld [vmem:[%s7983_s28 + $0x3c] sm:$0xf]  ;;  %v8210_v29 = vld [vmem:[%s10223_s2 + $0x28] sm:$0xff]  }
  0x28   : > { %v2310_v1 = vrot.slane %v2309_v56, 4  ;;  %v2336_v4 = vshll.u32 %v8047_v57, 16  ;;  %v2322_v7 = vrot.slane %v2320_v62, 5  ;;  %v2328_v9 = vrot.slane %v2326_v63, 5  ;;  %6874 = vmatpush3.bf16.msra.mxu1 %v7540_v20  ;;  %v8086_v46 = vld [vmem:[%s7983_s28 + $0x44] sm:$0x1] }
  0x29   : > { %6991 = vmatprep.mubr.msk.bf16.mxu0 %vm356_vm1, %v6284_v60  ;;  %v2305_v6 = vsel %vm8026_vm4, %v2300_v61, %v2304_v42  ;;  %v2341_v10 = vshrl.u32 %v6240_v59, 16  ;;  %v2332_v16 = vrot.slane %v2330_v3, 4  ;;  %v2344_v18 = vshll.u32 %v6240_v59, 16  ;;  %v8081_v42 = vld [vmem:[%s7983_s28 + $0x40] sm:$0xf]  ;;  %s10014_s11 = scalar_lea.vmem [#allocation2], %s6023_s13 }
  0x2a   : > { %6844 = vmatmul.mubr.msk.bf16.gmra.mrb[4].mxu1 %vm356_vm1, %v7534_v39  ;;  %v2315_v15 = vsel %vm8026_vm4, %v2310_v1, %v2314_v48  ;;  %v2338_v17 = vrot.slane %v2336_v4, 5  ;;  %v2323_v25 = vor.u32 %v2322_v7, %v2319_v2  ;;  %v2350_v27 = vshll.u32 %v8052_v0, 16  ;;  %v6246_v55 = vld [vmem:[%s7983_s28 + $0x48] sm:$0xf]  ;;  %v8095_v56 = vld [vmem:[%s7983_s28 + $0x4c] sm:$0xf] }
  0x2b   : > { %6847 = vmatprep.mubr.msk.bf16.mxu1 %vm356_vm1, %v7535_v53  ;;  %v6285_v24 = vcombine.low %v2305_v6, %v2315_v15  ;;  %v2343_v26 = vrot.slane %v2341_v10, 4  ;;  %v2333_v28 = vor.u32 %v2332_v16, %v2328_v9  ;;  %v2346_v30 = vrot.slane %v2344_v18, 5  ;;  %v8098_v62 = vld [vmem:[%s7983_s28 + $0x50] sm:$0x1]  ;;  %v7539_v4 = vld [vmem:[%s7983_s28 + $0x54] sm:$0xff]   ;;  %v7542_v15 = vld [vmem:[%s7983_s28 + $0x60] sm:$0xff]  }
  0x2c   : > { %v2354_v31 = vshrl.u32 %v8052_v0, 16  ;;  %v2360_v32 = vshll.u32 %v8058_v5, 16  ;;  %v2324_v34 = vrot.slane %v2323_v25, 4  ;;  %v2352_v35 = vrot.slane %v2350_v27, 5  ;;  %s5945_s20 = sshll.u32 %s10014_s11, 4  ;;  %s10180_s19 = scalar_lea.sflag [#allocation3], %s203_s12  ;;  %s10172_s20 = int_to_ptr.vmem [resolvable:$true] %s5945_s20 }
  0x2d   : > { %6992 = vmatmul.mubr.msk.bf16.vlgmr.msra.gmra.mrb[0].mxu0 %vm356_vm1, %v6285_v24  ;;  %v2334_v37 = vrot.slane %v2333_v28, 4  ;;  %v2347_v38 = vor.u32 %v2346_v30, %v2343_v26  ;;  %v2365_v47 = vshrl.u32 %v6243_v36, 16  ;;  %v2368_v48 = vshll.u32 %v6243_v36, 16  ;;  %v8114_v26 = vld [vmem:[%s10223_s2 + $0x78] sm:$0xff]   ;;  %s7810_s29 = scalar_lea.vmem %s10172_s20, 4096 }
  0x2e   : > { %7024 = vmatpush3.bf16.msra.mxu0 %v7988_v8  ;;  %v2356_v39 = vrot.slane %v2354_v31, 4  ;;  %v2362_v41 = vrot.slane %v2360_v32, 5  ;;  %v2329_v45 = vsel %vm8026_vm4, %v2324_v34, %v2328_v9  ;;  %v2374_v49 = vshll.u32 %v8081_v42, 16  ;;  %v7541_v34 = vld [vmem:[%s10223_s2 + $0x74] ss:$0 sps:$4 sm:$0x33]   ;;  %p7811_p11 = scmp.ne.s32.totalorder %s10172_s20, %s7810_s29 }
  0x2f   : > { %7025 = vmatprep.subr.bf16.mxu0 %v7536_v12  ;;  %v2339_v8 = vsel %vm8026_vm4, %v2334_v37, %v2338_v17  ;;  %v2348_v51 = vrot.slane %v2347_v38, 4  ;;  %v2378_v54 = vshrl.u32 %v8081_v42, 16  ;;  %v2367_v59 = vrot.slane %v2365_v47, 4 }
  0x30   : > { %v2357_v53 = vor.u32 %v2356_v39, %v2352_v35  ;;  %v6286_v58 = vcombine.low %v2329_v45, %v2339_v8  ;;  %v2370_v60 = vrot.slane %v2368_v48, 5  ;;  %v2376_v61 = vrot.slane %v2374_v49, 5  ;;  %v6249_v39 = vld [vmem:[%s7983_s28 + $0x54] sm:$0xf]  ;;  %v8136_v8 = vld [vmem:[%s7983_s28 + $0x5c] sm:$0x1]  ;;  %p7812_p12 = pnand %p7811_p11, %p7942_p5 }
  0x31   : > { %v2353_v63 = vsel %vm8026_vm4, %v2348_v51, %v2352_v35  ;;  %v2380_v2 = vrot.slane %v2378_v54, 4  ;;  %v2384_v3 = vshll.u32 %v8086_v46, 16  ;;  %v2389_v7 = vshrl.u32 %v6246_v55, 16 }
  0x32   : > { %6848 = vmatmul.mubr.msk.bf16.gmra.mrb[8].mxu1 %vm356_vm1, %v7537_v19  ;;  %v2358_v1 = vrot.slane %v2357_v53, 4  ;;  %7026 = vmatpush3.bf16.msra.mxu0 %v7536_v12  ;;  %v2371_v6 = vor.u32 %v2370_v60, %v2367_v59  ;;  %v2392_v9 = vshll.u32 %v6246_v55, 16  ;;  %v2398_v10 = vshll.u32 %v8095_v56, 16  ;;  %v6252_v59 = vld [vmem:[%s7983_s28 + $0x60] sm:$0xf]  ;;  %p7813_p13 = pneg %p7812_p12 }
  0x33   : > { %6851 = vmatprep.mubr.msk.bf16.mxu1 %vm356_vm1, %v7538_v33  ;;  %6995 = vmatprep.mubr.msk.bf16.mxu0 %vm356_vm1, %v6286_v58  ;;  %v2381_v17 = vor.u32 %v2380_v2, %v2376_v61  ;;  %v2386_v18 = vrot.slane %v2384_v3, 5  ;;  %v2402_v12 = vshrl.u32 %v8095_v56, 16  ;;  %v2391_v24 = vrot.slane %v2389_v7, 4  ;;  %v8150_v2 = vld [vmem:[%s7983_s28 + $0x68] sm:$0x1] }
  0x34   : > { %v2363_v16 = vsel %vm8026_vm4, %v2358_v1, %v2362_v41  ;;  %v2372_v20 = vrot.slane %v2371_v6, 4  ;;  %v2394_v25 = vrot.slane %v2392_v9, 5  ;;  %v2400_v28 = vrot.slane %v2398_v10, 5  ;;  %v8130_v41 = vld [vmem:[%s7983_s28 + $0x58] sm:$0xf]  ;;  %7475 = vmatprep.subr.msk.bf16.mxu0 %vm405_vm0, %v7541_v34  ;;  %v7543_v9 = vld [vmem:[%s7983_s28 + $0x6c] sm:$0xff]  }
  0x35   : > { %v6287_v19 = vcombine.low %v2353_v63, %v2363_v16  ;;  %v2382_v27 = vrot.slane %v2381_v17, 4  ;;  %v2404_v30 = vrot.slane %v2402_v12, 4  ;;  %v2408_v31 = vshll.u32 %v8098_v62, 16  ;;  %v8147_v1 = vld [vmem:[%s7983_s28 + $0x64] sm:$0xf] }
  0x36   : > { %v2377_v32 = vsel %vm8026_vm4, %v2372_v20, %v2376_v61  ;;  %v2395_v33 = vor.u32 %v2394_v25, %v2391_v24  ;;  %v3033_v35 = vrot.slane %v3031_v21, 4  ;;  %v3045_v45 = vrot.slane %v8039_v52, 5 }
  0x37   : > { %6996 = vmatmul.mubr.msk.bf16.gmra.mrb[4].mxu0 %vm356_vm1, %v6287_v19  ;;  %v2387_v36 = vsel %vm8026_vm4, %v2382_v27, %v2386_v18  ;;  %v2405_v37 = vor.u32 %v2404_v30, %v2400_v28  ;;  %v2410_v38 = vrot.slane %v2408_v31, 5  ;;  %v3259_v49 = vsel %vm405_vm0, %v7541_v34, 0  ;;  %v7545_v18 = vld [vmem:[%s7983_s28 + $0x78] sm:$0xff]   ;;  %v6319_v31 = vld [vmem:[%s7983_s28 + $0xc] sm:$0xe] }
  0x38   : > { %v6288_v47 = vcombine.low %v2377_v32, %v2387_v36  ;;  %v2396_v48 = vrot.slane %v2395_v33, 4  ;;  %v2413_v51 = vshrl.u32 %v6249_v39, 16  ;;  %7028 = vmatpush3.bf16.msra.mxu0 %v3259_v49  ;;  %v2416_v54 = vshll.u32 %v6249_v39, 16  ;;  %v6320_v49 = vld [vmem:[%s7983_s28 + $0x18] sm:$0xe] }
  0x39   : > { %v2406_v53 = vrot.slane %v2405_v37, 4  ;;  %v2422_v55 = vshll.u32 %v8130_v41, 16  ;;  %v2426_v58 = vshrl.u32 %v8130_v41, 16  ;;  %v2432_v63 = vshll.u32 %v8136_v8, 16  ;;  %7061 = vmatprep.subr.bf16.mxu0 %v8114_v26 }
  0x3a   : > { %6852 = vmatmul.mubr.msk.bf16.gmra.mrb[12].mxu1 %vm356_vm1, %v7539_v4  ;;  %6999 = vmatprep.mubr.msk.bf16.mxu0 %vm356_vm1, %v6288_v47  ;;  %v2401_v60 = vsel %vm8026_vm4, %v2396_v48, %v2400_v28  ;;  %v2415_v61 = vrot.slane %v2413_v51, 4  ;;  %v2418_v4 = vrot.slane %v2416_v54, 5  ;;  %v2437_v16 = vshrl.u32 %v6252_v59, 16 }
  0x3b   : > { %6855 = vmatprep.mubr.msk.bf16.mxu1 %vm356_vm1, %v7542_v15  ;;  %v2411_v3 = vsel %vm8026_vm4, %v2406_v53, %v2410_v38  ;;  %v2424_v6 = vrot.slane %v2422_v55, 5  ;;  %v2428_v7 = vrot.slane %v2426_v58, 4  ;;  %v2434_v15 = vrot.slane %v2432_v63, 5  ;;  %v7546_v58 = vld [vmem:[%s7983_s28 + $0x84] sm:$0xff]  }
  0x3c   : > { %v6289_v10 = vcombine.low %v2401_v60, %v2411_v3  ;;  %v2440_v17 = vshll.u32 %v6252_v59, 16  ;;  %v2419_v12 = vor.u32 %v2418_v4, %v2415_v61  ;;  %v2446_v20 = vshll.u32 %v8147_v1, 16  ;;  %v6321_v61 = vld [vmem:[%s7983_s28 + $0x24] sm:$0xe]  ;;  %v7548_v3 = vld [vmem:[%s7983_s28 + $0x90] sm:$0xff]  }
  0x3d   : > { %v2429_v19 = vor.u32 %v2428_v7, %v2424_v6  ;;  %v2450_v24 = vshrl.u32 %v8147_v1, 16  ;;  %v2439_v27 = vrot.slane %v2437_v16, 4  ;;  %v2456_v30 = vshll.u32 %v8150_v2, 16 }
  0x3e   : > { %v2442_v28 = vrot.slane %v2440_v17, 5  ;;  %v3047_v32 = vrot.slane %v3045_v45, 4  ;;  %v2420_v33 = vrot.slane %v2419_v12, 4  ;;  %v2448_v36 = vrot.slane %v2446_v20, 5 }
  0x3f   : > { %7000 = vmatmul.mubr.msk.bf16.gmra.mrb[8].mxu0 %vm356_vm1, %v6289_v10  ;;  %v2430_v34 = vrot.slane %v2429_v19, 4  ;;  %v2452_v37 = vrot.slane %v2450_v24, 4  ;;  %v2458_v39 = vrot.slane %v2456_v30, 5  ;;  %v6335_v47 = vrot.slane %v6319_v31, 9  ;;  %v7549_v24 = vld [vmem:[%s7983_s28 + $0x9c] sm:$0xff]  }
  0x40   : > { %v2443_v38 = vor.u32 %v2442_v28, %v2439_v27  ;;  %v3035_v48 = vsel %vm8161_vm7, %v3033_v35, %v3034_v22  ;;  %v2425_v51 = vsel %vm8026_vm4, %v2420_v33, %v2424_v6  ;;  %v6336_v55 = vrot.slane %v6320_v49, 9 }
  0x41   : > { %v2435_v53 = vsel %vm8026_vm4, %v2430_v34, %v2434_v15  ;;  %v2453_v54 = vor.u32 %v2452_v37, %v2448_v36  ;;  %v3032_v14 = vsel %vm8161_vm7, %v6335_v47, %v3031_v21  ;;  %v3048_v22 = vrot.slane %v8047_v57, 5  ;;  %v7547_v57 = vld [vmem:[%s10223_s2 + $0x24] ss:$0 sps:$4 sm:$0x33]  }
  0x42   : > { %6856 = vmatmul.mubr.msk.bf16.gmra.mrb[16].mxu1 %vm356_vm1, %v7543_v9  ;;  %v6290_v59 = vcombine.low %v2425_v51, %v2435_v53  ;;  %v2444_v60 = vrot.slane %v2443_v38, 4  ;;  %v3052_v63 = vrot.slane %v8052_v0, 5  ;;  %v6356_v6 = vcombine.low %v3032_v14, %v3035_v48  ;;  %v6322_v0 = vld [vmem:[%s7983_s28 + $0x30] sm:$0xe]  ;;  %7470 = vmatprep.subr.msk.bf16.mxu1 %vm405_vm0, %v7547_v57  ;;  %v6326_v48 = vld [vmem:[%s7983_s28 + $0x60] sm:$0xe] }
  0x43   : > { %6859 = vmatprep.mubr.msk.bf16.mxu1 %vm356_vm1, %v7545_v18  ;;  %v2454_v35 = vrot.slane %v2453_v54, 4  ;;  %v8198_v13 = vsel %vm8161_vm7, %v8035_v50, %v3041_v44  ;;  %v6337_v21 = vrot.slane %v6321_v61, 9  ;;  %v6338_v9 = vrot.slane %v6322_v0, 9  ;;  %v6323_v18 = vld [vmem:[%s7983_s28 + $0x3c] sm:$0xe]  ;;  %v7552_v51 = vld [vmem:[%s10223_s2 + $0x80] sm:$0xff]  }
  0x44   : > { %7003 = vmatprep.mubr.msk.bf16.mxu0 %vm356_vm1, %v6290_v59  ;;  %v2449_v4 = vsel %vm8026_vm4, %v2444_v60, %v2448_v36  ;;  %v3054_v10 = vrot.slane %v3052_v63, 4  ;;  %v3055_v15 = vrot.slane %v8058_v5, 5  ;;  %v3039_v50 = vsel %vm8161_vm7, %v6336_v55, %v3038_v43  ;;  %v6325_v36 = vld [vmem:[%s7983_s28 + $0x54] sm:$0xe]  ;;  %v8285_v60 = vld [vmem:[%s7983_s28 + $0x4] sm:$0xf] }
  0x45   : > { %v2459_v7 = vsel %vm8026_vm4, %v2454_v35, %v2458_v39  ;;  %v1155_v16 = vsel %vm405_vm0, %v7547_v57, 0  ;;  %v3059_v17 = vrot.slane %v8081_v42, 5  ;;  %v3046_v5 = vsel %vm8161_vm7, %v6337_v21, %v3045_v45  ;;  %v6324_v45 = vld [vmem:[%s7983_s28 + $0x48] sm:$0xe]  ;;  %v604_v14 = vld [vmem:[%s7983_s28 + $0x8] sm:$0x1] }
  0x46   : > { %v6291_v44 = vcombine.low %v2449_v4, %v2459_v7  ;;  %v3049_v23 = vsel %vm8161_vm7, %v3047_v32, %v3048_v22  ;;  %v8228_v43 = vsel %vm8161_vm7, %v6338_v9, %v3052_v63  ;;  %v3062_v12 = vrot.slane %v8086_v46, 5  ;;  %6876 = vmatpush3.bf16.msra.mxu1 %v1155_v16  ;;  %v606_v4 = vld [vmem:[%s7983_s28 + $0x10] sm:$0xf]  ;;  %v607_v0 = vld [vmem:[%s7983_s28 + $0x14] sm:$0x1] }
  0x47   : > { %v8235_v42 = vsel %vm8161_vm7, %v3054_v10, %v3055_v15  ;;  %v6339_v52 = vrot.slane %v6323_v18, 9  ;;  %v3061_v19 = vrot.slane %v3059_v17, 4  ;;  %v3066_v20 = vrot.slane %v8095_v56, 5  ;;  %6909 = vmatprep.subr.bf16.mxu1 %v8210_v29  ;;  %v7551_v7 = vld [vmem:[%s7983_s28 + $0xb4] sm:$0xff]  }
  0x48   : > { %7004 = vmatmul.mubr.msk.bf16.gmra.mrb[12].mxu0 %vm356_vm1, %v6291_v44  ;;  %v6340_v46 = vrot.slane %v6324_v45, 9  ;;  %v3069_v27 = vrot.slane %v8098_v62, 5  ;;  %v3073_v56 = vrot.slane %v8130_v41, 5  ;;  %v6357_v32 = vcombine.low %v3039_v50, %v8198_v13  ;;  %v7550_v41 = vld [vmem:[%s7983_s28 + $0xa8] sm:$0xff]  }
  0x49   : > { %7029 = vmatprep.mubr.msk.bf16.mxu0 %vm356_vm1, %v6356_v6  ;;  %v8245_v28 = vsel %vm8161_vm7, %v6339_v52, %v3059_v17  ;;  %v8249_v30 = vsel %vm8161_vm7, %v3061_v19, %v3062_v12  ;;  %v3068_v31 = vrot.slane %v3066_v20, 4  ;;  %v6358_v33 = vcombine.low %v3046_v5, %v3049_v23  ;;  %v6256_v5 = vld [vmem:[%s7983_s28 + $0x70] sm:$0xf]  ;;  %v6257_v19 = vld [vmem:[%s7983_s28 + $0x74] sm:$0x1] }
  0x4a   : > { %6860 = vmatmul.mubr.msk.bf16.gmra.mrb[20].mxu1 %vm356_vm1, %v7546_v58  ;;  %v6359_v62 = vcombine.low %v8228_v43, %v8235_v42  ;;  %v8258_v34 = vsel %vm8161_vm7, %v6340_v46, %v3066_v20  ;;  %v6341_v38 = vrot.slane %v6325_v36, 9  ;;  %v3075_v39 = vrot.slane %v3073_v56, 4  ;;  %v602_v58 = vld [vmem:[%s7983_s28] sm:$0xf]  ;;  %v6327_v46 = vld [vmem:[%s7983_s28 + $0x6c] sm:$0xe] }
  0x4b   : > { %6863 = vmatprep.mubr.msk.bf16.mxu1 %vm356_vm1, %v7548_v3  ;;  %v8263_v37 = vsel %vm8161_vm7, %v3068_v31, %v3069_v27  ;;  %v3076_v47 = vrot.slane %v8136_v8, 5  ;;  %v6360_v49 = vcombine.low %v8245_v28, %v8249_v30  ;;  %v6342_v53 = vrot.slane %v6326_v48, 9  ;;  %v605_v3 = vld [vmem:[%s7983_s28 + $0xc] sm:$0xf] }
  0x4c   : > { %v3080_v54 = vrot.slane %v8147_v1, 5  ;;  %v3083_v55 = vrot.slane %v8150_v2, 5  ;;  %v8278_v59 = vsel %vm8161_vm7, %v6341_v38, %v3073_v56  ;;  %v654_v22 = vshrl.u32 %v602_v58, 16 }
  0x4d   : > { %v8282_v8 = vsel %vm8161_vm7, %v3075_v39, %v3076_v47  ;;  %v657_v35 = vshll.u32 %v602_v58, 16  ;;  %v6361_v1 = vcombine.low %v8258_v34, %v8263_v37  ;;  %v663_v63 = vshll.u32 %v8285_v60, 16 }
  0x4e   : > { %v6362_v2 = vcombine.low %v8278_v59, %v8282_v8  ;;  %v3082_v61 = vrot.slane %v3080_v54, 4  ;;  %v656_v6 = vrot.slane %v654_v22, 4  ;;  %v667_v21 = vshrl.u32 %v8285_v60, 16 }
  0x4f   : > { %v659_v13 = vrot.slane %v657_v35, 5  ;;  %v673_v57 = vshll.u32 %v604_v14, 16  ;;  %v8305_v9 = vsel %vm8161_vm7, %v6342_v53, %v3080_v54  ;;  %v665_v10 = vrot.slane %v663_v63, 5  ;;  %v6259_v54 = vld [vmem:[%s7983_s28 + $0x7c] sm:$0xf] }
  0x50   : > { %7030 = vmatmul.mubr.msk.bf16.vlgmr.msra.gmra.mrb[0].mxu0 %vm356_vm1, %v6357_v32  ;;  %v678_v15 = vshrl.u32 %v605_v3, 16  ;;  %v681_v44 = vshll.u32 %v605_v3, 16  ;;  %v8309_v50 = vsel %vm8161_vm7, %v3082_v61, %v3083_v55  ;;  %v669_v17 = vrot.slane %v667_v21, 4  ;;  %v6260_v55 = vld [vmem:[%s7983_s28 + $0x80] sm:$0x1] }
  0x51   : > { %7062 = vmatpush3.bf16.msra.mxu0 %v8114_v26  ;;  %7033 = vmatprep.mubr.msk.bf16.mxu0 %vm356_vm1, %v6358_v33  ;;  %v660_v16 = vor.u32 %v659_v13, %v656_v6  ;;  %v675_v26 = vrot.slane %v673_v57, 5  ;;  %v687_v12 = vshll.u32 %v606_v4, 16  ;;  %v691_v52 = vshrl.u32 %v606_v4, 16  ;;  %v6328_v61 = vld [vmem:[%s7983_s28 + $0x78] sm:$0xe] }
  0x52   : > { %6864 = vmatmul.mubr.msk.bf16.gmra.mrb[24].mxu1 %vm356_vm1, %v7549_v24  ;;  %7063 = vmatprep.subr.bf16.mxu0 %v7552_v51  ;;  %v680_v23 = vrot.slane %v678_v15, 4  ;;  %v683_v18 = vrot.slane %v681_v44, 5  ;;  %v670_v20 = vor.u32 %v669_v17, %v665_v10  ;;  %v697_v24 = vshll.u32 %v607_v0, 16  ;;  %v608_v3 = vld [vmem:[%s7983_s28 + $0x18] sm:$0xf] }
  0x53   : > { %6867 = vmatprep.mubr.msk.bf16.mxu1 %vm356_vm1, %v7550_v41  ;;  %v661_v45 = vrot.slane %v660_v16, 4  ;;  %v3087_v27 = vrot.slane %v6256_v5, 5  ;;  %v689_v56 = vrot.slane %v687_v12, 5  ;;  %v693_v32 = vrot.slane %v691_v52, 4  ;;  %v8350_v6 = vld [vmem:[%s7983_s28 + $0x1c] sm:$0xf] }
  0x54   : > { %v684_v31 = vor.u32 %v683_v18, %v680_v23  ;;  %v6343_v33 = vrot.slane %v6327_v46, 9  ;;  %v671_v41 = vrot.slane %v670_v20, 4  ;;  %v699_v38 = vrot.slane %v697_v24, 5  ;;  %v611_v17 = vld [vmem:[%s7983_s28 + $0x24] sm:$0xf]  ;;  %v7555_v52 = vld [vmem:[%s10223_s2 + $0x30] sm:$0xff]  }
  0x55   : > { %7064 = vmatpush3.bf16.msra.mxu0 %v7552_v51  ;;  %v666_v36 = vsel %vm8026_vm4, %v661_v45, %v665_v10  ;;  %v3089_v39 = vrot.slane %v3087_v27, 4  ;;  %v694_v48 = vor.u32 %v693_v32, %v689_v56  ;;  %v3090_v51 = vrot.slane %v6257_v19, 5  ;;  %v8368_v12 = vld [vmem:[%s7983_s28 + $0x28] sm:$0xf]  ;;  %v8377_v46 = vld [vmem:[%s7983_s28 + $0x2c] sm:$0x1] }
  0x56   : > { %v685_v47 = vrot.slane %v684_v31, 4  ;;  %v8319_v53 = vsel %vm8161_vm7, %v6343_v33, %v3087_v27  ;;  %v676_v58 = vsel %vm8026_vm4, %v671_v41, %v675_v26  ;;  %v2494_v14 = vshll.u32 %v6259_v54, 16  ;;  %v6329_v33 = vld [vmem:[%s7983_s28 + $0x84] sm:$0xe] }
  0x57   : > { %v2498_v22 = vshrl.u32 %v6259_v54, 16  ;;  %v2504_v35 = vshll.u32 %v6260_v55, 16  ;;  %v6068_v63 = vcombine.low %v666_v36, %v676_v58  ;;  %v695_v42 = vrot.slane %v694_v48, 4  ;;  %v6263_v48 = vld [vmem:[%s7983_s28 + $0x8c] sm:$0x1] }
  0x58   : > { %7034 = vmatmul.mubr.msk.bf16.gmra.mrb[4].mxu0 %vm356_vm1, %v6359_v62  ;;  %v690_v43 = vsel %vm8026_vm4, %v685_v47, %v689_v56  ;;  %v8338_v62 = vsel %vm8161_vm7, %v3089_v39, %v3090_v51  ;;  %v6363_v4 = vcombine.low %v8305_v9, %v8309_v50  ;;  %v8345_v30 = vrot.slane %v2494_v14, 5  ;;  %v6262_v47 = vld [vmem:[%s7983_s28 + $0x88] sm:$0xf]  ;;  %v6265_v51 = vld [vmem:[%s7983_s28 + $0x94] sm:$0xf] }
  0x59   : > { %7037 = vmatprep.mubr.msk.bf16.mxu0 %vm356_vm1, %v6360_v49  ;;  %v6364_v28 = vcombine.low %v8319_v53, %v8338_v62  ;;  %v8347_v49 = vrot.slane %v2498_v22, 4  ;;  %v700_v13 = vsel %vm8026_vm4, %v695_v42, %v699_v38  ;;  %v6344_v21 = vrot.slane %v6328_v61, 9  ;;  %v614_v61 = vld [vmem:[%s7983_s28 + $0x30] sm:$0xf] }
  0x5a   : > { %6868 = vmatmul.mubr.msk.bf16.gmra.mrb[28].mxu1 %vm356_vm1, %v7551_v7  ;;  %v3094_v57 = vrot.slane %v6259_v54, 5  ;;  %v3097_v0 = vrot.slane %v6260_v55, 5  ;;  %v8356_v7 = vld [vmem:[%s7983_s28 + $0x20] sm:$0x1]  ;;  %v6069_v10 = vcombine.low %v690_v43, %v700_v13  ;;  %v8358_v15 = vrot.slane %v2504_v35, 5 }
  0x5b   : > { %6877 = vmatprep.mubr.msk.bf16.mxu1 %vm356_vm1, %v6068_v63  ;;  %v702_v44 = vshrl.u32 %v608_v3, 16  ;;  %v705_v16 = vshll.u32 %v608_v3, 16  ;;  %v711_v23 = vshll.u32 %v8350_v6, 16  ;;  %v715_v18 = vshrl.u32 %v8350_v6, 16  ;;  %v6330_v54 = vld [vmem:[%s7983_s28 + $0x90] sm:$0xe] }
  0x5c   : > { %v8363_v26 = vsel %vm8161_vm7, %v6344_v21, %v3094_v57  ;;  %v3096_v5 = vrot.slane %v3094_v57, 4  ;;  %v721_v24 = vshll.u32 %v8356_v7, 16  ;;  %v726_v32 = vshrl.u32 %v611_v17, 16  ;;  %v6266_v35 = vld [vmem:[%s7983_s28 + $0x98] sm:$0x1] }
  0x5d   : > { %v704_v45 = vrot.slane %v702_v44, 4  ;;  %v707_v20 = vrot.slane %v705_v16, 5  ;;  %v713_v31 = vrot.slane %v711_v23, 5  ;;  %v717_v56 = vrot.slane %v715_v18, 4  ;;  %v8417_v18 = vld [vmem:[%s7983_s28 + $0x34] sm:$0xf] }
  0x5e   : > { %v8382_v27 = vsel %vm8161_vm7, %v3096_v5, %v3097_v0  ;;  %v723_v38 = vrot.slane %v721_v24, 5  ;;  %v729_v39 = vshll.u32 %v611_v17, 16  ;;  %v728_v37 = vrot.slane %v726_v32, 4  ;;  %v7554_v21 = vld [vmem:[%s10223_s2 + $0x88] ss:$0 sps:$4 sm:$0x33]  }
  0x5f   : > { %v6365_v36 = vcombine.low %v8363_v26, %v8382_v27  ;;  %v708_v41 = vor.u32 %v707_v20, %v704_v45  ;;  %v718_v34 = vor.u32 %v717_v56, %v713_v31  ;;  %v745_v14 = vshll.u32 %v8377_v46, 16  ;;  %7476 = vmatprep.subr.msk.bf16.mxu0 %vm405_vm0, %v7554_v21  ;;  %v8423_v24 = vld [vmem:[%s7983_s28 + $0x38] sm:$0x1] }
  0x60   : > { %7038 = vmatmul.mubr.msk.bf16.gmra.mrb[8].mxu0 %vm356_vm1, %v6361_v1  ;;  %v735_v1 = vshll.u32 %v8368_v12, 16  ;;  %v731_v58 = vrot.slane %v729_v39, 5  ;;  %v6345_v22 = vrot.slane %v6329_v33, 9  ;;  %v3104_v13 = vrot.slane %v6263_v48, 5 }
  0x61   : > { %7041 = vmatprep.mubr.msk.bf16.mxu0 %vm356_vm1, %v6362_v2  ;;  %v709_v55 = vrot.slane %v708_v41, 4  ;;  %v719_v63 = vrot.slane %v718_v34, 4  ;;  %v3101_v2 = vrot.slane %v6262_v47, 5  ;;  %v747_v3 = vrot.slane %v745_v14, 5  ;;  %v8446_v47 = vld [vmem:[%s7983_s28 + $0x40] sm:$0xf] }
  0x62   : > { %6878 = vmatmul.mubr.msk.bf16.vlgmr.msra.gmra.mrb[0].mxu1 %vm356_vm1, %v6069_v10  ;;  %v737_v59 = vrot.slane %v735_v1, 5  ;;  %v732_v42 = vor.u32 %v731_v58, %v728_v37  ;;  %v6346_v5 = vrot.slane %v6330_v54, 9  ;;  %v3108_v23 = vrot.slane %v6265_v51, 5  ;;  %v6268_v54 = vld [vmem:[%s7983_s28 + $0xa0] sm:$0xf]  ;;  %v8464_v58 = vld [vmem:[%s10223_s2 + $0x8c] sm:$0xff]  }
  0x63   : > { %6910 = vmatpush3.bf16.msra.mxu1 %v8210_v29  ;;  %v739_v29 = vshrl.u32 %v8368_v12, 16  ;;  %v714_v43 = vsel %vm8026_vm4, %v709_v55, %v713_v31  ;;  %v724_v57 = vsel %vm8026_vm4, %v719_v63, %v723_v38  ;;  %v8414_v10 = vsel %vm8161_vm7, %v6345_v22, %v3101_v2  ;;  %v617_v38 = vld [vmem:[%s7983_s28 + $0x3c] sm:$0xf]  ;;  %v6269_v55 = vld [vmem:[%s7983_s28 + $0xa4] sm:$0x1] }
  0x64   : > { %6911 = vmatprep.subr.bf16.mxu1 %v7555_v52  ;;  %v3103_v44 = vrot.slane %v3101_v2, 4  ;;  %v6070_v16 = vcombine.low %v714_v43, %v724_v57  ;;  %v733_v17 = vrot.slane %v732_v42, 4  ;;  %v3111_v20 = vrot.slane %v6266_v35, 5  ;;  %v6331_v63 = vld [vmem:[%s7983_s28 + $0x9c] sm:$0xe] }
  0x65   : > { %v741_v8 = vrot.slane %v739_v29, 4  ;;  %v750_v31 = vshrl.u32 %v614_v61, 16  ;;  %v8435_v33 = vsel %vm8161_vm7, %v6346_v5, %v3108_v23  ;;  %v3110_v41 = vrot.slane %v3108_v23, 4  ;;  %v6271_v42 = vld [vmem:[%s7983_s28 + $0xac] sm:$0xf] }
  0x66   : > { %6881 = vmatprep.mubr.msk.bf16.mxu1 %vm356_vm1, %v6070_v16  ;;  %v738_v56 = vsel %vm8026_vm4, %v733_v17, %v737_v59  ;;  %v759_v39 = vshll.u32 %v8417_v18, 16  ;;  %v763_v53 = vshrl.u32 %v8417_v18, 16  ;;  %v769_v62 = vshll.u32 %v8423_v24, 16  ;;  %v6272_v23 = vld [vmem:[%s7983_s28 + $0xb0] sm:$0x1] }
  0x67   : > { %6912 = vmatpush3.bf16.msra.mxu1 %v7555_v52  ;;  %v742_v0 = vor.u32 %v741_v8, %v737_v59  ;;  %v3105_v52 = vsel %vm8161_vm7, %v3103_v44, %v3104_v13  ;;  %v752_v50 = vrot.slane %v750_v31, 4  ;;  %v8450_v34 = vsel %vm8161_vm7, %v3110_v41, %v3111_v20 }
  0x68   : > { %7042 = vmatmul.mubr.msk.bf16.gmra.mrb[12].mxu0 %vm356_vm1, %v6363_v4  ;;  %v6366_v32 = vcombine.low %v8414_v10, %v3105_v52  ;;  %v753_v4 = vshll.u32 %v614_v61, 16  ;;  %v6367_v37 = vcombine.low %v8435_v33, %v8450_v34  ;;  %v761_v29 = vrot.slane %v759_v39, 5  ;;  %v6332_v10 = vld [vmem:[%s7983_s28 + $0xa8] sm:$0xe] }
  0x69   : > { %v743_v45 = vrot.slane %v742_v0, 4  ;;  %7045 = vmatprep.mubr.msk.bf16.mxu0 %vm356_vm1, %v6364_v28  ;;  %v8455_v28 = vld [vmem:[%s7983_s28 + $0x44] sm:$0x1]  ;;  %v774_v51 = vshrl.u32 %v617_v38, 16  ;;  %v765_v14 = vrot.slane %v763_v53, 4  ;;  %v771_v22 = vrot.slane %v769_v62, 5 }
  0x6a   : > { %v755_v1 = vrot.slane %v753_v4, 5  ;;  %v777_v35 = vshll.u32 %v617_v38, 16  ;;  %v783_v61 = vshll.u32 %v8446_v47, 16  ;;  %v787_v2 = vshrl.u32 %v8446_v47, 16  ;;  %v8489_v4 = vld [vmem:[%s7983_s28 + $0x4c] sm:$0xf] }
  0x6b   : > { %v748_v9 = vsel %vm8026_vm4, %v743_v45, %v747_v3  ;;  %v776_v8 = vrot.slane %v774_v51, 4  ;;  %v793_v43 = vshll.u32 %v8455_v28, 16  ;;  %v766_v3 = vor.u32 %v765_v14, %v761_v29  ;;  %v8500_v51 = vld [vmem:[%s7983_s28 + $0x50] sm:$0x1] }
  0x6c   : > { %v6071_v48 = vcombine.low %v738_v56, %v748_v9  ;;  %v756_v59 = vor.u32 %v755_v1, %v752_v50  ;;  %v779_v13 = vrot.slane %v777_v35, 5  ;;  %v785_v57 = vrot.slane %v783_v61, 5  ;;  %v620_v56 = vld [vmem:[%s7983_s28 + $0x48] sm:$0xf]  ;;  %v623_v61 = vld [vmem:[%s7983_s28 + $0x54] sm:$0xf] }
  0x6d   : > { %v3637_v0 = vsel %vm405_vm0, %v7554_v21, 0  ;;  %v789_v16 = vrot.slane %v787_v2, 4  ;;  %v795_v17 = vrot.slane %v793_v43, 5  ;;  %v6347_v5 = vrot.slane %v6331_v63, 9  ;;  %v8508_v63 = vld [vmem:[%s7983_s28 + $0x58] sm:$0xf] }
  0x6e   : > { %6882 = vmatmul.mubr.msk.bf16.gmra.mrb[4].mxu1 %vm356_vm1, %v6071_v48  ;;  %v757_v44 = vrot.slane %v756_v59, 4  ;;  %7066 = vmatpush3.bf16.msra.mxu0 %v3637_v0  ;;  %v767_v45 = vrot.slane %v766_v3, 4  ;;  %v780_v52 = vor.u32 %v779_v13, %v776_v8  ;;  %v3115_v20 = vrot.slane %v6268_v54, 5 }
  0x6f   : > { %v3118_v31 = vrot.slane %v6269_v55, 5  ;;  %7099 = vmatprep.subr.bf16.mxu0 %v8464_v58  ;;  %v790_v41 = vor.u32 %v789_v16, %v785_v57  ;;  %v6348_v38 = vrot.slane %v6332_v10, 9  ;;  %v3122_v9 = vrot.slane %v6271_v42, 5  ;;  %v8514_v42 = vld [vmem:[%s7983_s28 + $0x5c] sm:$0x1] }
  0x70   : > { %7046 = vmatmul.mubr.msk.bf16.gmra.mrb[16].mxu0 %vm356_vm1, %v6365_v36  ;;  %v762_v21 = vsel %vm8026_vm4, %v757_v44, %v761_v29  ;;  %v772_v26 = vsel %vm8026_vm4, %v767_v45, %v771_v22  ;;  %v781_v27 = vrot.slane %v780_v52, 4  ;;  %v3116_v36 = vsel %vm8161_vm7, %v6347_v5, %v3115_v20  ;;  %v6274_v10 = vld [vmem:[%s7983_s28 + $0xb8] sm:$0xf]  ;;  %v6275_v44 = vld [vmem:[%s7983_s28 + $0xbc] sm:$0x1] }
  0x71   : > { %7049 = vmatprep.mubr.msk.bf16.mxu0 %vm356_vm1, %v6366_v32  ;;  %v3117_v50 = vrot.slane %v3115_v20, 4  ;;  %v6072_v32 = vcombine.low %v762_v21, %v772_v26  ;;  %v791_v39 = vrot.slane %v790_v41, 4  ;;  %v8493_v48 = vsel %vm8161_vm7, %v6348_v38, %v3122_v9  ;;  %v6333_v16 = vld [vmem:[%s7983_s28 + $0xb4] sm:$0xe]  ;;  %v6277_v52 = vld [vmem:[%s7983_s28 + $0xc4] sm:$0xf] }
  0x72   : > { %v3124_v53 = vrot.slane %v3122_v9, 4  ;;  %v786_v62 = vsel %vm8026_vm4, %v781_v27, %v785_v57  ;;  %v3125_v29 = vrot.slane %v6272_v23, 5  ;;  %v798_v54 = vshrl.u32 %v620_v56, 16  ;;  %v6334_v20 = vld [vmem:[%s7983_s28 + $0xc0] sm:$0xe] }
  0x73   : > { %v3119_v1 = vsel %vm8161_vm7, %v3117_v50, %v3118_v31  ;;  %6885 = vmatprep.mubr.msk.bf16.mxu1 %vm356_vm1, %v6072_v32  ;;  %v796_v55 = vsel %vm8026_vm4, %v791_v39, %v795_v17  ;;  %v801_v22 = vshll.u32 %v620_v56, 16  ;;  %v807_v35 = vshll.u32 %v8489_v4, 16  ;;  %v6278_v50 = vld [vmem:[%s7983_s28 + $0xc8] sm:$0x1]  ;;  %v626_v32 = vld [vmem:[%s7983_s28 + $0x60] sm:$0xf] }
  0x74   : > { %v6368_v14 = vcombine.low %v3116_v36, %v3119_v1  ;;  %v6073_v59 = vcombine.low %v786_v62, %v796_v55  ;;  %v3126_v8 = vsel %vm8161_vm7, %v3124_v53, %v3125_v29  ;;  %v800_v2 = vrot.slane %v798_v54, 4 }
  0x75   : > { %v811_v43 = vshrl.u32 %v8489_v4, 16  ;;  %v6369_v3 = vcombine.low %v8493_v48, %v3126_v8  ;;  %v803_v13 = vrot.slane %v801_v22, 5  ;;  %v809_v57 = vrot.slane %v807_v35, 5 }
  0x76   : > { %v817_v0 = vshll.u32 %v8500_v51, 16  ;;  %6886 = vmatmul.mubr.msk.bf16.gmra.mrb[8].mxu1 %vm356_vm1, %v6073_v59  ;;  %v822_v5 = vshrl.u32 %v623_v61, 16  ;;  %v825_v23 = vshll.u32 %v623_v61, 16  ;;  %v831_v45 = vshll.u32 %v8508_v63, 16  ;;  %v8541_v59 = vld [vmem:[%s7983_s28 + $0x64] sm:$0xf] }
  0x77   : > { %v813_v17 = vrot.slane %v811_v43, 4  ;;  %v804_v31 = vor.u32 %v803_v13, %v800_v2  ;;  %v835_v21 = vshrl.u32 %v8508_v63, 16  ;;  %v841_v33 = vshll.u32 %v8514_v42, 16 }
  0x78   : > { %7050 = vmatmul.mubr.msk.bf16.gmra.mrb[20].mxu0 %vm356_vm1, %v6367_v37  ;;  %v819_v56 = vrot.slane %v817_v0, 5  ;;  %v824_v37 = vrot.slane %v822_v5, 4  ;;  %v827_v41 = vrot.slane %v825_v23, 5  ;;  %v833_v38 = vrot.slane %v831_v45, 5  ;;  %v629_v0 = vld [vmem:[%s7983_s28 + $0x6c] sm:$0xf] }
  0x79   : > { %7053 = vmatprep.mubr.msk.bf16.mxu0 %vm356_vm1, %v6368_v14  ;;  %v814_v34 = vor.u32 %v813_v17, %v809_v57  ;;  %v805_v9 = vrot.slane %v804_v31, 4  ;;  %v837_v26 = vrot.slane %v835_v21, 4  ;;  %v843_v27 = vrot.slane %v841_v33, 5  ;;  %v8555_v5 = vld [vmem:[%s7983_s28 + $0x70] sm:$0xf] }
  0x7a   : > { %v6349_v36 = vrot.slane %v6333_v16, 9  ;;  %v828_v48 = vor.u32 %v827_v41, %v824_v37  ;;  %v3129_v53 = vrot.slane %v6274_v10, 5  ;;  %v3132_v62 = vrot.slane %v6275_v44, 5  ;;  %v8558_v23 = vld [vmem:[%s7983_s28 + $0x74] sm:$0x1] }
  0x7b   : > { %v815_v39 = vrot.slane %v814_v34, 4  ;;  %v810_v1 = vsel %vm8026_vm4, %v805_v9, %v809_v57  ;;  %v838_v29 = vor.u32 %v837_v26, %v833_v38  ;;  %v6350_v54 = vrot.slane %v6334_v20, 9  ;;  %v8546_v57 = vld [vmem:[%s7983_s28 + $0x68] sm:$0x1]  ;;  %v632_v34 = vld [vmem:[%s7983_s28 + $0x78] sm:$0xf] }
  0x7c   : > { %v3136_v55 = vrot.slane %v6277_v52, 5  ;;  %v829_v22 = vrot.slane %v828_v48, 4  ;;  %v3130_v35 = vsel %vm8161_vm7, %v6349_v36, %v3129_v53  ;;  %v3131_v61 = vrot.slane %v3129_v53, 4  ;;  %v8573_v26 = vld [vmem:[%s10223_s2 + $0x38] ss:$0 sps:$4 sm:$0x33]  }
  0x7d   : > { %v820_v14 = vsel %vm8026_vm4, %v815_v39, %v819_v56  ;;  %v839_v2 = vrot.slane %v838_v29, 4  ;;  %v3139_v16 = vrot.slane %v6278_v50, 5  ;;  %v846_v17 = vshrl.u32 %v626_v32, 16  ;;  %v8581_v29 = vld [vmem:[%s7983_s28 + $0x7c] sm:$0xf]  ;;  %7471 = vmatprep.subr.msk.bf16.mxu1 %vm405_vm0, %v8573_v26 }
  0x7e   : > { %v6074_v8 = vcombine.low %v810_v1, %v820_v14  ;;  %v3137_v43 = vsel %vm8161_vm7, %v6350_v54, %v3136_v55  ;;  %v3138_v13 = vrot.slane %v3136_v55, 4  ;;  %v834_v10 = vsel %vm8026_vm4, %v829_v22, %v833_v38  ;;  %v7556_v1 = vld [vmem:[%s7983_s28 + $0x18] sm:$0xff]  }
  0x7f   : > { %v3133_v44 = vsel %vm8161_vm7, %v3131_v61, %v3132_v62  ;;  %v844_v45 = vsel %vm8026_vm4, %v839_v2, %v843_v27  ;;  %v855_v20 = vshll.u32 %v8541_v59, 16  ;;  %v848_v21 = vrot.slane %v846_v17, 4 }
  0x80   : > { %7054 = vmatmul.mubr.msk.bf16.gmra.mrb[24].mxu0 %vm356_vm1, %v6369_v3  ;;  %6889 = vmatprep.mubr.msk.bf16.mxu1 %vm356_vm1, %v6074_v8  ;;  %v6370_v52 = vcombine.low %v3130_v35, %v3133_v44  ;;  %v849_v3 = vshll.u32 %v626_v32, 16  ;;  %v6075_v31 = vcombine.low %v834_v10, %v844_v45  ;;  %v3140_v56 = vsel %vm8161_vm7, %v3138_v13, %v3139_v16 }
  0x81   : > { %v859_v33 = vshrl.u32 %v8541_v59, 16  ;;  %v6371_v37 = vcombine.low %v3137_v43, %v3140_v56  ;;  %v857_v38 = vrot.slane %v855_v20, 5  ;;  %v865_v9 = vshll.u32 %v8546_v57, 16  ;;  %v8596_v20 = vld [vmem:[%s7983_s28 + $0x88] sm:$0xf] }
  0x82   : > { %7057 = vmatprep.mubr.msk.bf16.mxu0 %vm356_vm1, %v6370_v52  ;;  %v851_v41 = vrot.slane %v849_v3, 5  ;;  %6890 = vmatmul.mubr.msk.bf16.gmra.mrb[12].mxu1 %vm356_vm1, %v6075_v31  ;;  %v870_v36 = vshrl.u32 %v629_v0, 16  ;;  %v873_v50 = vshll.u32 %v629_v0, 16  ;;  %v879_v32 = vshll.u32 %v8555_v5, 16  ;;  %v8587_v0 = vld [vmem:[%s7983_s28 + $0x80] sm:$0x1] }
  0x83   : > { %v861_v27 = vrot.slane %v859_v33, 4  ;;  %v867_v48 = vrot.slane %v865_v9, 5  ;;  %v883_v53 = vshrl.u32 %v8555_v5, 16  ;;  %v889_v62 = vshll.u32 %v8558_v23, 16  ;;  %v635_v3 = vld [vmem:[%s7983_s28 + $0x84] sm:$0xf] }
  0x84   : > { %v852_v39 = vor.u32 %v851_v41, %v848_v21  ;;  %v872_v55 = vrot.slane %v870_v36, 4  ;;  %v875_v14 = vrot.slane %v873_v50, 5  ;;  %v881_v22 = vrot.slane %v879_v32, 5 }
  0x85   : > { %v862_v54 = vor.u32 %v861_v27, %v857_v38  ;;  %v885_v61 = vrot.slane %v883_v53, 4  ;;  %v891_v8 = vrot.slane %v889_v62, 5  ;;  %v894_v2 = vshrl.u32 %v632_v34, 16 }
  0x86   : > { %v853_v35 = vrot.slane %v852_v39, 4  ;;  %v876_v13 = vor.u32 %v875_v14, %v872_v55  ;;  %v897_v10 = vshll.u32 %v632_v34, 16  ;;  %v903_v44 = vshll.u32 %v8581_v29, 16  ;;  %v8601_v34 = vld [vmem:[%s7983_s28 + $0x8c] sm:$0x1] }
  0x87   : > { %v863_v43 = vrot.slane %v862_v54, 4  ;;  %v886_v17 = vor.u32 %v885_v61, %v881_v22  ;;  %v896_v45 = vrot.slane %v894_v2, 4  ;;  %v907_v52 = vshrl.u32 %v8581_v29, 16  ;;  %v7559_v54 = vld [vmem:[%s7983_s28 + $0x30] sm:$0xff]  }
  0x88   : > { %7058 = vmatmul.mubr.msk.bf16.gmra.mrb[28].mxu0 %vm356_vm1, %v6371_v37  ;;  %v858_v16 = vsel %vm8026_vm4, %v853_v35, %v857_v38  ;;  %v877_v56 = vrot.slane %v876_v13, 4  ;;  %v899_v21 = vrot.slane %v897_v10, 5  ;;  %v905_v33 = vrot.slane %v903_v44, 5  ;;  %v7558_v38 = vld [vmem:[%s7983_s28 + $0x24] sm:$0xff]   ;;  %v638_v55 = vld [vmem:[%s7983_s28 + $0x90] sm:$0xf] }
  0x89   : > { %7067 = vmatprep.mubr.msk.bf16.mxu0 %vm356_vm1, %v7556_v1  ;;  %v868_v31 = vsel %vm8026_vm4, %v863_v43, %v867_v48  ;;  %v887_v41 = vrot.slane %v886_v17, 4  ;;  %v909_v9 = vrot.slane %v907_v52, 4  ;;  %v913_v27 = vshll.u32 %v8587_v0, 16  ;;  %v7564_v2 = vld [vmem:[%s10223_s2 + $0x94] sm:$0xff]  }
  0x8a   : > { %v6076_v37 = vcombine.low %v858_v16, %v868_v31  ;;  %v882_v36 = vsel %vm8026_vm4, %v877_v56, %v881_v22  ;;  %v900_v50 = vor.u32 %v899_v21, %v896_v45  ;;  %v918_v32 = vshrl.u32 %v635_v3, 16  ;;  %v8624_v16 = vld [vmem:[%s7983_s28 + $0x94] sm:$0xf]  ;;  %v641_v56 = vld [vmem:[%s7983_s28 + $0x9c] sm:$0xf] }
  0x8b   : > { %v921_v39 = vshll.u32 %v635_v3, 16  ;;  %v892_v48 = vsel %vm8026_vm4, %v887_v41, %v891_v8  ;;  %v910_v53 = vor.u32 %v909_v9, %v905_v33  ;;  %v915_v62 = vrot.slane %v913_v27, 5  ;;  %v8619_v8 = vld [vmem:[%s10223_s2 + $0x3c] sm:$0xff]   ;;  %v8633_v3 = vld [vmem:[%s7983_s28 + $0x98] sm:$0x1] }
  0x8c   : > { %6893 = vmatprep.mubr.msk.bf16.mxu1 %vm356_vm1, %v6076_v37  ;;  %v927_v1 = vshll.u32 %v8596_v20, 16  ;;  %v6077_v14 = vcombine.low %v882_v36, %v892_v48  ;;  %v901_v35 = vrot.slane %v900_v50, 4  ;;  %v920_v61 = vrot.slane %v918_v32, 4  ;;  %v8645_v50 = vld [vmem:[%s7983_s28 + $0xa4] sm:$0x1] }
  0x8d   : > { %v923_v22 = vrot.slane %v921_v39, 5  ;;  %v911_v43 = vrot.slane %v910_v53, 4  ;;  %v931_v10 = vshrl.u32 %v8596_v20, 16  ;;  %v937_v44 = vshll.u32 %v8601_v34, 16 }
  0x8e   : > { %v929_v13 = vrot.slane %v927_v1, 5  ;;  %6894 = vmatmul.mubr.msk.bf16.gmra.mrb[16].mxu1 %vm356_vm1, %v6077_v14  ;;  %v906_v17 = vsel %vm8026_vm4, %v901_v35, %v905_v33  ;;  %v1647_v52 = vsel %vm405_vm0, %v8573_v26, 0  ;;  %v942_v31 = vshrl.u32 %v638_v55, 16  ;;  %v8641_v33 = vld [vmem:[%s7983_s28 + $0xa0] sm:$0xf] }
  0x8f   : > { %v924_v45 = vor.u32 %v923_v22, %v920_v61  ;;  %v916_v21 = vsel %vm8026_vm4, %v911_v43, %v915_v62  ;;  %v933_v37 = vrot.slane %v931_v10, 4  ;;  %v939_v41 = vrot.slane %v937_v44, 5  ;;  %6914 = vmatpush3.bf16.msra.mxu1 %v1647_v52  ;;  %v7561_v62 = vld [vmem:[%s7983_s28 + $0x3c] sm:$0xff]   ;;  %v644_v14 = vld [vmem:[%s7983_s28 + $0xa8] sm:$0xf] }
  0x90   : > { %7068 = vmatmul.mubr.msk.bf16.vlgmr.msra.gmra.mrb[0].mxu0 %vm356_vm1, %v7558_v38  ;;  %v945_v38 = vshll.u32 %v638_v55, 16  ;;  %v6078_v9 = vcombine.low %v906_v17, %v916_v21  ;;  %v944_v27 = vrot.slane %v942_v31, 4  ;;  %v951_v36 = vshll.u32 %v8624_v16, 16  ;;  %6947 = vmatprep.subr.bf16.mxu1 %v8619_v8  ;;  %v7562_v10 = vld [vmem:[%s7983_s28 + $0x48] sm:$0xff]  }
  0x91   : > { %7100 = vmatpush3.bf16.msra.mxu0 %v8464_v58  ;;  %7071 = vmatprep.mubr.msk.bf16.mxu0 %vm356_vm1, %v7559_v54  ;;  %v925_v26 = vrot.slane %v924_v45, 4  ;;  %v934_v58 = vor.u32 %v933_v37, %v929_v13  ;;  %v955_v39 = vshrl.u32 %v8624_v16, 16  ;;  %v961_v48 = vshll.u32 %v8633_v3, 16  ;;  %v8662_v37 = vld [vmem:[%s7983_s28 + $0xac] sm:$0xf] }
  0x92   : > { %7101 = vmatprep.subr.bf16.mxu0 %v7564_v2  ;;  %v947_v32 = vrot.slane %v945_v38, 5  ;;  %6897 = vmatprep.mubr.msk.bf16.mxu1 %vm356_vm1, %v6078_v9  ;;  %v953_v1 = vrot.slane %v951_v36, 5  ;;  %v966_v54 = vshrl.u32 %v641_v56, 16  ;;  %v969_v55 = vshll.u32 %v641_v56, 16  ;;  %v8665_v38 = vld [vmem:[%s7983_s28 + $0xb0] sm:$0x1] }
  0x93   : > { %v930_v53 = vsel %vm8026_vm4, %v925_v26, %v929_v13  ;;  %v935_v35 = vrot.slane %v934_v58, 4  ;;  %v957_v22 = vrot.slane %v955_v39, 4  ;;  %v963_v43 = vrot.slane %v961_v48, 5  ;;  %v647_v36 = vld [vmem:[%s7983_s28 + $0xb4] sm:$0xf] }
  0x94   : > { %v948_v61 = vor.u32 %v947_v32, %v944_v27  ;;  %v968_v44 = vrot.slane %v966_v54, 4  ;;  %v971_v17 = vrot.slane %v969_v55, 5  ;;  %v975_v45 = vshll.u32 %v8641_v33, 16  ;;  %v8673_v48 = vld [vmem:[%s7983_s28 + $0xb8] sm:$0xf] }
  0x95   : > { %7102 = vmatpush3.bf16.msra.mxu0 %v7564_v2  ;;  %v979_v13 = vshrl.u32 %v8641_v33, 16  ;;  %v940_v52 = vsel %vm8026_vm4, %v935_v35, %v939_v41  ;;  %v958_v56 = vor.u32 %v957_v22, %v953_v1  ;;  %v985_v21 = vshll.u32 %v8645_v50, 16  ;;  %v7563_v54 = vld [vmem:[%s7983_s28 + $0x54] sm:$0xff]  }
  0x96   : > { %v949_v31 = vrot.slane %v948_v61, 4  ;;  %v6079_v2 = vcombine.low %v930_v53, %v940_v52  ;;  %v972_v9 = vor.u32 %v971_v17, %v968_v44  ;;  %v977_v26 = vrot.slane %v975_v45, 5  ;;  %v7565_v44 = vld [vmem:[%s7983_s28 + $0x60] sm:$0xff]  }
  0x97   : > { %v981_v27 = vrot.slane %v979_v13, 4  ;;  %v959_v58 = vrot.slane %v958_v56, 4  ;;  %v987_v32 = vrot.slane %v985_v21, 5  ;;  %v990_v39 = vshrl.u32 %v644_v14, 16 }
  0x98   : > { %7072 = vmatmul.mubr.msk.bf16.gmra.mrb[4].mxu0 %vm356_vm1, %v7561_v62  ;;  %v954_v41 = vsel %vm8026_vm4, %v949_v31, %v953_v1  ;;  %6898 = vmatmul.mubr.msk.bf16.gmra.mrb[20].mxu1 %vm356_vm1, %v6079_v2  ;;  %v973_v53 = vrot.slane %v972_v9, 4  ;;  %v993_v55 = vshll.u32 %v644_v14, 16  ;;  %v999_v35 = vshll.u32 %v8662_v37, 16  ;;  %v8686_v14 = vld [vmem:[%s7983_s28 + $0xbc] sm:$0x1] }
  0x99   : > { %7075 = vmatprep.mubr.msk.bf16.mxu0 %vm356_vm1, %v7562_v10  ;;  %v982_v62 = vor.u32 %v981_v27, %v977_v26  ;;  %v964_v1 = vsel %vm8026_vm4, %v959_v58, %v963_v43  ;;  %v992_v61 = vrot.slane %v990_v39, 4  ;;  %v1003_v22 = vshrl.u32 %v8662_v37, 16  ;;  %v1350_v43 = vld [vmem:[%s7983_s28] sm:$0xe] }
  0x9a   : > { %v1009_v10 = vshll.u32 %v8665_v38, 16  ;;  %v6080_v17 = vcombine.low %v954_v41, %v964_v1  ;;  %v978_v45 = vsel %vm8026_vm4, %v973_v53, %v977_v26  ;;  %v995_v52 = vrot.slane %v993_v55, 5  ;;  %v1351_v55 = vld [vmem:[%s7983_s28 + $0xc] sm:$0xe] }
  0x9b   : > { %v983_v13 = vrot.slane %v982_v62, 4  ;;  %v1001_v31 = vrot.slane %v999_v35, 5  ;;  %v1005_v56 = vrot.slane %v1003_v22, 4  ;;  %v1014_v2 = vshrl.u32 %v647_v36, 16 }
  0x9c   : > { %v1011_v21 = vrot.slane %v1009_v10, 5  ;;  %6901 = vmatprep.mubr.msk.bf16.mxu1 %vm356_vm1, %v6080_v17  ;;  %v996_v27 = vor.u32 %v995_v52, %v992_v61  ;;  %v1017_v41 = vshll.u32 %v647_v36, 16  ;;  %v1023_v26 = vshll.u32 %v8673_v48, 16  ;;  %v1352_v17 = vld [vmem:[%s7983_s28 + $0x18] sm:$0xe] }
  0x9d   : > { %v988_v9 = vsel %vm8026_vm4, %v983_v13, %v987_v32  ;;  %v1006_v39 = vor.u32 %v1005_v56, %v1001_v31  ;;  %v1016_v53 = vrot.slane %v1014_v2, 4  ;;  %v1027_v62 = vshrl.u32 %v8673_v48, 16  ;;  %v7790_v56 = vld [vmem:[%s7983_s28 + $0x8] sm:$0x1] }
  0x9e   : > { %v6081_v58 = vcombine.low %v978_v45, %v988_v9  ;;  %v997_v35 = vrot.slane %v996_v27, 4  ;;  %v1019_v1 = vrot.slane %v1017_v41, 5  ;;  %v1025_v22 = vrot.slane %v1023_v26, 5  ;;  %v7572_v9 = vld [vmem:[%s10223_s2 + $0x9c] ss:$0 sps:$4 sm:$0x33]  }
  0x9f   : > { %v1033_v10 = vshll.u32 %v8686_v14, 16  ;;  %v1007_v32 = vrot.slane %v1006_v39, 4  ;;  %v1029_v36 = vrot.slane %v1027_v62, 4  ;;  %v6103_v61 = vrot.slane %v1350_v43, 9  ;;  %v1353_v41 = vld [vmem:[%s7983_s28 + $0x24] sm:$0xe]  ;;  %7477 = vmatprep.subr.msk.bf16.mxu0 %vm405_vm0, %v7572_v9 }
  0xa0   : > { %7076 = vmatmul.mubr.msk.bf16.gmra.mrb[8].mxu0 %vm356_vm1, %v7563_v54  ;;  %v1419_v45 = vrot.slane %v8285_v60, 5  ;;  %6902 = vmatmul.mubr.msk.bf16.gmra.mrb[24].mxu1 %vm356_vm1, %v6081_v58  ;;  %v1002_v54 = vsel %vm8026_vm4, %v997_v35, %v1001_v31  ;;  %v1020_v13 = vor.u32 %v1019_v1, %v1016_v53  ;;  %v1422_v2 = vrot.slane %v7790_v56, 5  ;;  %v7566_v58 = vld [vmem:[%s7983_s28 + $0x6c] sm:$0xff]   ;;  %v7792_v1 = vld [vmem:[%s7983_s28 + $0x14] sm:$0x1] }
  0xa1   : > { %7079 = vmatprep.mubr.msk.bf16.mxu0 %vm356_vm1, %v7565_v44  ;;  %v1035_v52 = vrot.slane %v1033_v10, 5  ;;  %v1012_v44 = vsel %vm8026_vm4, %v1007_v32, %v1011_v21  ;;  %v1030_v60 = vor.u32 %v1029_v36, %v1025_v22  ;;  %v6104_v39 = vrot.slane %v1351_v55, 9  ;;  %v7791_v53 = vld [vmem:[%s7983_s28 + $0x10] sm:$0xf]  ;;  %v7568_v32 = vld [vmem:[%s7983_s28 + $0x78] sm:$0xff]  }
  0xa2   : > { %v1420_v43 = vsel %vm8161_vm7, %v6103_v61, %v1419_v45  ;;  %v1421_v27 = vrot.slane %v1419_v45, 4  ;;  %v6082_v31 = vcombine.low %v1002_v54, %v1012_v44  ;;  %v1021_v26 = vrot.slane %v1020_v13, 4  ;;  %v1354_v13 = vld [vmem:[%s7983_s28 + $0x30] sm:$0xe] }
  0xa3   : > { %v1426_v62 = vrot.slane %v7791_v53, 5  ;;  %v1031_v35 = vrot.slane %v1030_v60, 4  ;;  %v1429_v10 = vrot.slane %v7792_v1, 5  ;;  %v6105_v36 = vrot.slane %v1352_v17, 9  ;;  %v1355_v60 = vld [vmem:[%s7983_s28 + $0x3c] sm:$0xe] }
  0xa4   : > { %v1423_v21 = vsel %vm8161_vm7, %v1421_v27, %v1422_v2  ;;  %6905 = vmatprep.mubr.msk.bf16.mxu1 %vm356_vm1, %v6082_v31  ;;  %v1026_v61 = vsel %vm8026_vm4, %v1021_v26, %v1025_v22  ;;  %v1433_v2 = vrot.slane %v8350_v6, 5  ;;  %v1436_v17 = vrot.slane %v8356_v7, 5  ;;  %v8757_v1 = vld [vmem:[%s10223_s2 + $0xa0] sm:$0xff]  }
  0xa5   : > { %v6124_v45 = vcombine.low %v1420_v43, %v1423_v21  ;;  %v8724_v55 = vsel %vm8161_vm7, %v6104_v39, %v1426_v62  ;;  %v1428_v54 = vrot.slane %v1426_v62, 4  ;;  %v1036_v56 = vsel %vm8026_vm4, %v1031_v35, %v1035_v52 }
  0xa6   : > { %v6106_v44 = vrot.slane %v1353_v41, 9  ;;  %v6083_v27 = vcombine.low %v1026_v61, %v1036_v56  ;;  %v1440_v43 = vrot.slane %v8368_v12, 5  ;;  %v1443_v31 = vrot.slane %v8377_v46, 5  ;;  %v1356_v41 = vld [vmem:[%s7983_s28 + $0x48] sm:$0xe]  ;;  %v7570_v61 = vld [vmem:[%s7983_s28 + $0x90] sm:$0xff]  }
  0xa7   : > { %v1430_v22 = vsel %vm8161_vm7, %v1428_v54, %v1429_v10  ;;  %v1434_v6 = vsel %vm8161_vm7, %v6105_v36, %v1433_v2  ;;  %v1435_v7 = vrot.slane %v1433_v2, 4  ;;  %v6107_v52 = vrot.slane %v1354_v13, 9  ;;  %v7569_v10 = vld [vmem:[%s7983_s28 + $0x84] sm:$0xff]   ;;  %v1358_v13 = vld [vmem:[%s7983_s28 + $0x60] sm:$0xe] }
  0xa8   : > { %7080 = vmatmul.mubr.msk.bf16.gmra.mrb[12].mxu0 %vm356_vm1, %v7566_v58  ;;  %v6125_v26 = vcombine.low %v8724_v55, %v1430_v22  ;;  %6906 = vmatmul.mubr.msk.bf16.gmra.mrb[28].mxu1 %vm356_vm1, %v6083_v27  ;;  %v8745_v58 = vsel %vm8161_vm7, %v6106_v44, %v1440_v43  ;;  %v1442_v12 = vrot.slane %v1440_v43, 4  ;;  %v1447_v46 = vrot.slane %v8417_v18, 5 }
  0xa9   : > { %7083 = vmatprep.mubr.msk.bf16.mxu0 %vm356_vm1, %v7568_v32  ;;  %v1450_v39 = vrot.slane %v8423_v24, 5  ;;  %6915 = vmatprep.mubr.msk.bf16.mxu1 %vm356_vm1, %v6124_v45  ;;  %v1437_v53 = vsel %vm8161_vm7, %v1435_v7, %v1436_v17  ;;  %v6108_v62 = vrot.slane %v1355_v60, 9  ;;  %v1454_v35 = vrot.slane %v8446_v47, 5  ;;  %v1357_v47 = vld [vmem:[%s7983_s28 + $0x54] sm:$0xe] }
  0xaa   : > { %v1457_v21 = vrot.slane %v8455_v28, 5  ;;  %v6126_v18 = vcombine.low %v1434_v6, %v1437_v53  ;;  %v8762_v24 = vsel %vm8161_vm7, %v1442_v12, %v1443_v31  ;;  %v8766_v32 = vsel %vm8161_vm7, %v6107_v52, %v1447_v46  ;;  %v1359_v60 = vld [vmem:[%s7983_s28 + $0x6c] sm:$0xe] }
  0xab   : > { %v1449_v36 = vrot.slane %v1447_v46, 4  ;;  %v6127_v28 = vcombine.low %v8745_v58, %v8762_v24  ;;  %v8774_v45 = vsel %vm8161_vm7, %v6108_v62, %v1454_v35  ;;  %v1456_v55 = vrot.slane %v1454_v35, 4  ;;  %v6463_v46 = vld [vmem:[%s7983_s28 + $0x18] sm:$0xf]  ;;  %v8819_v35 = vld [vmem:[%s7983_s28 + $0x1c] sm:$0xf] }
  0xac   : > { %v4382_v54 = vsel %vm405_vm0, %v7572_v9, 0  ;;  %v6109_v2 = vrot.slane %v1356_v41, 9  ;;  %v1461_v17 = vrot.slane %v8489_v4, 5  ;;  %v1464_v44 = vrot.slane %v8500_v51, 5  ;;  %v7574_v58 = vld [vmem:[%s7983_s28 + $0xb4] sm:$0xff]  }
  0xad   : > { %v8780_v56 = vsel %vm8161_vm7, %v1449_v36, %v1450_v39  ;;  %7104 = vmatpush3.bf16.msra.mxu0 %v4382_v54  ;;  %v8789_v22 = vsel %vm8161_vm7, %v1456_v55, %v1457_v21  ;;  %v6110_v9 = vrot.slane %v1357_v47, 9  ;;  %v1468_v43 = vrot.slane %v8508_v63, 5  ;;  %v7575_v63 = vld [vmem:[%s10223_s2 + $0x44] sm:$0xff]   ;;  %v8849_v54 = vld [vmem:[%s7983_s28 + $0x2c] sm:$0x1] }
  0xae   : > { %v6128_v27 = vcombine.low %v8766_v32, %v8780_v56  ;;  %7137 = vmatprep.subr.bf16.mxu0 %v8757_v1  ;;  %v6129_v4 = vcombine.low %v8774_v45, %v8789_v22  ;;  %v8798_v51 = vsel %vm8161_vm7, %v6109_v2, %v1461_v17  ;;  %v1463_v31 = vrot.slane %v1461_v17, 4  ;;  %v6466_v36 = vld [vmem:[%s7983_s28 + $0x24] sm:$0xf]  ;;  %v8846_v55 = vld [vmem:[%s7983_s28 + $0x28] sm:$0xf]  ;;  %v7577_v45 = vld [vmem:[%s7983_s28 + $0xcc] sm:$0xff]  }
  0xaf   : > { %v1471_v6 = vrot.slane %v8514_v42, 5  ;;  %v8807_v7 = vsel %vm8161_vm7, %v6110_v9, %v1468_v43  ;;  %v1470_v52 = vrot.slane %v1468_v43, 4  ;;  %v6111_v41 = vrot.slane %v1358_v13, 9  ;;  %v7573_v13 = vld [vmem:[%s7983_s28 + $0xa8] sm:$0xff]  }
  0xb0   : > { %7084 = vmatmul.mubr.msk.bf16.gmra.mrb[16].mxu0 %vm356_vm1, %v7569_v10  ;;  %v1475_v12 = vrot.slane %v8541_v59, 5  ;;  %6916 = vmatmul.mubr.msk.bf16.vlgmr.msra.gmra.mrb[0].mxu1 %vm356_vm1, %v6125_v26  ;;  %v8814_v42 = vsel %vm8161_vm7, %v1463_v31, %v1464_v44  ;;  %v1478_v39 = vrot.slane %v8546_v57, 5  ;;  %v6112_v53 = vrot.slane %v1359_v60, 9  ;;  %v7571_v59 = vld [vmem:[%s7983_s28 + $0x9c] sm:$0xff]  }
  0xb1   : > { %7087 = vmatprep.mubr.msk.bf16.mxu0 %vm356_vm1, %v7570_v61  ;;  %v1482_v62 = vrot.slane %v8555_v5, 5  ;;  %6948 = vmatpush3.bf16.msra.mxu1 %v8619_v8  ;;  %v6130_v26 = vcombine.low %v8798_v51, %v8814_v42  ;;  %v8828_v21 = vsel %vm8161_vm7, %v1470_v52, %v1471_v6  ;;  %v8835_v10 = vld [vmem:[%s7983_s28 + $0x20] sm:$0x1]  ;;  %v1485_v61 = vrot.slane %v8558_v23, 5 }
  0xb2   : > { %6919 = vmatprep.mubr.msk.bf16.mxu1 %vm356_vm1, %v6126_v18  ;;  %v8832_v57 = vsel %vm8161_vm7, %v6111_v41, %v1475_v12  ;;  %v1477_v5 = vrot.slane %v1475_v12, 4  ;;  %v6131_v8 = vcombine.low %v8807_v7, %v8828_v21  ;;  %6949 = vmatprep.subr.bf16.mxu1 %v7575_v63  ;;  %v3881_v17 = vshrl.u32 %v6463_v46, 16  ;;  %v8868_v6 = vld [vmem:[%s10223_s2 + $0x4c] ss:$0 sps:$4 sm:$0x33]  }
  0xb3   : > { %v8842_v18 = vsel %vm8161_vm7, %v6112_v53, %v1482_v62  ;;  %v1484_v47 = vrot.slane %v1482_v62, 4  ;;  %v3884_v44 = vshll.u32 %v6463_v46, 16  ;;  %v3890_v60 = vshll.u32 %v8819_v35, 16 }
  0xb4   : > { %v8854_v2 = vsel %vm8161_vm7, %v1477_v5, %v1478_v39  ;;  %v3894_v43 = vshrl.u32 %v8819_v35, 16  ;;  %v3900_v31 = vshll.u32 %v8835_v10, 16  ;;  %v3883_v41 = vrot.slane %v3881_v17, 4  ;;  %v1360_v39 = vld [vmem:[%s7983_s28 + $0x78] sm:$0xe] }
  0xb5   : > { %v6132_v9 = vcombine.low %v8832_v57, %v8854_v2  ;;  %v8861_v23 = vsel %vm8161_vm7, %v1484_v47, %v1485_v61  ;;  %6950 = vmatpush3.bf16.msra.mxu1 %v7575_v63  ;;  %v3886_v12 = vrot.slane %v3884_v44, 5  ;;  %v3892_v46 = vrot.slane %v3890_v60, 5  ;;  %v6478_v2 = vld [vmem:[%s7983_s28 + $0x54] sm:$0xf] }
  0xb6   : > { %v6133_v52 = vcombine.low %v8842_v18, %v8861_v23  ;;  %v3896_v53 = vrot.slane %v3894_v43, 4  ;;  %v3902_v62 = vrot.slane %v3900_v31, 5  ;;  %v3905_v5 = vshrl.u32 %v6466_v36, 16  ;;  %7472 = vmatprep.subr.msk.bf16.mxu1 %vm405_vm0, %v8868_v6  ;;  %v1361_v31 = vld [vmem:[%s7983_s28 + $0x84] sm:$0xe] }
  0xb7   : > { %v3908_v47 = vshll.u32 %v6466_v36, 16  ;;  %v3887_v63 = vor.u32 %v3886_v12, %v3883_v41  ;;  %v3914_v61 = vshll.u32 %v8846_v55, 16  ;;  %v3918_v17 = vshrl.u32 %v8846_v55, 16 }
  0xb8   : > { %7088 = vmatmul.mubr.msk.bf16.gmra.mrb[20].mxu0 %vm356_vm1, %v7571_v59  ;;  %v3924_v44 = vshll.u32 %v8849_v54, 16  ;;  %6920 = vmatmul.mubr.msk.bf16.gmra.mrb[4].mxu1 %vm356_vm1, %v6127_v28  ;;  %v3897_v59 = vor.u32 %v3896_v53, %v3892_v46  ;;  %v3907_v36 = vrot.slane %v3905_v5, 4  ;;  %v6113_v43 = vrot.slane %v1360_v39, 9  ;;  %v7576_v39 = vld [vmem:[%s7983_s28 + $0xc0] sm:$0xff]  }
  0xb9   : > { %7091 = vmatprep.mubr.msk.bf16.mxu0 %vm356_vm1, %v7573_v13  ;;  %v3910_v60 = vrot.slane %v3908_v47, 5  ;;  %6923 = vmatprep.mubr.msk.bf16.mxu1 %vm356_vm1, %v6128_v27  ;;  %v3888_v13 = vrot.slane %v3887_v63, 4  ;;  %v3916_v41 = vrot.slane %v3914_v61, 5  ;;  %v3920_v12 = vrot.slane %v3918_v17, 4  ;;  %v6469_v63 = vld [vmem:[%s7983_s28 + $0x30] sm:$0xf] }
  0xba   : > { %v3926_v19 = vrot.slane %v3924_v44, 5  ;;  %v3898_v24 = vrot.slane %v3897_v59, 4  ;;  %v1489_v53 = vrot.slane %v8581_v29, 5  ;;  %v1492_v5 = vrot.slane %v8587_v0, 5  ;;  %v8904_v44 = vld [vmem:[%s7983_s28 + $0x34] sm:$0xf] }
  0xbb   : > { %v3911_v28 = vor.u32 %v3910_v60, %v3907_v36  ;;  %v3893_v32 = vsel %vm8026_vm4, %v3888_v13, %v3892_v46  ;;  %v3921_v56 = vor.u32 %v3920_v12, %v3916_v41  ;;  %v6114_v47 = vrot.slane %v1361_v31, 9  ;;  %v8911_v60 = vld [vmem:[%s7983_s28 + $0x38] sm:$0x1]  ;;  %v6472_v12 = vld [vmem:[%s7983_s28 + $0x3c] sm:$0xf] }
  0xbc   : > { %v1496_v27 = vrot.slane %v8596_v20, 5  ;;  %v3903_v61 = vsel %vm8026_vm4, %v3898_v24, %v3902_v62  ;;  %v8901_v29 = vsel %vm8161_vm7, %v6113_v43, %v1489_v53  ;;  %v1491_v0 = vrot.slane %v1489_v53, 4  ;;  %v8929_v53 = vld [vmem:[%s7983_s28 + $0x40] sm:$0xf] }
  0xbd   : > { %v3912_v17 = vrot.slane %v3911_v28, 4  ;;  %v6516_v59 = vcombine.low %v3893_v32, %v3903_v61  ;;  %v3922_v46 = vrot.slane %v3921_v56, 4  ;;  %v1499_v31 = vrot.slane %v8601_v34, 5  ;;  %v8943_v32 = vld [vmem:[%s7983_s28 + $0x44] sm:$0x1] }
  0xbe   : > { %v8908_v36 = vsel %vm8161_vm7, %v6114_v47, %v1496_v27  ;;  %v1498_v20 = vrot.slane %v1496_v27, 4  ;;  %v8918_v43 = vsel %vm8161_vm7, %v1491_v0, %v1492_v5  ;;  %v3929_v13 = vshrl.u32 %v6469_v63, 16  ;;  %v1362_v0 = vld [vmem:[%s7983_s28 + $0x90] sm:$0xe] }
  0xbf   : > { %v3917_v62 = vsel %vm8026_vm4, %v3912_v17, %v3916_v41  ;;  %v3927_v24 = vsel %vm8026_vm4, %v3922_v46, %v3926_v19  ;;  %v3932_v28 = vshll.u32 %v6469_v63, 16  ;;  %v3938_v41 = vshll.u32 %v8904_v44, 16 }
  0xc0   : > { %7092 = vmatmul.mubr.msk.bf16.gmra.mrb[24].mxu0 %vm356_vm1, %v7574_v58  ;;  %v6134_v58 = vcombine.low %v8901_v29, %v8918_v43  ;;  %6924 = vmatmul.mubr.msk.bf16.gmra.mrb[8].mxu1 %vm356_vm1, %v6129_v4  ;;  %v8935_v34 = vcombine.low %v3917_v62, %v3927_v24  ;;  %v8939_v5 = vsel %vm8161_vm7, %v1498_v20, %v1499_v31  ;;  %v3931_v19 = vrot.slane %v3929_v13, 4 }
  0xc1   : > { %7095 = vmatprep.mubr.msk.bf16.mxu0 %vm356_vm1, %v7576_v39  ;;  %v3942_v39 = vshrl.u32 %v8904_v44, 16  ;;  %6927 = vmatprep.mubr.msk.bf16.mxu1 %vm356_vm1, %v6130_v26  ;;  %v3934_v4 = vrot.slane %v3932_v28, 5  ;;  %v3940_v56 = vrot.slane %v3938_v41, 5  ;;  %v3948_v47 = vshll.u32 %v8911_v60, 16  ;;  %v1363_v26 = vld [vmem:[%s7983_s28 + $0x9c] sm:$0xe] }
  0xc2   : > { %v3953_v63 = vshrl.u32 %v6472_v12, 16  ;;  %v3956_v61 = vshll.u32 %v6472_v12, 16  ;;  %v3962_v17 = vshll.u32 %v8929_v53, 16  ;;  %v3966_v51 = vshrl.u32 %v8929_v53, 16 }
  0xc3   : > { %v3944_v27 = vrot.slane %v3942_v39, 4  ;;  %v3935_v46 = vor.u32 %v3934_v4, %v3931_v19  ;;  %v3950_v20 = vrot.slane %v3948_v47, 5  ;;  %v3972_v42 = vshll.u32 %v8943_v32, 16 }
  0xc4   : > { %v3955_v31 = vrot.slane %v3953_v63, 4  ;;  %v3958_v13 = vrot.slane %v3956_v61, 5  ;;  %v3964_v24 = vrot.slane %v3962_v17, 5  ;;  %v3968_v41 = vrot.slane %v3966_v51, 4 }
  0xc5   : > { %v3945_v62 = vor.u32 %v3944_v27, %v3940_v56  ;;  %v3936_v28 = vrot.slane %v3935_v46, 4  ;;  %v3974_v39 = vrot.slane %v3972_v42, 5  ;;  %v2025_v12 = vsel %vm405_vm0, %v8868_v6, 0  ;;  %v6475_v6 = vld [vmem:[%s7983_s28 + $0x48] sm:$0xf] }
  0xc6   : > { %v3959_v4 = vor.u32 %v3958_v13, %v3955_v31  ;;  %6952 = vmatpush3.bf16.msra.mxu1 %v2025_v12  ;;  %v6115_v47 = vrot.slane %v1362_v0, 9  ;;  %v1503_v22 = vrot.slane %v8624_v16, 5  ;;  %v3969_v63 = vor.u32 %v3968_v41, %v3964_v24  ;;  %v8984_v0 = vld [vmem:[%s7983_s28 + $0x4c] sm:$0xf]  ;;  %v9014_v31 = vld [vmem:[%s7983_s28 + $0x5c] sm:$0x1] }
  0xc7   : > { %v3946_v19 = vrot.slane %v3945_v62, 4  ;;  %v3941_v27 = vsel %vm8026_vm4, %v3936_v28, %v3940_v56  ;;  %v1506_v61 = vrot.slane %v8633_v3, 5  ;;  %v6116_v17 = vrot.slane %v1363_v26, 9 }
  0xc8   : > { %7096 = vmatmul.mubr.msk.bf16.gmra.mrb[28].mxu0 %vm356_vm1, %v7577_v45  ;;  %v8970_v45 = vld [vmem:[%s10223_s2 + $0x50] sm:$0xff]   ;;  %6928 = vmatmul.mubr.msk.bf16.gmra.mrb[12].mxu1 %vm356_vm1, %v6131_v8  ;;  %v3960_v3 = vrot.slane %v3959_v4, 4  ;;  %v1505_v56 = vrot.slane %v1503_v22, 4  ;;  %v3970_v21 = vrot.slane %v3969_v63, 4  ;;  %v1510_v8 = vrot.slane %v8641_v33, 5 }
  0xc9   : > { %7105 = vmatprep.mubr.msk.bf16.mxu0 %vm356_vm1, %v6516_v59  ;;  %7175 = vmatprep.subr.bf16.mxu1 %v8970_v45  ;;  %v3951_v16 = vsel %vm8026_vm4, %v3946_v19, %v3950_v20  ;;  %v8981_v59 = vsel %vm8161_vm7, %v6115_v47, %v1503_v22  ;;  %v1513_v46 = vrot.slane %v8645_v50, 5  ;;  %v8993_v20 = vld [vmem:[%s7983_s28 + $0x50] sm:$0x1]  ;;  %v3977_v42 = vshrl.u32 %v6475_v6, 16 }
  0xca   : > { %6931 = vmatprep.mubr.msk.bf16.mxu1 %vm356_vm1, %v6132_v9  ;;  %v6518_v7 = vcombine.low %v3941_v27, %v3951_v16  ;;  %v3965_v51 = vsel %vm8026_vm4, %v3960_v3, %v3964_v24  ;;  %v8999_v22 = vsel %vm8161_vm7, %v1505_v56, %v1506_v61  ;;  %v3980_v57 = vshll.u32 %v6475_v6, 16  ;;  %v9003_v9 = vld [vmem:[%s7983_s28 + $0x58] sm:$0xf]  ;;  %v1364_v6 = vld [vmem:[%s7983_s28 + $0xa8] sm:$0xe] }
  0xcb   : > { %v3975_v26 = vsel %vm8026_vm4, %v3970_v21, %v3974_v39  ;;  %v6136_v33 = vcombine.low %v8981_v59, %v8999_v22  ;;  %v9011_v50 = vsel %vm8161_vm7, %v6116_v17, %v1510_v8  ;;  %v1512_v62 = vrot.slane %v1510_v8, 4  ;;  %v7580_v39 = vld [vmem:[%s10223_s2 + $0xa8] sm:$0xff]   ;;  %v9113_v59 = vld [vmem:[%s7983_s28 + $0x7c] sm:$0xf] }
  0xcc   : > { %v6519_v13 = vcombine.low %v3965_v51, %v3975_v26  ;;  %v3979_v24 = vrot.slane %v3977_v42, 4  ;;  %v3982_v28 = vrot.slane %v3980_v57, 5  ;;  %v3986_v41 = vshll.u32 %v8984_v0, 16 }
  0xcd   : > { %v9022_v12 = vsel %vm8161_vm7, %v1512_v62, %v1513_v46  ;;  %v3990_v19 = vshrl.u32 %v8984_v0, 16  ;;  %v3996_v4 = vshll.u32 %v8993_v20, 16  ;;  %v4001_v47 = vshrl.u32 %v6478_v2, 16  ;;  %v6481_v62 = vld [vmem:[%s7983_s28 + $0x60] sm:$0xf] }
  0xce   : > { %v6137_v27 = vcombine.low %v9011_v50, %v9022_v12  ;;  %v3983_v63 = vor.u32 %v3982_v28, %v3979_v24  ;;  %v3988_v61 = vrot.slane %v3986_v41, 5  ;;  %v4004_v17 = vshll.u32 %v6478_v2, 16  ;;  %v9055_v28 = vld [vmem:[%s7983_s28 + $0x64] sm:$0xf]  ;;  %v9139_v12 = vld [vmem:[%s7983_s28 + $0x8c] sm:$0x1] }
  0xcf   : > { %v3992_v16 = vrot.slane %v3990_v19, 4  ;;  %v3998_v3 = vrot.slane %v3996_v4, 5  ;;  %v4003_v56 = vrot.slane %v4001_v47, 4  ;;  %v4010_v21 = vshll.u32 %v9003_v9, 16 }
  0xd0   : > { %7106 = vmatmul.mubr.msk.bf16.vlgmr.msra.gmra.mrb[0].mxu0 %vm356_vm1, %v8935_v34  ;;  %6932 = vmatmul.mubr.msk.bf16.gmra.mrb[16].mxu1 %vm356_vm1, %v6133_v52  ;;  %v3984_v34 = vrot.slane %v3983_v63, 4  ;;  %v4006_v8 = vrot.slane %v4004_v17, 5  ;;  %v4014_v46 = vshrl.u32 %v9003_v9, 16  ;;  %v6117_v18 = vrot.slane %v1364_v6, 9  ;;  %v1365_v52 = vld [vmem:[%s7983_s28 + $0xb4] sm:$0xe] }
  0xd1   : > { %7138 = vmatpush3.bf16.msra.mxu0 %v8757_v1  ;;  %7109 = vmatprep.mubr.msk.bf16.mxu0 %vm356_vm1, %v6518_v7  ;;  %v4020_v1 = vshll.u32 %v9014_v31, 16  ;;  %v3993_v7 = vor.u32 %v3992_v16, %v3988_v61  ;;  %v4012_v51 = vrot.slane %v4010_v21, 5  ;;  %v1517_v23 = vrot.slane %v8662_v37, 5  ;;  %v9058_v37 = vld [vmem:[%s7983_s28 + $0x68] sm:$0x1] }
  0xd2   : > { %7139 = vmatprep.subr.bf16.mxu0 %v7580_v39  ;;  %6935 = vmatprep.mubr.msk.bf16.mxu1 %vm356_vm1, %v6134_v58  ;;  %v3989_v42 = vsel %vm8026_vm4, %v3984_v34, %v3988_v61  ;;  %v4007_v57 = vor.u32 %v4006_v8, %v4003_v56  ;;  %v4016_v2 = vrot.slane %v4014_v46, 4  ;;  %v1520_v58 = vrot.slane %v8665_v38, 5  ;;  %v6484_v63 = vld [vmem:[%s7983_s28 + $0x6c] sm:$0xf] }
  0xd3   : > { %v4022_v26 = vrot.slane %v4020_v1, 5  ;;  %v3994_v24 = vrot.slane %v3993_v7, 4  ;;  %v9051_v29 = vsel %vm8161_vm7, %v6117_v18, %v1517_v23  ;;  %v1519_v43 = vrot.slane %v1517_v23, 4  ;;  %v9072_v6 = vld [vmem:[%s10223_s2 + $0xb0] ss:$0 sps:$4 sm:$0x33]  }
  0xd4   : > { %v4008_v41 = vrot.slane %v4007_v57, 4  ;;  %v4017_v19 = vor.u32 %v4016_v2, %v4012_v51  ;;  %v6118_v4 = vrot.slane %v1365_v52, 9  ;;  %v1524_v47 = vrot.slane %v8673_v48, 5  ;;  %v9096_v18 = vld [vmem:[%s7983_s28 + $0x70] sm:$0xf] }
  0xd5   : > { %7140 = vmatpush3.bf16.msra.mxu0 %v7580_v39  ;;  %v3999_v61 = vsel %vm8026_vm4, %v3994_v24, %v3998_v3  ;;  %v9066_v17 = vsel %vm8161_vm7, %v1519_v43, %v1520_v58  ;;  %v1527_v38 = vrot.slane %v8686_v14, 5  ;;  %v4025_v39 = vshrl.u32 %v6481_v62, 16  ;;  %v9107_v52 = vld [vmem:[%s7983_s28 + $0x74] sm:$0x1]  ;;  %v6487_v57 = vld [vmem:[%s7983_s28 + $0x78] sm:$0xf] }
  0xd6   : > { %v6520_v48 = vcombine.low %v3989_v42, %v3999_v61  ;;  %v4013_v16 = vsel %vm8026_vm4, %v4008_v41, %v4012_v51  ;;  %v4018_v3 = vrot.slane %v4017_v19, 4  ;;  %v6138_v56 = vcombine.low %v9051_v29, %v9066_v17  ;;  %7478 = vmatprep.subr.msk.bf16.mxu0 %vm405_vm0, %v9072_v6  ;;  %v9117_v58 = vld [vmem:[%s7983_s28 + $0x80] sm:$0x1] }
  0xd7   : > { %v9081_v14 = vsel %vm8161_vm7, %v6118_v4, %v1524_v47  ;;  %v1526_v21 = vrot.slane %v1524_v47, 4  ;;  %v4027_v34 = vrot.slane %v4025_v39, 4  ;;  %v4028_v8 = vshll.u32 %v6481_v62, 16 }
  0xd8   : > { %7110 = vmatmul.mubr.msk.bf16.gmra.mrb[4].mxu0 %vm356_vm1, %v6519_v13  ;;  %v10256_v13 = vcombine.low %v8908_v36, %v8939_v5  ;;  %v4023_v46 = vsel %vm8026_vm4, %v4018_v3, %v4022_v26  ;;  %v4034_v1 = vshll.u32 %v9055_v28, 16  ;;  %v4038_v7 = vshrl.u32 %v9055_v28, 16 }
  0xd9   : > { %7113 = vmatprep.mubr.msk.bf16.mxu0 %vm356_vm1, %v6520_v48  ;;  %v4044_v51 = vshll.u32 %v9058_v37, 16  ;;  %v6521_v36 = vcombine.low %v4013_v16, %v4023_v46  ;;  %v9104_v5 = vsel %vm8161_vm7, %v1526_v21, %v1527_v38  ;;  %v4030_v23 = vrot.slane %v4028_v8, 5  ;;  %v6490_v46 = vld [vmem:[%s7983_s28 + $0x84] sm:$0xf] }
  0xda   : > { %6936 = vmatmul.mubr.msk.bf16.gmra.mrb[20].mxu1 %vm356_vm1, %v10256_v13  ;;  %v4049_v42 = vshrl.u32 %v6484_v63, 16  ;;  %v6139_v2 = vcombine.low %v9081_v14, %v9104_v5  ;;  %v4036_v26 = vrot.slane %v4034_v1, 5  ;;  %v4040_v62 = vrot.slane %v4038_v7, 4 }
  0xdb   : > { %6939 = vmatprep.mubr.msk.bf16.mxu1 %vm356_vm1, %v6136_v33  ;;  %v4046_v24 = vrot.slane %v4044_v51, 5  ;;  %v4031_v22 = vor.u32 %v4030_v23, %v4027_v34  ;;  %v4052_v29 = vshll.u32 %v6484_v63, 16  ;;  %v4058_v43 = vshll.u32 %v9096_v18, 16  ;;  %v9135_v23 = vld [vmem:[%s7983_s28 + $0x88] sm:$0xf] }
  0xdc   : > { %v4051_v33 = vrot.slane %v4049_v42, 4  ;;  %v4041_v41 = vor.u32 %v4040_v62, %v4036_v26  ;;  %v4062_v19 = vshrl.u32 %v9096_v18, 16  ;;  %v4068_v4 = vshll.u32 %v9107_v52, 16 }
  0xdd   : > { %v4073_v47 = vshrl.u32 %v6487_v57, 16  ;;  %v4032_v61 = vrot.slane %v4031_v22, 4  ;;  %v4054_v17 = vrot.slane %v4052_v29, 5  ;;  %v4060_v38 = vrot.slane %v4058_v43, 5  ;;  %v9143_v29 = vld [vmem:[%s7983_s28 + $0x94] sm:$0xf] }
  0xde   : > { %v4076_v39 = vshll.u32 %v6487_v57, 16  ;;  %v4042_v48 = vrot.slane %v4041_v41, 4  ;;  %v4064_v63 = vrot.slane %v4062_v19, 4  ;;  %v4070_v16 = vrot.slane %v4068_v4, 5  ;;  %v7581_v43 = vld [vmem:[%s7983_s28 + $0xc] sm:$0xff]  }
  0xdf   : > { %v4075_v3 = vrot.slane %v4073_v47, 4  ;;  %v4037_v21 = vsel %vm8026_vm4, %v4032_v61, %v4036_v26  ;;  %v4055_v34 = vor.u32 %v4054_v17, %v4051_v33  ;;  %v4082_v13 = vshll.u32 %v9113_v59, 16 }
  0xe0   : > { %7114 = vmatmul.mubr.msk.bf16.gmra.mrb[8].mxu0 %vm356_vm1, %v6521_v36  ;;  %v4078_v8 = vrot.slane %v4076_v39, 5  ;;  %v4047_v1 = vsel %vm8026_vm4, %v4042_v48, %v4046_v24  ;;  %v4065_v7 = vor.u32 %v4064_v63, %v4060_v38  ;;  %v4086_v51 = vshrl.u32 %v9113_v59, 16 }
  0xe1   : > { %v4092_v36 = vshll.u32 %v9117_v58, 16  ;;  %v6522_v42 = vcombine.low %v4037_v21, %v4047_v1  ;;  %v4056_v57 = vrot.slane %v4055_v34, 4  ;;  %v4084_v50 = vrot.slane %v4082_v13, 5  ;;  %v6496_v34 = vld [vmem:[%s7983_s28 + $0x9c] sm:$0xf] }
  0xe2   : > { %6940 = vmatmul.mubr.msk.bf16.gmra.mrb[24].mxu1 %vm356_vm1, %v6137_v27  ;;  %v4079_v26 = vor.u32 %v4078_v8, %v4075_v3  ;;  %v6493_v27 = vld [vmem:[%s7983_s28 + $0x90] sm:$0xf]  ;;  %v4066_v62 = vrot.slane %v4065_v7, 4  ;;  %v4088_v24 = vrot.slane %v4086_v51, 4  ;;  %v4097_v33 = vshrl.u32 %v6490_v46, 16 }
  0xe3   : > { %6943 = vmatprep.mubr.msk.bf16.mxu1 %vm356_vm1, %v6138_v56  ;;  %v4094_v22 = vrot.slane %v4092_v36, 5  ;;  %7117 = vmatprep.mubr.msk.bf16.mxu0 %vm356_vm1, %v6522_v42  ;;  %v4061_v56 = vsel %vm8026_vm4, %v4056_v57, %v4060_v38  ;;  %v4100_v19 = vshll.u32 %v6490_v46, 16  ;;  %v4106_v4 = vshll.u32 %v9135_v23, 16  ;;  %v9156_v38 = vld [vmem:[%s7983_s28 + $0x98] sm:$0x1] }
  0xe4   : > { %v4080_v41 = vrot.slane %v4079_v26, 4  ;;  %v4071_v47 = vsel %vm8026_vm4, %v4066_v62, %v4070_v16  ;;  %v4089_v61 = vor.u32 %v4088_v24, %v4084_v50  ;;  %v4099_v17 = vrot.slane %v4097_v33, 4  ;;  %v9161_v7 = vld [vmem:[%s7983_s28 + $0xa0] sm:$0xf] }
  0xe5   : > { %v4110_v39 = vshrl.u32 %v9135_v23, 16  ;;  %v6523_v48 = vcombine.low %v4061_v56, %v4071_v47  ;;  %v4102_v3 = vrot.slane %v4100_v19, 5  ;;  %v4108_v21 = vrot.slane %v4106_v4, 5  ;;  %v7582_v19 = vld [vmem:[%s7983_s28 + $0x18] sm:$0xff]  }
  0xe6   : > { %v4085_v63 = vsel %vm8026_vm4, %v4080_v41, %v4084_v50  ;;  %v4090_v8 = vrot.slane %v4089_v61, 4  ;;  %v4116_v46 = vshll.u32 %v9139_v12, 16  ;;  %v4121_v1 = vshrl.u32 %v6493_v27, 16  ;;  %v9174_v41 = vld [vmem:[%s7983_s28 + $0xa4] sm:$0x1] }
  0xe7   : > { %v4112_v13 = vrot.slane %v4110_v39, 4  ;;  %v4103_v16 = vor.u32 %v4102_v3, %v4099_v17  ;;  %v4124_v51 = vshll.u32 %v6493_v27, 16  ;;  %v4130_v36 = vshll.u32 %v9143_v29, 16  ;;  %v9184_v39 = vld [vmem:[%s7983_s28 + $0xac] sm:$0xf] }
  0xe8   : > { %7118 = vmatmul.mubr.msk.bf16.gmra.mrb[12].mxu0 %vm356_vm1, %v6523_v48  ;;  %v4134_v42 = vshrl.u32 %v9143_v29, 16  ;;  %v4095_v57 = vsel %vm8026_vm4, %v4090_v8, %v4094_v22  ;;  %v4118_v50 = vrot.slane %v4116_v46, 5  ;;  %v4123_v62 = vrot.slane %v4121_v1, 4  ;;  %v6499_v22 = vld [vmem:[%s7983_s28 + $0xa8] sm:$0xf] }
  0xe9   : > { %v4113_v26 = vor.u32 %v4112_v13, %v4108_v21  ;;  %v6524_v24 = vcombine.low %v4085_v63, %v4095_v57  ;;  %v4104_v27 = vrot.slane %v4103_v16, 4  ;;  %v4126_v33 = vrot.slane %v4124_v51, 5  ;;  %v7583_v46 = vld [vmem:[%s7983_s28 + $0x24] sm:$0xff]  }
  0xea   : > { %6944 = vmatmul.mubr.msk.bf16.gmra.mrb[28].mxu1 %vm356_vm1, %v6139_v2  ;;  %v4132_v56 = vrot.slane %v4130_v36, 5  ;;  %v4136_v5 = vrot.slane %v4134_v42, 4  ;;  %v4140_v2 = vshll.u32 %v9156_v38, 16  ;;  %v4145_v4 = vshrl.u32 %v6496_v34, 16 }
  0xeb   : > { %6953 = vmatprep.mubr.msk.bf16.mxu1 %vm356_vm1, %v7581_v43  ;;  %v4114_v14 = vrot.slane %v4113_v26, 4  ;;  %7121 = vmatprep.mubr.msk.bf16.mxu0 %vm356_vm1, %v6524_v24  ;;  %v4109_v43 = vsel %vm8026_vm4, %v4104_v27, %v4108_v21  ;;  %v4127_v47 = vor.u32 %v4126_v33, %v4123_v62  ;;  %v4148_v61 = vshll.u32 %v6496_v34, 16  ;;  %v9190_v21 = vld [vmem:[%s7983_s28 + $0xb0] sm:$0x1]  ;;  %v6502_v26 = vld [vmem:[%s7983_s28 + $0xb4] sm:$0xf] }
  0xec   : > { %v4154_v17 = vshll.u32 %v9161_v7, 16  ;;  %v4137_v63 = vor.u32 %v4136_v5, %v4132_v56  ;;  %v4142_v3 = vrot.slane %v4140_v2, 5  ;;  %v4147_v8 = vrot.slane %v4145_v4, 4  ;;  %v9201_v33 = vld [vmem:[%s7983_s28 + $0xb8] sm:$0xf] }
  0xed   : > { %v4119_v48 = vsel %vm8026_vm4, %v4114_v14, %v4118_v50  ;;  %v4128_v1 = vrot.slane %v4127_v47, 4  ;;  %v4150_v16 = vrot.slane %v4148_v61, 5  ;;  %v4158_v36 = vshrl.u32 %v9161_v7, 16 }
  0xee   : > { %v6525_v13 = vcombine.low %v4109_v43, %v4119_v48  ;;  %v4156_v51 = vrot.slane %v4154_v17, 5  ;;  %v4138_v34 = vrot.slane %v4137_v63, 4  ;;  %v4164_v42 = vshll.u32 %v9174_v41, 16  ;;  %v7794_v48 = vld [vmem:[%s10223_s2 + $0x58] sm:$0xff]  }
  0xef   : > { %v4871_v57 = vsel %vm405_vm0, %v9072_v6, 0  ;;  %v4133_v50 = vsel %vm8026_vm4, %v4128_v1, %v4132_v56  ;;  %v4151_v62 = vor.u32 %v4150_v16, %v4147_v8  ;;  %v4169_v24 = vshrl.u32 %v6499_v22, 16  ;;  %v7585_v16 = vld [vmem:[%s7983_s28 + $0x3c] sm:$0xff]  }
  0xf0   : > { %7122 = vmatmul.mubr.msk.bf16.gmra.mrb[16].mxu0 %vm356_vm1, %v6525_v13  ;;  %v4172_v27 = vshll.u32 %v6499_v22, 16  ;;  %v4143_v14 = vsel %vm8026_vm4, %v4138_v34, %v4142_v3  ;;  %v4160_v5 = vrot.slane %v4158_v36, 4  ;;  %v4166_v2 = vrot.slane %v4164_v42, 5  ;;  %v9218_v3 = vld [vmem:[%s7983_s28 + $0xbc] sm:$0x1] }
  0xf1   : > { %7142 = vmatpush3.bf16.msra.mxu0 %v4871_v57  ;;  %v4178_v6 = vshll.u32 %v9184_v39, 16  ;;  %v6526_v56 = vcombine.low %v4133_v50, %v4143_v14  ;;  %v4152_v4 = vrot.slane %v4151_v62, 4  ;;  %v4171_v22 = vrot.slane %v4169_v24, 4  ;;  %v6505_v24 = vld [vmem:[%s7983_s28 + $0xc0] sm:$0xf] }
  0xf2   : > { %6954 = vmatmul.mubr.msk.bf16.vlgmr.msra.gmra.mrb[0].mxu1 %vm356_vm1, %v7582_v19  ;;  %v4174_v43 = vrot.slane %v4172_v27, 5  ;;  %v4161_v19 = vor.u32 %v4160_v5, %v4156_v51  ;;  %v4182_v61 = vshrl.u32 %v9184_v39, 16  ;;  %v4188_v17 = vshll.u32 %v9190_v21, 16 }
  0xf3   : > { %7178 = vmatpush3.bf16.msra.mxu1 %v8970_v45  ;;  %6957 = vmatprep.mubr.msk.bf16.mxu1 %vm356_vm1, %v7583_v46  ;;  %v4180_v47 = vrot.slane %v4178_v6, 5  ;;  %v4157_v45 = vsel %vm8026_vm4, %v4152_v4, %v4156_v51  ;;  %v4193_v8 = vshrl.u32 %v6502_v26, 16  ;;  %v4196_v13 = vshll.u32 %v6502_v26, 16  ;;  %v7584_v46 = vld [vmem:[%s7983_s28 + $0x30] sm:$0xff]   ;;  %v9229_v6 = vld [vmem:[%s7983_s28 + $0xc4] sm:$0xf] }
  0xf4   : > { %7176 = vmatprep.subr.bf16.mxu1 %v7794_v48  ;;  %7125 = vmatprep.mubr.msk.bf16.mxu0 %vm356_vm1, %v6526_v56  ;;  %v4175_v63 = vor.u32 %v4174_v43, %v4171_v22  ;;  %v4162_v1 = vrot.slane %v4161_v19, 4  ;;  %v4184_v34 = vrot.slane %v4182_v61, 4  ;;  %v4190_v36 = vrot.slane %v4188_v17, 5  ;;  %v7795_v56 = vld [vmem:[%s10223_s2 + $0x60] ss:$0 sps:$4 sm:$0x33]  }
  0xf5   : > { %v4202_v42 = vshll.u32 %v9201_v33, 16  ;;  %v4195_v50 = vrot.slane %v4193_v8, 4  ;;  %v4198_v62 = vrot.slane %v4196_v13, 5  ;;  %v4206_v51 = vshrl.u32 %v9201_v33, 16 }
  0xf6   : > { %v4176_v57 = vrot.slane %v4175_v63, 4  ;;  %v4167_v27 = vsel %vm8026_vm4, %v4162_v1, %v4166_v2  ;;  %v4185_v26 = vor.u32 %v4184_v34, %v4180_v47  ;;  %v4212_v5 = vshll.u32 %v9218_v3, 16  ;;  %v9238_v2 = vld [vmem:[%s7983_s28 + $0xc8] sm:$0x1]  ;;  %v6508_v1 = vld [vmem:[%s7983_s28 + $0xcc] sm:$0xf] }
  0xf7   : > { %7179 = vmatpush3.bf16.msra.mxu1 %v7794_v48  ;;  %v4204_v14 = vrot.slane %v4202_v42, 5  ;;  %v6527_v4 = vcombine.low %v4157_v45, %v4167_v27  ;;  %v4199_v43 = vor.u32 %v4198_v62, %v4195_v50  ;;  %v4208_v19 = vrot.slane %v4206_v51, 4  ;;  %v9250_v50 = vld [vmem:[%s7983_s28 + $0xd0] sm:$0xf]  ;;  %v7587_v27 = vld [vmem:[%s7983_s28 + $0x48] sm:$0xff]  }
  0xf8   : > { %7474 = vmatprep.subr.msk.bf16.mxu1 %vm405_vm0, %v7795_v56  ;;  %v4181_v22 = vsel %vm8026_vm4, %v4176_v57, %v4180_v47  ;;  %v4186_v61 = vrot.slane %v4185_v26, 4  ;;  %v4214_v17 = vrot.slane %v4212_v5, 5  ;;  %v4217_v48 = vshrl.u32 %v6505_v24, 16  ;;  %v9257_v56 = vld [vmem:[%s7983_s28 + $0xd4] sm:$0x1] }
  0xf9   : > { %v4220_v63 = vshll.u32 %v6505_v24, 16  ;;  %7126 = vmatmul.mubr.msk.bf16.gmra.mrb[20].mxu0 %vm356_vm1, %v6527_v4  ;;  %v4200_v45 = vrot.slane %v4199_v43, 4  ;;  %v4209_v8 = vor.u32 %v4208_v19, %v4204_v14  ;;  %v4226_v47 = vshll.u32 %v9229_v6, 16 }
  0xfa   : > { %6958 = vmatmul.mubr.msk.bf16.gmra.mrb[4].mxu1 %vm356_vm1, %v7584_v46  ;;  %v4230_v13 = vshrl.u32 %v9229_v6, 16  ;;  %v4191_v46 = vsel %vm8026_vm4, %v4186_v61, %v4190_v36  ;;  %v4219_v34 = vrot.slane %v4217_v48, 4  ;;  %v4236_v57 = vshll.u32 %v9238_v2, 16  ;;  %v6551_v61 = vld [vmem:[%s7983_s28 + $0x18] sm:$0xe] }
  0xfb   : > { %6961 = vmatprep.mubr.msk.bf16.mxu1 %vm356_vm1, %v7585_v16  ;;  %v4222_v42 = vrot.slane %v4220_v63, 5  ;;  %7180 = vmatpush3.bf16.msra.mxu1 %v7994_v11  ;;  %v6528_v16 = vcombine.low %v4181_v22, %v4191_v46  ;;  %v4205_v62 = vsel %vm8026_vm4, %v4200_v45, %v4204_v14  ;;  %v4210_v51 = vrot.slane %v4209_v8, 4  ;;  %v7588_v22 = vld [vmem:[%s7983_s28 + $0x54] sm:$0xff]  }
  0xfc   : > { %v4228_v24 = vrot.slane %v4226_v47, 5  ;;  %v4232_v5 = vrot.slane %v4230_v13, 4  ;;  %v4238_v36 = vrot.slane %v4236_v57, 5  ;;  %v4241_v4 = vshrl.u32 %v6508_v1, 16 }
  0xfd   : > { %v4223_v26 = vor.u32 %v4222_v42, %v4219_v34  ;;  %7129 = vmatprep.mubr.msk.bf16.mxu0 %vm356_vm1, %v6528_v16  ;;  %v4215_v11 = vsel %vm8026_vm4, %v4210_v51, %v4214_v17  ;;  %v4244_v43 = vshll.u32 %v6508_v1, 16  ;;  %v4250_v19 = vshll.u32 %v9250_v50, 16  ;;  %v6552_v42 = vld [vmem:[%s7983_s28 + $0x24] sm:$0xe] }
  0xfe   : > { %v4254_v14 = vshrl.u32 %v9250_v50, 16  ;;  %v6529_v48 = vcombine.low %v4205_v62, %v4215_v11  ;;  %v4233_v45 = vor.u32 %v4232_v5, %v4228_v24  ;;  %v4243_v8 = vrot.slane %v4241_v4, 4  ;;  %v6553_v4 = vld [vmem:[%s7983_s28 + $0x30] sm:$0xe] }
  0xff   : > { %v4224_v63 = vrot.slane %v4223_v26, 4  ;;  %v4246_v47 = vrot.slane %v4244_v43, 5  ;;  %v4252_v13 = vrot.slane %v4250_v19, 5  ;;  %v4260_v34 = vshll.u32 %v9257_v56, 16 }
 0x100   : > { %v4256_v46 = vrot.slane %v4254_v14, 4  ;;  %v4234_v1 = vrot.slane %v4233_v45, 4  ;;  %v6567_v57 = vrot.slane %v6551_v61, 9  ;;  %v4643_v16 = vrot.slane %v8819_v35, 5  ;;  %v7589_v61 = vld [vmem:[%s7983_s28 + $0x60] sm:$0xff]  }
 0x101   : > { %v4229_v17 = vsel %vm8026_vm4, %v4224_v63, %v4228_v24  ;;  %7130 = vmatmul.mubr.msk.bf16.gmra.mrb[24].mxu0 %vm356_vm1, %v6529_v48  ;;  %v4247_v62 = vor.u32 %v4246_v47, %v4243_v8  ;;  %v4262_v26 = vrot.slane %v4260_v34, 5  ;;  %v4646_v5 = vrot.slane %v8835_v10, 5  ;;  %v6554_v45 = vld [vmem:[%s7983_s28 + $0x3c] sm:$0xe] }
 0x102   : > { %6962 = vmatmul.mubr.msk.bf16.gmra.mrb[8].mxu1 %vm356_vm1, %v7587_v27  ;;  %v4257_v51 = vor.u32 %v4256_v46, %v4252_v13  ;;  %v4239_v27 = vsel %vm8026_vm4, %v4234_v1, %v4238_v36  ;;  %v4644_v24 = vsel %vm8161_vm7, %v6567_v57, %v4643_v16  ;;  %v4645_v35 = vrot.slane %v4643_v16, 4 }
 0x103   : > { %6965 = vmatprep.mubr.msk.bf16.mxu1 %vm356_vm1, %v7588_v22  ;;  %v6568_v11 = vrot.slane %v6552_v42, 9  ;;  %v6530_v43 = vcombine.low %v4229_v17, %v4239_v27  ;;  %v4248_v19 = vrot.slane %v4247_v62, 4  ;;  %v4650_v14 = vrot.slane %v8846_v55, 5  ;;  %v7590_v55 = vld [vmem:[%s7983_s28 + $0x6c] sm:$0xff]  }
 0x104   : > { %v4258_v22 = vrot.slane %v4257_v51, 4  ;;  %v4647_v10 = vsel %vm8161_vm7, %v4645_v35, %v4646_v5  ;;  %v4653_v48 = vrot.slane %v8849_v54, 5  ;;  %v6569_v63 = vrot.slane %v6553_v4, 9  ;;  %v6555_v54 = vld [vmem:[%s7983_s28 + $0x48] sm:$0xe] }
 0x105   : > { %v4657_v36 = vrot.slane %v8904_v44, 5  ;;  %7133 = vmatprep.mubr.msk.bf16.mxu0 %vm356_vm1, %v6530_v43  ;;  %v4253_v8 = vsel %vm8026_vm4, %v4248_v19, %v4252_v13  ;;  %v6588_v46 = vcombine.low %v4644_v24, %v4647_v10  ;;  %v4651_v34 = vsel %vm8161_vm7, %v6568_v11, %v4650_v14  ;;  %v6556_v51 = vld [vmem:[%s7983_s28 + $0x54] sm:$0xe]  ;;  %v6557_v24 = vld [vmem:[%s7983_s28 + $0x60] sm:$0xe] }
 0x106   : > { %v4263_v47 = vsel %vm8026_vm4, %v4258_v22, %v4262_v26  ;;  %v4652_v17 = vrot.slane %v4650_v14, 4  ;;  %v4660_v57 = vrot.slane %v8911_v60, 5  ;;  %v6570_v13 = vrot.slane %v6554_v45, 9  ;;  %v6558_v19 = vld [vmem:[%s7983_s28 + $0x6c] sm:$0xe] }
 0x107   : > { %v6531_v42 = vcombine.low %v4253_v8, %v4263_v47  ;;  %v9298_v44 = vsel %vm8161_vm7, %v6569_v63, %v4657_v36  ;;  %v4659_v1 = vrot.slane %v4657_v36, 4  ;;  %v4664_v16 = vrot.slane %v8929_v53, 5  ;;  %v6255_v47 = vld [vmem:[%s7983_s28 + $0x6c] sm:$0xf] }
 0x108   : > { %v4667_v62 = vrot.slane %v8943_v32, 5  ;;  %v4654_v26 = vsel %vm8161_vm7, %v4652_v17, %v4653_v48  ;;  %v6571_v5 = vrot.slane %v6555_v54, 9  ;;  %v4671_v4 = vrot.slane %v8984_v0, 5  ;;  %v7591_v48 = vld [vmem:[%s7983_s28 + $0x78] sm:$0xff]  }
 0x109   : > { %v4674_v27 = vrot.slane %v8993_v20, 5  ;;  %v10257_v60 = vor.u32 %v8347_v49, %v8345_v30  ;;  %7134 = vmatmul.mubr.msk.bf16.gmra.mrb[28].mxu0 %vm356_vm1, %v6531_v42  ;;  %v6589_v53 = vcombine.low %v4651_v34, %v4654_v26  ;;  %v4661_v32 = vsel %vm8161_vm7, %v4659_v1, %v4660_v57  ;;  %v7796_v57 = vld [vmem:[%s7983_s28 + $0x70] sm:$0xf] }
 0x10a   : > { %6966 = vmatmul.mubr.msk.bf16.gmra.mrb[12].mxu1 %vm356_vm1, %v7589_v61  ;;  %v4666_v11 = vrot.slane %v4664_v16, 4  ;;  %7143 = vmatprep.mubr.msk.bf16.mxu0 %vm356_vm1, %v6588_v46  ;;  %v9322_v0 = vsel %vm8161_vm7, %v6570_v13, %v4664_v16  ;;  %v9326_v49 = vsel %vm8161_vm7, %v6571_v5, %v4671_v4  ;;  %v4673_v20 = vrot.slane %v4671_v4, 4  ;;  %v6258_v16 = vld [vmem:[%s7983_s28 + $0x78] sm:$0xf] }
 0x10b   : > { %v9313_v35 = vrot.slane %v10257_v60, 4  ;;  %6969 = vmatprep.mubr.msk.bf16.mxu1 %vm356_vm1, %v7590_v55  ;;  %v6572_v43 = vrot.slane %v6556_v51, 9  ;;  %v6590_v22 = vcombine.low %v9298_v44, %v4661_v32  ;;  %v4678_v14 = vrot.slane %v9003_v9, 5  ;;  %v7592_v9 = vld [vmem:[%s7983_s28 + $0x84] sm:$0xff]   ;;  %v7797_v32 = vld [vmem:[%s7983_s28 + $0x74] sm:$0x1] }
 0x10c   : > { %v4681_v61 = vrot.slane %v9014_v31, 5  ;;  %v6573_v10 = vrot.slane %v6557_v24, 9  ;;  %v9335_v63 = vsel %vm8161_vm7, %v4666_v11, %v4667_v62  ;;  %v9339_v36 = vsel %vm8161_vm7, %v4673_v20, %v4674_v27  ;;  %v6559_v24 = vld [vmem:[%s7983_s28 + $0x78] sm:$0xe] }
 0x10d   : > { %v4685_v45 = vrot.slane %v9055_v28, 5  ;;  %v4688_v8 = vrot.slane %v9058_v37, 5  ;;  %v6592_v31 = vcombine.low %v9326_v49, %v9339_v36  ;;  %v9349_v55 = vsel %vm8161_vm7, %v6572_v43, %v4678_v14 }
 0x10e   : > { %v4680_v46 = vrot.slane %v4678_v14, 4  ;;  %v6574_v34 = vrot.slane %v6558_v19, 9  ;;  %v4692_v28 = vrot.slane %v9096_v18, 5  ;;  %v4695_v37 = vrot.slane %v9107_v52, 5 }
 0x10f   : > { %v9353_v54 = vsel %vm8161_vm7, %v6573_v10, %v4685_v45  ;;  %v4687_v42 = vrot.slane %v4685_v45, 4  ;;  %v2461_v44 = vshrl.u32 %v6255_v47, 16  ;;  %v2464_v1 = vshll.u32 %v6255_v47, 16  ;;  %v7593_v10 = vld [vmem:[%s7983_s28 + $0x90] sm:$0xff]   ;;  %v7594_v45 = vld [vmem:[%s7983_s28 + $0x9c] sm:$0xff]  }
 0x110   : > { %v9359_v17 = vsel %vm8161_vm7, %v4680_v46, %v4681_v61  ;;  %v2470_v13 = vshll.u32 %v7796_v57, 16  ;;  %v9372_v52 = vsel %vm8161_vm7, %v6574_v34, %v4692_v28  ;;  %v4694_v51 = vrot.slane %v4692_v28, 4 }
 0x111   : > { %v6593_v62 = vcombine.low %v9349_v55, %v9359_v17  ;;  %v9368_v18 = vsel %vm8161_vm7, %v4687_v42, %v4688_v8  ;;  %7144 = vmatmul.mubr.msk.bf16.vlgmr.msra.gmra.mrb[0].mxu0 %vm356_vm1, %v6589_v53  ;;  %v2463_v5 = vrot.slane %v2461_v44, 4  ;;  %v2466_v4 = vrot.slane %v2464_v1, 5 }
 0x112   : > { %6970 = vmatmul.mubr.msk.bf16.gmra.mrb[16].mxu1 %vm356_vm1, %v7591_v48  ;;  %v6594_v26 = vcombine.low %v9353_v54, %v9368_v18  ;;  %v9378_v27 = vrot.slane %v2470_v13, 5  ;;  %7147 = vmatprep.mubr.msk.bf16.mxu0 %vm356_vm1, %v6590_v22  ;;  %v9384_v60 = vsel %vm8161_vm7, %v4694_v51, %v4695_v37  ;;  %v2474_v53 = vshrl.u32 %v7796_v57, 16  ;;  %v6560_v22 = vld [vmem:[%s7983_s28 + $0x84] sm:$0xe] }
 0x113   : > { %6973 = vmatprep.mubr.msk.bf16.mxu1 %vm356_vm1, %v7592_v9  ;;  %v2480_v11 = vshll.u32 %v7797_v32, 16  ;;  %v2485_v20 = vshrl.u32 %v6258_v16, 16  ;;  %v6595_v43 = vcombine.low %v9372_v52, %v9384_v60  ;;  %v2467_v19 = vor.u32 %v2466_v4, %v2463_v5  ;;  %v6261_v37 = vld [vmem:[%s7983_s28 + $0x84] sm:$0xf]  ;;  %v7798_v4 = vld [vmem:[%s7983_s28 + $0x88] sm:$0xf] }
 0x114   : > { %v2488_v14 = vshll.u32 %v6258_v16, 16  ;;  %v2507_v61 = vsel %vm8026_vm4, %v9313_v35, %v8358_v15  ;;  %v6591_v48 = vcombine.low %v9322_v0, %v9335_v63  ;;  %v2476_v8 = vrot.slane %v2474_v53, 4  ;;  %v7597_v54 = vld [vmem:[%s7983_s28 + $0xc0] sm:$0xff]  }
 0x115   : > { %v2487_v47 = vrot.slane %v2485_v20, 4  ;;  %v6575_v9 = vrot.slane %v6559_v24, 9  ;;  %v9398_v46 = vrot.slane %v2467_v19, 4  ;;  %v4699_v42 = vrot.slane %v9113_v59, 5  ;;  %v6264_v19 = vld [vmem:[%s7983_s28 + $0x90] sm:$0xf] }
 0x116   : > { %v2490_v34 = vrot.slane %v2488_v14, 5  ;;  %v4702_v28 = vrot.slane %v9117_v58, 5  ;;  %v2477_v44 = vor.u32 %v2476_v8, %v9378_v27  ;;  %v6576_v15 = vrot.slane %v6560_v22, 9  ;;  %v7595_v14 = vld [vmem:[%s7983_s28 + $0xa8] sm:$0xff]  }
 0x117   : > { %v4706_v35 = vrot.slane %v9135_v23, 5  ;;  %v4709_v0 = vrot.slane %v9139_v12, 5  ;;  %v9406_v63 = vrot.slane %v2480_v11, 5  ;;  %v9410_v57 = vsel %vm8161_vm7, %v6575_v9, %v4699_v42 }
 0x118   : > { %v2491_v1 = vor.u32 %v2490_v34, %v2487_v47  ;;  %v4701_v13 = vrot.slane %v4699_v42, 4  ;;  %v9413_v59 = vrot.slane %v2477_v44, 4  ;;  %v2509_v16 = vshrl.u32 %v6261_v37, 16  ;;  %v7596_v47 = vld [vmem:[%s7983_s28 + $0xb4] sm:$0xff]  }
 0x119   : > { %v9417_v58 = vsel %vm8161_vm7, %v6576_v15, %v4706_v35  ;;  %v4708_v23 = vrot.slane %v4706_v35, 4  ;;  %7148 = vmatmul.mubr.msk.bf16.gmra.mrb[4].mxu0 %vm356_vm1, %v6591_v48  ;;  %v2512_v5 = vshll.u32 %v6261_v37, 16  ;;  %v2518_v24 = vshll.u32 %v7798_v4, 16  ;;  %v7800_v42 = vld [vmem:[%s7983_s28 + $0x94] sm:$0xf] }
 0x11a   : > { %6974 = vmatmul.mubr.msk.bf16.gmra.mrb[20].mxu1 %vm356_vm1, %v7593_v10  ;;  %v2492_v12 = vrot.slane %v2491_v1, 4  ;;  %v9423_v51 = vsel %vm8161_vm7, %v4701_v13, %v4702_v28  ;;  %7151 = vmatprep.mubr.msk.bf16.mxu0 %vm356_vm1, %v6592_v31  ;;  %v2473_v53 = vsel %vm8026_vm4, %v9398_v46, %v9378_v27  ;;  %v2511_v20 = vrot.slane %v2509_v16, 4  ;;  %v7801_v35 = vld [vmem:[%s7983_s28 + $0x98] sm:$0x1] }
 0x11b   : > { %6977 = vmatprep.mubr.msk.bf16.mxu1 %vm356_vm1, %v7594_v45  ;;  %v6596_v32 = vcombine.low %v9410_v57, %v9423_v51  ;;  %v9438_v11 = vsel %vm8161_vm7, %v4708_v23, %v4709_v0  ;;  %v2483_v49 = vsel %vm8026_vm4, %v9413_v59, %v9406_v63  ;;  %v2514_v27 = vrot.slane %v2512_v5, 5  ;;  %v7799_v45 = vld [vmem:[%s7983_s28 + $0x8c] sm:$0x1]  ;;  %v6562_v59 = vld [vmem:[%s7983_s28 + $0x9c] sm:$0xe] }
 0x11c   : > { %v2497_v36 = vsel %vm8026_vm4, %v2492_v12, %v8345_v30  ;;  %v6597_v31 = vcombine.low %v9417_v58, %v9438_v11  ;;  %v2520_v10 = vrot.slane %v2518_v24, 5  ;;  %v2522_v48 = vshrl.u32 %v7798_v4, 16  ;;  %v6561_v30 = vld [vmem:[%s7983_s28 + $0x90] sm:$0xe] }
 0x11d   : > { %v9451_v22 = vcombine.low %v2497_v36, %v2507_v61  ;;  %v2528_v8 = vshll.u32 %v7799_v45, 16  ;;  %v2515_v9 = vor.u32 %v2514_v27, %v2511_v20  ;;  %v2533_v46 = vshrl.u32 %v6264_v19, 16  ;;  %v6267_v27 = vld [vmem:[%s7983_s28 + $0x9c] sm:$0xf] }
 0x11e   : > { %v2536_v34 = vshll.u32 %v6264_v19, 16  ;;  %v2542_v28 = vshll.u32 %v7800_v42, 16  ;;  %v2524_v37 = vrot.slane %v2522_v48, 4  ;;  %v2546_v15 = vshrl.u32 %v7800_v42, 16 }
 0x11f   : > { %v2530_v44 = vrot.slane %v2528_v8, 5  ;;  %v2552_v0 = vshll.u32 %v7801_v35, 16  ;;  %v2516_v63 = vrot.slane %v2515_v9, 4  ;;  %v2535_v61 = vrot.slane %v2533_v46, 4  ;;  %v6270_v9 = vld [vmem:[%s7983_s28 + $0xa8] sm:$0xf] }
 0x120   : > { %v2538_v1 = vrot.slane %v2536_v34, 5  ;;  %v9458_v13 = vrot.slane %v2542_v28, 5  ;;  %v2525_v23 = vor.u32 %v2524_v37, %v2520_v10  ;;  %v2548_v16 = vrot.slane %v2546_v15, 4  ;;  %v7802_v37 = vld [vmem:[%s7983_s28 + $0xa0] sm:$0xf] }
 0x121   : > { %v9462_v12 = vrot.slane %v2552_v0, 5  ;;  %v6577_v5 = vrot.slane %v6561_v30, 9  ;;  %7152 = vmatmul.mubr.msk.bf16.gmra.mrb[8].mxu0 %vm356_vm1, %v6593_v62  ;;  %v2521_v4 = vsel %vm8026_vm4, %v2516_v63, %v2520_v10  ;;  %v4713_v20 = vrot.slane %v9143_v29, 5  ;;  %v7803_v0 = vld [vmem:[%s7983_s28 + $0xa4] sm:$0x1] }
 0x122   : > { %6978 = vmatmul.mubr.msk.bf16.gmra.mrb[24].mxu1 %vm356_vm1, %v7595_v14  ;;  %v2539_v24 = vor.u32 %v2538_v1, %v2535_v61  ;;  %v4716_v19 = vrot.slane %v9156_v38, 5  ;;  %7155 = vmatprep.mubr.msk.bf16.mxu0 %vm356_vm1, %v6594_v26  ;;  %v2526_v36 = vrot.slane %v2525_v23, 4  ;;  %v2549_v55 = vor.u32 %v2548_v16, %v9458_v13 }
 0x123   : > { %6981 = vmatprep.mubr.msk.bf16.mxu1 %vm356_vm1, %v7596_v47  ;;  %v6578_v17 = vrot.slane %v6562_v59, 9  ;;  %v4720_v62 = vrot.slane %v9161_v7, 5  ;;  %v9484_v29 = vsel %vm8161_vm7, %v6577_v5, %v4713_v20  ;;  %v4715_v38 = vrot.slane %v4713_v20, 4  ;;  %v7804_v59 = vld [vmem:[%s7983_s28 + $0xac] sm:$0xf] }
 0x124   : > { %v9480_v14 = vrot.slane %v2539_v24, 4  ;;  %v4723_v10 = vrot.slane %v9174_v41, 5  ;;  %v2531_v18 = vsel %vm8026_vm4, %v2526_v36, %v2530_v44  ;;  %v9490_v26 = vrot.slane %v2549_v55, 4 }
 0x125   : > { %v9494_v7 = vsel %vm8161_vm7, %v6578_v17, %v4720_v62  ;;  %v4722_v48 = vrot.slane %v4720_v62, 4  ;;  %v6292_v45 = vcombine.low %v2473_v53, %v2483_v49  ;;  %v6294_v8 = vcombine.low %v2521_v4, %v2531_v18 }
 0x126   : > { %v9498_v47 = vsel %vm8161_vm7, %v4715_v38, %v4716_v19  ;;  %v2557_v41 = vshrl.u32 %v6267_v27, 16  ;;  %v2545_v46 = vsel %vm8026_vm4, %v9480_v14, %v9458_v13  ;;  %v2560_v53 = vshll.u32 %v6267_v27, 16  ;;  %v7805_v19 = vld [vmem:[%s7983_s28 + $0xb0] sm:$0x1]  ;;  %v6564_v14 = vld [vmem:[%s7983_s28 + $0xb4] sm:$0xe] }
 0x127   : > { %v6598_v34 = vcombine.low %v9484_v29, %v9498_v47  ;;  %v9509_v42 = vsel %vm8161_vm7, %v4722_v48, %v4723_v10  ;;  %v2555_v49 = vsel %vm8026_vm4, %v9490_v26, %v9462_v12  ;;  %v2566_v44 = vshll.u32 %v7802_v37, 16  ;;  %v6563_v12 = vld [vmem:[%s7983_s28 + $0xa8] sm:$0xe]  ;;  %v6273_v38 = vld [vmem:[%s7983_s28 + $0xb4] sm:$0xf] }
 0x128   : > { %v6599_v28 = vcombine.low %v9494_v7, %v9509_v42  ;;  %v2559_v30 = vrot.slane %v2557_v41, 4  ;;  %v2562_v15 = vrot.slane %v2560_v53, 5  ;;  %v2570_v35 = vshrl.u32 %v7802_v37, 16 }
 0x129   : > { %v2576_v63 = vshll.u32 %v7803_v0, 16  ;;  %v2581_v61 = vshrl.u32 %v6270_v9, 16  ;;  %7156 = vmatmul.mubr.msk.bf16.gmra.mrb[12].mxu0 %vm356_vm1, %v6595_v43  ;;  %v2568_v1 = vrot.slane %v2566_v44, 5  ;;  %v2584_v13 = vshll.u32 %v6270_v9, 16  ;;  %v6276_v44 = vld [vmem:[%s7983_s28 + $0xc0] sm:$0xf] }
 0x12a   : > { %6982 = vmatmul.mubr.msk.bf16.gmra.mrb[28].mxu1 %vm356_vm1, %v7597_v54  ;;  %v2590_v23 = vshll.u32 %v7804_v59, 16  ;;  %v2594_v16 = vshrl.u32 %v7804_v59, 16  ;;  %7159 = vmatprep.mubr.msk.bf16.mxu0 %vm356_vm1, %v6596_v32  ;;  %v2563_v5 = vor.u32 %v2562_v15, %v2559_v30  ;;  %v2572_v4 = vrot.slane %v2570_v35, 4 }
 0x12b   : > { %7007 = vmatprep.mubr.msk.bf16.mxu1 %vm356_vm1, %v6292_v45  ;;  %v2578_v52 = vrot.slane %v2576_v63, 5  ;;  %v2583_v60 = vrot.slane %v2581_v61, 4  ;;  %v2586_v43 = vrot.slane %v2584_v13, 5  ;;  %v2600_v36 = vshll.u32 %v7805_v19, 16 }
 0x12c   : > { %v9531_v24 = vrot.slane %v2590_v23, 5  ;;  %v2596_v20 = vrot.slane %v2594_v16, 4  ;;  %v2564_v55 = vrot.slane %v2563_v5, 4  ;;  %v2573_v17 = vor.u32 %v2572_v4, %v2568_v1  ;;  %v7808_v16 = vld [vmem:[%s7983_s28 + $0xc4] sm:$0xf] }
 0x12d   : > { %v6579_v62 = vrot.slane %v6563_v12, 9  ;;  %v4727_v27 = vrot.slane %v9184_v39, 5  ;;  %v2587_v57 = vor.u32 %v2586_v43, %v2583_v60  ;;  %v9537_v32 = vrot.slane %v2600_v36, 5  ;;  %v6565_v5 = vld [vmem:[%s7983_s28 + $0xc0] sm:$0xe] }
 0x12e   : > { %v2597_v51 = vor.u32 %v2596_v20, %v9531_v24  ;;  %v4730_v29 = vrot.slane %v9190_v21, 5  ;;  %v2569_v10 = vsel %vm8026_vm4, %v2564_v55, %v2568_v1  ;;  %v2574_v54 = vrot.slane %v2573_v17, 4  ;;  %v7809_v36 = vld [vmem:[%s7983_s28 + $0xc8] sm:$0x1] }
 0x12f   : > { %v4728_v18 = vsel %vm8161_vm7, %v6579_v62, %v4727_v27  ;;  %v4729_v26 = vrot.slane %v4727_v27, 4  ;;  %v2588_v48 = vrot.slane %v2587_v57, 4  ;;  %v6580_v45 = vrot.slane %v6564_v14, 9  ;;  %v6566_v57 = vld [vmem:[%s7983_s28 + $0xcc] sm:$0xe] }
 0x130   : > { %v2598_v39 = vrot.slane %v2597_v51, 4  ;;  %v4734_v47 = vrot.slane %v9201_v33, 5  ;;  %v2579_v21 = vsel %vm8026_vm4, %v2574_v54, %v2578_v52  ;;  %v4737_v9 = vrot.slane %v9218_v3, 5 }
 0x131   : > { %v4731_v41 = vsel %vm8161_vm7, %v4729_v26, %v4730_v29  ;;  %v2605_v53 = vshrl.u32 %v6273_v38, 16  ;;  %7160 = vmatmul.mubr.msk.bf16.gmra.mrb[16].mxu0 %vm356_vm1, %v6597_v31  ;;  %v6295_v33 = vcombine.low %v2545_v46, %v2555_v49  ;;  %v2593_v30 = vsel %vm8026_vm4, %v2588_v48, %v9531_v24  ;;  %v7806_v49 = vld [vmem:[%s7983_s28 + $0xb8] sm:$0xf] }
 0x132   : > { %7008 = vmatmul.mubr.msk.bf16.vlgmr.msra.gmra.mrb[16].mxu1 %vm356_vm1, %v9451_v22  ;;  %v6296_v22 = vcombine.low %v2569_v10, %v2579_v21  ;;  %v4736_v37 = vrot.slane %v4734_v47, 4  ;;  %7163 = vmatprep.mubr.msk.bf16.mxu0 %vm356_vm1, %v6598_v34  ;;  %v2603_v3 = vsel %vm8026_vm4, %v2598_v39, %v9537_v32  ;;  %v6600_v58 = vcombine.low %v4728_v18, %v4731_v41  ;;  %v7807_v34 = vld [vmem:[%s7983_s28 + $0xbc] sm:$0x1]  ;;  %s7876_s28 = smov [#allocation2]  }
 0x133   : > { %7011 = vmatprep.mubr.msk.bf16.mxu1 %vm356_vm1, %v6294_v8  ;;  %v4735_v11 = vsel %vm8161_vm7, %v6580_v45, %v4734_v47  ;;  %v2607_v31 = vrot.slane %v2605_v53, 4  ;;  %v2608_v46 = vshll.u32 %v6273_v38, 16  ;;  %v2614_v15 = vshll.u32 %v7806_v49, 16  ;;  %s7814_s30 = sshll.u32 %s7876_s28, 4  ;;  %s7815_s30 = int_to_ptr.vmem [resolvable:$false] %s7814_s30 }
 0x134   : > { %v4738_v8 = vsel %vm8161_vm7, %v4736_v37, %v4737_v9  ;;  %v2618_v35 = vshrl.u32 %v7806_v49, 16  ;;  %v2624_v63 = vshll.u32 %v7807_v34, 16  ;;  %v2629_v61 = vshrl.u32 %v6276_v44, 16  ;;  %p7817_p0 = scmp.lt.s32.totalorder %s10172_s20, %s7815_s30 }
 0x135   : > { %v6601_v0 = vcombine.low %v4735_v11, %v4738_v8  ;;  %v2632_v1 = vshll.u32 %v6276_v44, 16  ;;  %v2610_v13 = vrot.slane %v2608_v46, 5  ;;  %v2616_v59 = vrot.slane %v2614_v15, 5 }
 0x136   : > { %v2620_v23 = vrot.slane %v2618_v35, 4  ;;  %v2638_v12 = vshll.u32 %v7808_v16, 16  ;;  %v2626_v4 = vrot.slane %v2624_v63, 5  ;;  %v2631_v52 = vrot.slane %v2629_v61, 4  ;;  %v9612_v63 = vld [vmem:[%s10224_s3] ss:$0 sm:$0xff] }
 0x137   : > { %v2634_v60 = vrot.slane %v2632_v1, 5  ;;  %v2642_v43 = vshrl.u32 %v7808_v16, 16  ;;  %v2611_v24 = vor.u32 %v2610_v13, %v2607_v31  ;;  %v2648_v55 = vshll.u32 %v7809_v36, 16 }
 0x138   : > { %v2621_v20 = vor.u32 %v2620_v23, %v2616_v59  ;;  %v2640_v19 = vrot.slane %v2638_v12, 5  ;;  %v6581_v27 = vrot.slane %v6565_v5, 9  ;;  %v4741_v14 = vrot.slane %v9229_v6, 5 }
 0x139   : > { %v2635_v17 = vor.u32 %v2634_v60, %v2631_v52  ;;  %v2644_v62 = vrot.slane %v2642_v43, 4  ;;  %7164 = vmatmul.mubr.msk.bf16.gmra.mrb[20].mxu0 %vm356_vm1, %v6599_v28  ;;  %v2612_v51 = vrot.slane %v2611_v24, 4  ;;  %v4744_v29 = vrot.slane %v9238_v2, 5 }
 0x13a   : > { %7012 = vmatmul.mubr.msk.bf16.gmra.mrb[20].mxu1 %vm356_vm1, %v6295_v33  ;;  %v2622_v32 = vrot.slane %v2621_v20, 4  ;;  %v6297_v38 = vcombine.low %v2593_v30, %v2603_v3  ;;  %7167 = vmatprep.mubr.msk.bf16.mxu0 %vm356_vm1, %v6600_v58  ;;  %v4742_v54 = vsel %vm8161_vm7, %v6581_v27, %v4741_v14  ;;  %v4743_v6 = vrot.slane %v4741_v14, 4 }
 0x13b   : > { %7015 = vmatprep.mubr.msk.bf16.mxu1 %vm356_vm1, %v6296_v22  ;;  %v2645_v10 = vor.u32 %v2644_v62, %v2640_v19  ;;  %v2617_v18 = vsel %vm8026_vm4, %v2612_v51, %v2616_v59  ;;  %v6582_v42 = vrot.slane %v6566_v57, 9  ;;  %v4748_v28 = vrot.slane %v9250_v50, 5 }
 0x13c   : > { %v2627_v7 = vsel %vm8026_vm4, %v2622_v32, %v2626_v4  ;;  %v2636_v48 = vrot.slane %v2635_v17, 4  ;;  %v2650_v2 = vrot.slane %v2648_v55, 5  ;;  %v4745_v39 = vsel %vm8161_vm7, %v4743_v6, %v4744_v29 }
 0x13d   : > { %v6298_v26 = vcombine.low %v2617_v18, %v2627_v7  ;;  %v2646_v45 = vrot.slane %v2645_v10, 4  ;;  %v4749_v47 = vsel %vm8161_vm7, %v6582_v42, %v4748_v28  ;;  %v4750_v21 = vrot.slane %v4748_v28, 4 }
 0x13e   : > { %v4751_v41 = vrot.slane %v9257_v56, 5  ;;  %v6602_v9 = vcombine.low %v4742_v54, %v4745_v39  ;;  %v2641_v33 = vsel %vm8026_vm4, %v2636_v48, %v2640_v19 }
 0x13f   : > { %v2651_v22 = vsel %vm8026_vm4, %v2646_v45, %v2650_v2 }
 0x140   : > { %v4752_v53 = vsel %vm8161_vm7, %v4750_v21, %v4751_v41  ;;  %v6299_v56 = vcombine.low %v2641_v33, %v2651_v22 }
 0x141   : > { %v6603_v50 = vcombine.low %v4749_v47, %v4752_v53  ;;  %7168 = vmatmul.mubr.msk.bf16.gmra.mrb[24].mxu0 %vm356_vm1, %v6601_v0 }
 0x142   : > { %7016 = vmatmul.mubr.msk.bf16.gmra.mrb[24].mxu1 %vm356_vm1, %v6297_v38  ;;  %7171 = vmatprep.mubr.msk.bf16.mxu0 %vm356_vm1, %v6602_v9 }
 0x143   : > { %7019 = vmatprep.mubr.msk.bf16.mxu1 %vm356_vm1, %v6298_v26 }
 0x149   : > { %7172 = vmatmul.mubr.msk.bf16.gmra.mrb[28].mxu0 %vm356_vm1, %v6603_v50 }
 0x14a   : > { %7020 = vmatmul.mubr.msk.bf16.gmra.mrb[28].mxu1 %vm356_vm1, %v6299_v56 }
 0x1c5   : > { %v6955_v25 = vpop.f32.mrb[0].mxu1 }
 0x1c6   : > { %v2061_v30 = vpop.f32.mrb[1].mxu1  ;;  %v7181_v61 = vadd.f32 %v6955_v25, %v9612_v63 }
 0x1c7   : > { %v6956_v37 = vpop.f32.mrb[2].mxu1  ;;  %v7183_v1 = vadd.f32 %v9612_v63, %v2061_v30 }
 0x1c8   : > { %v2064_v44 = vpop.f32.mrb[3].mxu1  ;;  %v7185_v59 = vadd.f32 %v6956_v37, %v9612_v63 }
 0x1c9   : > { %v7187_v12 = vadd.f32 %v9612_v63, %v2064_v44 }
 0x1cd   : > { %v6959_v3 = vpop.f32.mrb[4].mxu1 }
 0x1ce   : > { %v2077_v58 = vpop.f32.mrb[5].mxu1  ;;  %v7189_v24 = vadd.f32 %v6959_v3, %v9612_v63 }
 0x1cf   : > { %v6960_v11 = vpop.f32.mrb[6].mxu1  ;;  %v7191_v20 = vadd.f32 %v9612_v63, %v2077_v58 }
 0x1d0   : > { %v2080_v31 = vpop.f32.mrb[7].mxu1  ;;  %v7193_v36 = vadd.f32 %v6960_v11, %v9612_v63 }
 0x1d1   : > { %v7195_v62 = vadd.f32 %v9612_v63, %v2080_v31 }
 0x1d5   : > { %v6963_v8 = vpop.f32.mrb[8].mxu1 }
 0x1d6   : > { %v2093_v46 = vpop.f32.mrb[9].mxu1  ;;  %v7197_v29 = vadd.f32 %v6963_v8, %v9612_v63 }
 0x1d7   : > { %v6964_v49 = vpop.f32.mrb[10].mxu1  ;;  %v7199_v38 = vadd.f32 %v9612_v63, %v2093_v46 }
 0x1d8   : > { %v2096_v40 = vpop.f32.mrb[11].mxu1  ;;  %v7201_v54 = vadd.f32 %v6964_v49, %v9612_v63 }
 0x1d9   : > { %v7203_v7 = vadd.f32 %v9612_v63, %v2096_v40 }
 0x1dd   : > { %v6967_v15 = vpop.f32.mrb[12].mxu1 }
 0x1de   : > { %v2109_v35 = vpop.f32.mrb[13].mxu1  ;;  %v7205_v39 = vadd.f32 %v6967_v15, %v9612_v63 }
 0x1df   : > { %v6968_v0 = vpop.f32.mrb[14].mxu1  ;;  %v7207_v45 = vadd.f32 %v9612_v63, %v2109_v35 }
 0x1e0   : > { %v2112_v34 = vpop.f32.mrb[15].mxu1  ;;  %v7209_v21 = vadd.f32 %v6968_v0, %v9612_v63 }
 0x1e1   : > { %v7211_v53 = vadd.f32 %v9612_v63, %v2112_v34 }
 0x1e4   : > { %v7145_v13 = vpop.f32.mrb[0].mxu0 }
 0x1e5   : > { %v9617_v23 = vadd.f32 %v7181_v61, %v7145_v13  ;;  %v4907_v16 = vpop.f32.mrb[1].mxu0 }
 0x1e6   : > { %v9620_v5 = vadd.f32 %v7183_v1, %v4907_v16  ;;  %v7146_v4 = vpop.f32.mrb[2].mxu0 }
 0x1e7   : > { %v9622_v52 = vadd.f32 %v7185_v59, %v7146_v4  ;;  %v4910_v60 = vpop.f32.mrb[3].mxu0  ;;  %5294 = vrot.lane.b32.xlu1 %v9617_v23, %s7874_s5 }
 0x1e8   : > { %v9626_v43 = vadd.f32 %v7187_v12, %v4910_v60  ;;  %5290 = vrot.lane.b32.xlu0 %v9620_v5, %s7874_s5 }
 0x1eb   : > { %5296 = vrot.lane.b32.xlu1 %v9622_v52, %s7874_s5 }
 0x1ec   : > { %v7149_v19 = vpop.f32.mrb[4].mxu0  ;;  %5292 = vrot.lane.b32.xlu0 %v9626_v43, %s7874_s5 }
 0x1ed   : > { %v9637_v55 = vadd.f32 %v7189_v24, %v7149_v19  ;;  %v4923_v17 = vpop.f32.mrb[5].mxu0 }
 0x1ee   : > { %v9640_v27 = vadd.f32 %v7191_v20, %v4923_v17  ;;  %v7150_v14 = vpop.f32.mrb[6].mxu0 }
 0x1ef   : > { %v9642_v57 = vadd.f32 %v7193_v36, %v7150_v14  ;;  %v4926_v51 = vpop.f32.mrb[7].mxu0 }
 0x1f0   : > { %v9644_v32 = vadd.f32 %v7195_v62, %v4926_v51  ;;  %5302 = vrot.lane.b32.xlu0 %v9637_v55, %s7874_s5 }
 0x1f1   : > { %5304 = vrot.lane.b32.xlu1 %v9642_v57, %s7874_s5 }
 0x1f4   : > { %v7153_v10 = vpop.f32.mrb[8].mxu0  ;;  %5298 = vrot.lane.b32.xlu0 %v9640_v27, %s7874_s5 }
 0x1f5   : > { %v9655_v6 = vadd.f32 %v7197_v29, %v7153_v10  ;;  %v4939_v18 = vpop.f32.mrb[9].mxu0  ;;  %5300 = vrot.lane.b32.xlu1 %v9644_v32, %s7874_s5 }
 0x1f6   : > { %v9660_v42 = vadd.f32 %v7199_v38, %v4939_v18  ;;  %v7154_v28 = vpop.f32.mrb[10].mxu0 }
 0x1f7   : > { %v9662_v26 = vadd.f32 %v7201_v54, %v7154_v28  ;;  %v4942_v48 = vpop.f32.mrb[11].mxu0 }
 0x1f8   : > { %v9664_v2 = vadd.f32 %v7203_v7, %v4942_v48  ;;  %5310 = vrot.lane.b32.xlu0 %v9655_v6, %s7874_s5 }
 0x1f9   : > { %5312 = vrot.lane.b32.xlu1 %v9662_v26, %s7874_s5 }
 0x1fc   : > { %v7157_v47 = vpop.f32.mrb[12].mxu0  ;;  %5306 = vrot.lane.b32.xlu0 %v9660_v42, %s7874_s5 }
 0x1fd   : > { %v9675_v41 = vadd.f32 %v7205_v39, %v7157_v47  ;;  %v4955_v9 = vpop.f32.mrb[13].mxu0  ;;  %5308 = vrot.lane.b32.xlu1 %v9664_v2, %s7874_s5 }
 0x1fe   : > { %v9680_v50 = vadd.f32 %v7207_v45, %v4955_v9  ;;  %v7158_v33 = vpop.f32.mrb[14].mxu0 }
 0x1ff   : > { %v9682_v22 = vadd.f32 %v7209_v21, %v7158_v33  ;;  %v4958_v56 = vpop.f32.mrb[15].mxu0 }
 0x200   : > { %v9684_v25 = vadd.f32 %v7211_v53, %v4958_v56  ;;  %5318 = vrot.lane.b32.xlu0 %v9675_v41, %s7874_s5 }
 0x201   : > { %5320 = vrot.lane.b32.xlu1 %v9682_v22, %s7874_s5 }
 0x204   : > { %v7161_v3 = vpop.f32.mrb[16].mxu0  ;;  %5314 = vrot.lane.b32.xlu0 %v9680_v50, %s7874_s5 }
 0x205   : > { %v7009_v30 = vpop.f32.mrb[16].mxu1  ;;  %v4971_v31 = vpop.f32.mrb[17].mxu0  ;;  %5316 = vrot.lane.b32.xlu1 %v9684_v25, %s7874_s5 }
 0x206   : > { %v7213_v37 = vadd.f32 %v7009_v30, %v9612_v63  ;;  %v2870_v44 = vpop.f32.mrb[17].mxu1  ;;  %v7162_v40 = vpop.f32.mrb[18].mxu0 }
 0x207   : > { %v7215_v58 = vadd.f32 %v9612_v63, %v2870_v44  ;;  %v7010_v11 = vpop.f32.mrb[18].mxu1  ;;  %v4974_v0 = vpop.f32.mrb[19].mxu0 }
 0x208   : > { %v7217_v8 = vadd.f32 %v7010_v11, %v9612_v63  ;;  %v2873_v46 = vpop.f32.mrb[19].mxu1  ;;  %v9697_v49 = vadd.f32 %v7213_v37, %v7161_v3 }
 0x209   : > { %v7219_v15 = vadd.f32 %v9612_v63, %v2873_v46  ;;  %v9700_v35 = vadd.f32 %v7215_v58, %v4971_v31 }
 0x20a   : > { %v9702_v34 = vadd.f32 %v7217_v8, %v7162_v40  ;;  %5326 = vrot.lane.b32.xlu0 %v9697_v49, %s7874_s5 }
 0x20b   : > { %v9706_v61 = vadd.f32 %v7219_v15, %v4974_v0 }
 0x20c   : > { %5328 = vrot.lane.b32.xlu1 %v9702_v34, %s7874_s5  ;;  %v7165_v16 = vpop.f32.mrb[20].mxu0 }
 0x20d   : > { %v7013_v1 = vpop.f32.mrb[20].mxu1  ;;  %v4987_v60 = vpop.f32.mrb[21].mxu0 }
 0x20e   : > { %v7221_v13 = vadd.f32 %v7013_v1, %v9612_v63  ;;  %v2886_v59 = vpop.f32.mrb[21].mxu1  ;;  %5322 = vrot.lane.b32.xlu0 %v9700_v35, %s7874_s5  ;;  %v7166_v36 = vpop.f32.mrb[22].mxu0 }
 0x20f   : > { %v7223_v12 = vadd.f32 %v9612_v63, %v2886_v59  ;;  %v7014_v4 = vpop.f32.mrb[22].mxu1  ;;  %v4990_v14 = vpop.f32.mrb[23].mxu0 }
 0x210   : > { %v7225_v24 = vadd.f32 %v7014_v4, %v9612_v63  ;;  %v2889_v20 = vpop.f32.mrb[23].mxu1  ;;  %v9715_v19 = vadd.f32 %v7221_v13, %v7165_v16  ;;  %5324 = vrot.lane.b32.xlu1 %v9706_v61, %s7874_s5  ;;  %v6623_v4 = vmul.f32 -1.442695, %v9620_v5 }
 0x211   : > { %v7227_v17 = vadd.f32 %v9612_v63, %v2889_v20  ;;  %v9720_v62 = vadd.f32 %v7223_v12, %v4987_v60  ;;  %v6626_v60 = vmul.f32 -1.442695, %v9622_v52  ;;  %v6629_v20 = vmul.f32 -1.442695, %v9637_v55 }
 0x212   : > { %v9722_v51 = vadd.f32 %v7225_v24, %v7166_v36  ;;  %5334 = vrot.lane.b32.xlu0 %v9715_v19, %s7874_s5  ;;  %v6624_v24 = vmul.f32 -1.442695, %v9626_v43  ;;  %v6627_v36 = vmul.f32 -1.442695, %v9640_v27 }
 0x213   : > { %v9726_v29 = vadd.f32 %v7227_v17, %v4990_v14  ;;  %v6630_v17 = vmul.f32 -1.442695, %v9642_v57  ;;  %v6628_v14 = vmul.f32 -1.442695, %v9644_v32 }
 0x214   : > { %5336 = vrot.lane.b32.xlu1 %v9722_v51, %s7874_s5  ;;  %v7169_v18 = vpop.f32.mrb[24].mxu0 }
 0x215   : > { %v7017_v38 = vpop.f32.mrb[24].mxu1  ;;  %v5003_v48 = vpop.f32.mrb[25].mxu0 }
 0x216   : > { %v7229_v10 = vadd.f32 %v7017_v38, %v9612_v63  ;;  %v2902_v54 = vpop.f32.mrb[25].mxu1  ;;  %5330 = vrot.lane.b32.xlu0 %v9720_v62, %s7874_s5  ;;  %v7170_v21 = vpop.f32.mrb[26].mxu0 }
 0x217   : > { %v7231_v7 = vadd.f32 %v9612_v63, %v2902_v54  ;;  %v7018_v28 = vpop.f32.mrb[26].mxu1  ;;  %v5006_v33 = vpop.f32.mrb[27].mxu0  ;;  %v6633_v54 = vmul.f32 -1.442695, %v9655_v6 }
 0x218   : > { %v7233_v39 = vadd.f32 %v7018_v28, %v9612_v63  ;;  %v2905_v45 = vpop.f32.mrb[27].mxu1  ;;  %v9735_v47 = vadd.f32 %v7229_v10, %v7169_v18  ;;  %5332 = vrot.lane.b32.xlu1 %v9726_v29, %s7874_s5 }
 0x219   : > { %v7235_v9 = vadd.f32 %v9612_v63, %v2905_v45  ;;  %v9740_v53 = vadd.f32 %v7231_v7, %v5003_v48  ;;  %v6634_v48 = vmul.f32 -1.442695, %v9662_v26 }
 0x21a   : > { %v9742_v56 = vadd.f32 %v7233_v39, %v7170_v21  ;;  %5342 = vrot.lane.b32.xlu0 %v9735_v47, %s7874_s5 }
 0x21b   : > { %v9746_v30 = vadd.f32 %v7235_v9, %v5006_v33  ;;  %v6631_v9 = vmul.f32 -1.442695, %v9660_v42  ;;  %v6632_v33 = vmul.f32 -1.442695, %v9664_v2 }
 0x21c   : > { %5344 = vrot.lane.b32.xlu1 %v9742_v56, %s7874_s5  ;;  %v7173_v58 = vpop.f32.mrb[28].mxu0 }
 0x21d   : > { %v7021_v37 = vpop.f32.mrb[28].mxu1  ;;  %v5019_v8 = vpop.f32.mrb[29].mxu0 }
 0x21e   : > { %v7237_v44 = vadd.f32 %v7021_v37, %v9612_v63  ;;  %v2918_v3 = vpop.f32.mrb[29].mxu1  ;;  %5338 = vrot.lane.b32.xlu0 %v9740_v53, %s7874_s5  ;;  %v7174_v0 = vpop.f32.mrb[30].mxu0 }
 0x21f   : > { %v7239_v11 = vadd.f32 %v9612_v63, %v2918_v3  ;;  %v7022_v31 = vpop.f32.mrb[30].mxu1  ;;  %v5022_v59 = vpop.f32.mrb[31].mxu0 }
 0x220   : > { %v7241_v46 = vadd.f32 %v7022_v31, %v9612_v63  ;;  %v2921_v40 = vpop.f32.mrb[31].mxu1  ;;  %v9755_v15 = vadd.f32 %v7237_v44, %v7173_v58  ;;  %5340 = vrot.lane.b32.xlu1 %v9746_v30, %s7874_s5 }
 0x221   : > { %v7243_v1 = vadd.f32 %v9612_v63, %v2921_v40  ;;  %v9760_v13 = vadd.f32 %v7239_v11, %v5019_v8  ;;  %v6625_v63 = vmul.f32 -1.442695, %v9617_v23  ;;  %v6637_v11 = vmul.f32 -1.442695, %v9675_v41 }
 0x222   : > { %v9762_v16 = vadd.f32 %v7241_v46, %v7174_v0  ;;  %5350 = vrot.lane.b32.xlu0 %v9755_v15, %s7874_s5  ;;  %v6638_v46 = vmul.f32 -1.442695, %v9682_v22 }
 0x223   : > { %v9766_v12 = vadd.f32 %v7243_v1, %v5022_v59  ;;  %7598 = vpow2.f32 %v6625_v63  ;;  %v6635_v1 = vmul.f32 -1.442695, %v9680_v50 }
 0x224   : > { %5352 = vrot.lane.b32.xlu1 %v9762_v16, %s7874_s5  ;;  %7600 = vpow2.f32 %v6623_v4  ;;  %v6636_v4 = vmul.f32 -1.442695, %v9684_v25 }
 0x225   : > { %7602 = vpow2.f32 %v6626_v60 }
 0x226   : > { %5346 = vrot.lane.b32.xlu0 %v9760_v13, %s7874_s5  ;;  %7604 = vpow2.f32 %v6624_v24 }
 0x227   : > { %7606 = vpow2.f32 %v6629_v20 }
 0x228   : > { %5348 = vrot.lane.b32.xlu1 %v9766_v12, %s7874_s5  ;;  %7608 = vpow2.f32 %v6627_v36 }
 0x229   : > { %7610 = vpow2.f32 %v6630_v17 }
 0x22a   : > { %7612 = vpow2.f32 %v6628_v14 }
 0x22b   : > { %7614 = vpow2.f32 %v6633_v54  ;;  %v6642_v54 = vmul.f32 -1.442695, %v9702_v34 }
 0x22d   : > { %v7599_v38 = vpop.eup %7598 }
 0x22e   : > { %v7601_v10 = vpop.eup %7600  ;;  %v5164_v7 = vadd.f32 1.0, %v7599_v38  ;;  %v6641_v38 = vmul.f32 -1.442695, %v9697_v49 }
 0x22f   : > { %v7603_v18 = vpop.eup %7602  ;;  %v5162_v28 = vadd.f32 1.0, %v7601_v10 }
 0x230   : > { %v7605_v39 = vpop.eup %7604  ;;  %v5165_v45 = vadd.f32 1.0, %v7603_v18  ;;  %7616 = vrcp.f32 %v5164_v7 }
 0x231   : > { %v7607_v21 = vpop.eup %7606  ;;  %7618 = vrcp.f32 %v5162_v28  ;;  %v5163_v44 = vadd.f32 1.0, %v7605_v39 }
 0x232   : > { %v7609_v37 = vpop.eup %7608  ;;  %7620 = vpow2.f32 %v6634_v48  ;;  %v5168_v3 = vadd.f32 1.0, %v7607_v21 }
 0x233   : > { %7622 = vrcp.f32 %v5165_v45  ;;  %v7611_v58 = vpop.eup %7610  ;;  %v5166_v31 = vadd.f32 1.0, %v7609_v37 }
 0x234   : > { %7624 = vpow2.f32 %v6631_v9  ;;  %v7613_v8 = vpop.eup %7612  ;;  %v5169_v40 = vadd.f32 1.0, %v7611_v58 }
 0x235   : > { %7626 = vpow2.f32 %v6632_v33  ;;  %v7615_v0 = vpop.eup %7614  ;;  %v5167_v59 = vadd.f32 1.0, %v7613_v8  ;;  %v6639_v33 = vmul.f32 -1.442695, %v9700_v35 }
 0x236   : > { %7628 = vrcp.f32 %v5163_v44  ;;  %v5172_v20 = vadd.f32 1.0, %v7615_v0  ;;  %v6645_v0 = vmul.f32 -1.442695, %v9715_v19 }
 0x237   : > { %7630 = vrcp.f32 %v5168_v3 }
 0x238   : > { %7632 = vpow2.f32 %v6637_v11 }
 0x239   : > { %7634 = vrcp.f32 %v5166_v31  ;;  %v6640_v31 = vmul.f32 -1.442695, %v9706_v61 }
 0x23a   : > { %v9789_v63 = vpop.eup %7616  ;;  %7636 = vpow2.f32 %v6638_v46 }
 0x23b   : > { %v9792_v24 = vpop.eup %7618  ;;  %7638 = vrcp.f32 %v5169_v40 }
 0x23c   : > { %v7621_v14 = vpop.eup %7620  ;;  %7640 = vpow2.f32 %v6635_v1 }
 0x23d   : > { %v9796_v10 = vpop.eup %7622  ;;  %7642 = vrcp.f32 %v5167_v59  ;;  %v5173_v48 = vadd.f32 1.0, %v7621_v14 }
 0x23e   : > { %v7625_v18 = vpop.eup %7624  ;;  %7644 = vpow2.f32 %v6636_v4 }
 0x23f   : > { %v7627_v28 = vpop.eup %7626  ;;  %7646 = vrcp.f32 %v5172_v20  ;;  %v5170_v44 = vadd.f32 1.0, %v7625_v18 }
 0x240   : > { %v9802_v9 = vpop.eup %7628  ;;  %7648 = vpow2.f32 %v6641_v38  ;;  %v5171_v58 = vadd.f32 1.0, %v7627_v28 }
 0x241   : > { %v9805_v37 = vpop.eup %7630  ;;  %7650 = vpow2.f32 %v6642_v54 }
 0x242   : > { %v7633_v3 = vpop.eup %7632  ;;  %7652 = vrcp.f32 %v5173_v48 }
 0x243   : > { %v9809_v11 = vpop.eup %7634  ;;  %7654 = vpow2.f32 %v6639_v33  ;;  %v6644_v33 = vmul.f32 -1.442695, %v9726_v29 }
 0x244   : > { %v7637_v40 = vpop.eup %7636  ;;  %7656 = vrcp.f32 %v5170_v44 }
 0x245   : > { %v9815_v4 = vpop.eup %7638  ;;  %7658 = vrcp.f32 %v5171_v58  ;;  %v5177_v14 = vadd.f32 1.0, %v7637_v40 }
 0x246   : > { %v7641_v20 = vpop.eup %7640  ;;  %7660 = vpow2.f32 %v6640_v31 }
 0x247   : > { %7662 = vpow2.f32 %v6645_v0 }
 0x259   : > { %v5295_v60 = vpop.permute.xlu1 %5294 }
 0x25a   : > { %v5388_v36 = vmul.f32 %v9789_v63, %v5295_v60  ;;  %v5291_v17 = vpop.permute.xlu0 %5290  ;;  %v5176_v60 = vadd.f32 1.0, %v7633_v3 }
 0x25b   : > { %v5386_v39 = vmul.f32 %v9792_v24, %v5291_v17  ;;  %v9820_v17 = vpop.eup %7642 }
 0x25c   : > { %5454 = vrot.lane.b32.xlu0 %v5388_v36, %s7875_s6  ;;  %v6646_v36 = vmul.f32 -1.442695, %v9722_v51  ;;  %v7645_v18 = vpop.eup %7644  ;;  %7664 = vrcp.f32 %v5176_v60 }
 0x25d   : > { %v5297_v7 = vpop.permute.xlu1 %5296  ;;  %v5175_v3 = vadd.f32 1.0, %v7645_v18  ;;  %v6647_v18 = vmul.f32 -1.442695, %v9740_v53 }
 0x25e   : > { %v5389_v45 = vmul.f32 %v9796_v10, %v5297_v7  ;;  %v5293_v21 = vpop.permute.xlu0 %5292  ;;  %v6643_v7 = vmul.f32 -1.442695, %v9720_v62  ;;  %7666 = vpow2.f32 %v6646_v36  ;;  %v6650_v36 = vmul.f32 -1.442695, %v9742_v56 }
 0x25f   : > { %v5387_v8 = vmul.f32 %v9802_v9, %v5293_v21  ;;  %7668 = vrcp.f32 %v5177_v14 }
 0x260   : > { %5450 = vrot.lane.b32.xlu0 %v5386_v39, %s7875_s6  ;;  %5456 = vrot.lane.b32.xlu1 %v5389_v45, %s7875_s6  ;;  %v9825_v39 = vpop.eup %7646  ;;  %v5174_v45 = vadd.f32 1.0, %v7641_v20  ;;  %7670 = vpow2.f32 %v6643_v7 }
 0x261   : > { %v7649_v21 = vpop.eup %7648 }
 0x262   : > { %v5303_v46 = vpop.permute.xlu0 %5302  ;;  %v7651_v44 = vpop.eup %7650  ;;  %7672 = vrcp.f32 %v5174_v45 }
 0x263   : > { %v5392_v1 = vmul.f32 %v9805_v37, %v5303_v46  ;;  %v5305_v59 = vpop.permute.xlu1 %5304  ;;  %v9833_v0 = vpop.eup %7652  ;;  %v5181_v60 = vadd.f32 1.0, %v7651_v44  ;;  %7674 = vpow2.f32 %v6644_v33  ;;  %v6648_v44 = vmul.f32 -1.442695, %v9746_v30 }
 0x264   : > { %5452 = vrot.lane.b32.xlu1 %v5387_v8, %s7875_s6  ;;  %v5393_v38 = vmul.f32 %v9815_v4, %v5305_v59  ;;  %v6649_v8 = vmul.f32 -1.442695, %v9735_v47  ;;  %v7655_v59 = vpop.eup %7654  ;;  %7676 = vrcp.f32 %v5175_v3 }
 0x265   : > { %5462 = vrot.lane.b32.xlu0 %v5392_v1, %s7875_s6  ;;  %v5180_v1 = vadd.f32 1.0, %v7649_v21  ;;  %v9837_v20 = vpop.eup %7656  ;;  %v5178_v45 = vadd.f32 1.0, %v7655_v59 }
 0x266   : > { %v5299_v54 = vpop.permute.xlu0 %5298  ;;  %7678 = vpow2.f32 %v6649_v8 }
 0x267   : > { %v5390_v28 = vmul.f32 %v9809_v11, %v5299_v54  ;;  %v5301_v48 = vpop.permute.xlu1 %5300  ;;  %v9841_v54 = vpop.eup %7658  ;;  %7680 = vrcp.f32 %v5180_v1 }
 0x268   : > { %5464 = vrot.lane.b32.xlu1 %v5393_v38, %s7875_s6  ;;  %v5391_v58 = vmul.f32 %v9820_v17, %v5301_v48  ;;  %v7661_v48 = vpop.eup %7660  ;;  %7682 = vrcp.f32 %v5181_v60 }
 0x269   : > { %5458 = vrot.lane.b32.xlu0 %v5390_v28, %s7875_s6  ;;  %v7663_v21 = vpop.eup %7662  ;;  %7684 = vpow2.f32 %v6650_v36  ;;  %v5179_v8 = vadd.f32 1.0, %v7661_v48 }
 0x26a   : > { %v5311_v31 = vpop.permute.xlu0 %5310  ;;  %v9847_v33 = vpop.eup %7664  ;;  %7686 = vpow2.f32 %v6647_v18  ;;  %v5184_v59 = vadd.f32 1.0, %v7663_v21 }
 0x26b   : > { %v5396_v46 = vmul.f32 %v9825_v39, %v5311_v31  ;;  %v5313_v40 = vpop.permute.xlu1 %5312  ;;  %v7667_v31 = vpop.eup %7666  ;;  %7688 = vrcp.f32 %v5178_v45 }
 0x26c   : > { %5460 = vrot.lane.b32.xlu1 %v5391_v58, %s7875_s6  ;;  %v5397_v14 = vmul.f32 %v9833_v0, %v5313_v40  ;;  %v9852_v1 = vpop.eup %7668  ;;  %7690 = vpow2.f32 %v6648_v44 }
 0x26d   : > { %5470 = vrot.lane.b32.xlu0 %v5396_v46, %s7875_s6  ;;  %10258 = vst [vmem:[#allocation5_spill] sm:$0xff] %v9852_v1  ;;  %v7671_v60 = vpop.eup %7670  ;;  %7692 = vrcp.f32 %v5179_v8 }
 0x26e   : > { %v5307_v38 = vpop.permute.xlu0 %5306  ;;  %v9856_v36 = vpop.eup %7672  ;;  %7694 = vrcp.f32 %v5184_v59 }
 0x26f   : > { %v5394_v7 = vmul.f32 %v9837_v20, %v5307_v38  ;;  %v5309_v28 = vpop.permute.xlu1 %5308  ;;  %10259 = vst [vmem:[#allocation6_spill] sm:$0xff] %v9856_v36  ;;  %v7675_v18 = vpop.eup %7674 }
 0x270   : > { %5472 = vrot.lane.b32.xlu1 %v5397_v14, %s7875_s6  ;;  %v5395_v3 = vmul.f32 %v9841_v54, %v5309_v28  ;;  %v5185_v14 = vadd.f32 1.0, %v7667_v31  ;;  %v6651_v28 = vmul.f32 -1.442695, %v9760_v13  ;;  %v9861_v21 = vpop.eup %7676  ;;  %v6652_v31 = vmul.f32 -1.442695, %v9766_v12 }
 0x271   : > { %5466 = vrot.lane.b32.xlu0 %v5394_v7, %s7875_s6  ;;  %10260 = vst [vmem:[#allocation7_spill] sm:$0xff] %v9861_v21  ;;  %v5183_v8 = vadd.f32 1.0, %v7675_v18 }
 0x272   : > { %v5319_v58 = vpop.permute.xlu0 %5318  ;;  %7696 = vrcp.f32 %v5185_v14  ;;  %v6654_v14 = vmul.f32 -1.442695, %v9762_v16 }
 0x273   : > { %v5400_v46 = vmul.f32 %v9847_v33, %v5319_v58  ;;  %v5321_v40 = vpop.permute.xlu1 %5320  ;;  %v7679_v58 = vpop.eup %7678  ;;  %7698 = vpow2.f32 %v6651_v28 }
 0x274   : > { %5468 = vrot.lane.b32.xlu1 %v5395_v3, %s7875_s6  ;;  %v5401_v38 = vmul.f32 %v9852_v1, %v5321_v40  ;;  %v5182_v3 = vadd.f32 1.0, %v7671_v60  ;;  %v9866_v44 = vpop.eup %7680 }
 0x275   : > { %5478 = vrot.lane.b32.xlu0 %v5400_v46, %s7875_s6  ;;  %10261 = vst [vmem:[#allocation8_spill] sm:$0xff] %v9866_v44 }
 0x276   : > { %v5315_v7 = vpop.permute.xlu0 %5314  ;;  %7700 = vrcp.f32 %v5182_v3 }
 0x277   : > { %v5398_v48 = vmul.f32 %v9856_v36, %v5315_v7  ;;  %v5317_v45 = vpop.permute.xlu1 %5316  ;;  %v9869_v7 = vpop.eup %7682  ;;  %v6653_v36 = vmul.f32 -1.442695, %v9755_v15  ;;  %7702 = vpow2.f32 %v6652_v31 }
 0x278   : > { %5480 = vrot.lane.b32.xlu1 %v5401_v38, %s7875_s6  ;;  %v5399_v46 = vmul.f32 %v9861_v21, %v5317_v45  ;;  %v7685_v60 = vpop.eup %7684  ;;  %v5188_v38 = vadd.f32 1.0, %v7679_v58  ;;  %7704 = vrcp.f32 %v5183_v8 }
 0x279   : > { %5474 = vrot.lane.b32.xlu0 %v5398_v48, %s7875_s6  ;;  %v7687_v48 = vpop.eup %7686  ;;  %v5189_v21 = vadd.f32 1.0, %v7685_v60  ;;  %7706 = vpow2.f32 %v6653_v36 }
 0x27a   : > { %v9876_v18 = vpop.eup %7688  ;;  %7708 = vrcp.f32 %v5188_v38 }
 0x27b   : > { %v7691_v58 = vpop.eup %7690  ;;  %7710 = vpow2.f32 %v6654_v14 }
 0x27c   : > { %v5327_v40 = vpop.permute.xlu0 %5326  ;;  %5476 = vrot.lane.b32.xlu1 %v5399_v46, %s7875_s6  ;;  %7712 = vrcp.f32 %v5189_v21  ;;  %v5187_v36 = vadd.f32 1.0, %v7691_v58 }
 0x27d   : > { %v5404_v59 = vmul.f32 %v9866_v44, %v5327_v40  ;;  %v5186_v40 = vadd.f32 1.0, %v7687_v48  ;;  %v9881_v44 = vpop.eup %7692 }
 0x27e   : > { %v5329_v1 = vpop.permute.xlu1 %5328  ;;  %10262 = vst [vmem:[#allocation9_spill] sm:$0xff] %v9881_v44  ;;  %v9884_v31 = vpop.eup %7694 }
 0x27f   : > { %5486 = vrot.lane.b32.xlu0 %v5404_v59, %s7875_s6  ;;  %v5405_v45 = vmul.f32 %v9869_v7, %v5329_v1  ;;  %10263 = vst [vmem:[#allocation10_spill] sm:$0xff] %v9884_v31  ;;  %v9888_v60 = vpop.eup %7696  ;;  %7714 = vrcp.f32 %v5186_v40 }
 0x280   : > { %v5323_v28 = vpop.permute.xlu0 %5322  ;;  %10264 = vst [vmem:[#allocation11_spill] sm:$0xff] %v9888_v60  ;;  %v7699_v48 = vpop.eup %7698  ;;  %7716 = vrcp.f32 %v5187_v36 }
 0x281   : > { %v5402_v3 = vmul.f32 %v9876_v18, %v5323_v28  ;;  %5488 = vrot.lane.b32.xlu1 %v5405_v45, %s7875_s6  ;;  %v9892_v14 = vpop.eup %7700 }
 0x282   : > { %v5325_v46 = vpop.permute.xlu1 %5324 }
 0x283   : > { %5482 = vrot.lane.b32.xlu0 %v5402_v3, %s7875_s6  ;;  %v5403_v1 = vmul.f32 %v9881_v44, %v5325_v46  ;;  %v7703_v3 = vpop.eup %7702  ;;  %v5190_v46 = vadd.f32 1.0, %v7699_v48 }
 0x284   : > { %v5335_v8 = vpop.permute.xlu0 %5334  ;;  %v9896_v58 = vpop.eup %7704 }
 0x285   : > { %v5408_v59 = vmul.f32 %v9884_v31, %v5335_v8  ;;  %5484 = vrot.lane.b32.xlu1 %v5403_v1, %s7875_s6  ;;  %10265 = vst [vmem:[#allocation12_spill] sm:$0xff] %v9896_v58  ;;  %v7707_v40 = vpop.eup %7706  ;;  %7718 = vrcp.f32 %v5190_v46 }
 0x286   : > { %v5337_v38 = vpop.permute.xlu1 %5336  ;;  %v9900_v1 = vpop.eup %7708  ;;  %v5192_v44 = vadd.f32 1.0, %v7707_v40 }
 0x287   : > { %5494 = vrot.lane.b32.xlu0 %v5408_v59, %s7875_s6  ;;  %v5409_v45 = vmul.f32 %v9888_v60, %v5337_v38  ;;  %v5191_v59 = vadd.f32 1.0, %v7703_v3  ;;  %v7711_v60 = vpop.eup %7710 }
 0x288   : > { %v5331_v28 = vpop.permute.xlu0 %5330  ;;  %v9905_v48 = vpop.eup %7712 }
 0x289   : > { %v5406_v21 = vmul.f32 %v9892_v14, %v5331_v28  ;;  %5496 = vrot.lane.b32.xlu1 %v5409_v45, %s7875_s6  ;;  %v9908_v45 = vpop.eup %7714  ;;  %7720 = vrcp.f32 %v5191_v59 }
 0x28a   : > { %v5333_v8 = vpop.permute.xlu1 %5332  ;;  %7722 = vrcp.f32 %v5192_v44  ;;  %v9913_v46 = vpop.eup %7716 }
 0x28b   : > { %5490 = vrot.lane.b32.xlu0 %v5406_v21, %s7875_s6  ;;  %v5407_v31 = vmul.f32 %v9896_v58, %v5333_v8  ;;  %v5193_v21 = vadd.f32 1.0, %v7711_v60 }
 0x28c   : > { %v5343_v38 = vpop.permute.xlu0 %5342 }
 0x28d   : > { %v5412_v36 = vmul.f32 %v9900_v1, %v5343_v38  ;;  %5492 = vrot.lane.b32.xlu1 %v5407_v31, %s7875_s6  ;;  %7724 = vrcp.f32 %v5193_v21 }
 0x28e   : > { %v5345_v28 = vpop.permute.xlu1 %5344 }
 0x28f   : > { %5502 = vrot.lane.b32.xlu0 %v5412_v36, %s7875_s6  ;;  %v5413_v3 = vmul.f32 %v9905_v48, %v5345_v28  ;;  %v9918_v60 = vpop.eup %7718 }
 0x290   : > { %v5339_v8 = vpop.permute.xlu0 %5338  ;;  %10266 = vst [vmem:[#allocation13_spill] sm:$0xff] %v9918_v60 }
 0x291   : > { %v5410_v58 = vmul.f32 %v9908_v45, %v5339_v8  ;;  %5504 = vrot.lane.b32.xlu1 %v5413_v3, %s7875_s6 }
 0x292   : > { %v5341_v38 = vpop.permute.xlu1 %5340 }
 0x293   : > { %5498 = vrot.lane.b32.xlu0 %v5410_v58, %s7875_s6  ;;  %v5411_v31 = vmul.f32 %v9913_v46, %v5341_v38  ;;  %v9921_v44 = vpop.eup %7720 }
 0x294   : > { %v5351_v40 = vpop.permute.xlu0 %5350  ;;  %10267 = vst [vmem:[#allocation14_spill] sm:$0xff] %v9921_v44  ;;  %v9925_v58 = vpop.eup %7722 }
 0x295   : > { %5500 = vrot.lane.b32.xlu1 %v5411_v31, %s7875_s6  ;;  %10268 = vst [vmem:[#allocation15_spill] sm:$0xff] %v9925_v58  ;;  %v5416_v21 = vmul.f32 %v9925_v58, %v5351_v40 }
 0x296   : > { %v5353_v36 = vpop.permute.xlu1 %5352 }
 0x297   : > { %v9929_v38 = vpop.eup %7724 }
 0x298   : > { %v5347_v59 = vpop.permute.xlu0 %5346  ;;  %10269 = vst [vmem:[#allocation16_spill] sm:$0xff] %v9929_v38  ;;  %v5417_v31 = vmul.f32 %v9929_v38, %v5353_v36 }
 0x299   : > { %v5414_v28 = vmul.f32 %v9918_v60, %v5347_v59 }
 0x29a   : > { %v5349_v8 = vpop.permute.xlu1 %5348 }
 0x29b   : > { %v5415_v3 = vmul.f32 %v9921_v44, %v5349_v8  ;;  %5506 = vrot.lane.b32.xlu0 %v5414_v28, %s7875_s6 }
 0x29d   : > { %5508 = vrot.lane.b32.xlu1 %v5415_v3, %s7875_s6 }
 0x29f   : > { %5510 = vrot.lane.b32.xlu0 %v5416_v21, %s7875_s6 }
 0x2a1   : > { %5512 = vrot.lane.b32.xlu1 %v5417_v31, %s7875_s6 }
 0x2ce   : > { %v5455_v59 = vpop.permute.xlu0 %5454 }
 0x2cf   : > { %v5548_v60 = vadd.f32 %v9617_v23, %v5455_v59 }
 0x2d1   : > { %7726 = vtanh.f32 %v5548_v60 }
 0x2d2   : > { %v5451_v8 = vpop.permute.xlu0 %5450  ;;  %v5457_v28 = vpop.permute.xlu1 %5456 }
 0x2d3   : > { %v5546_v44 = vadd.f32 %v9620_v5, %v5451_v8  ;;  %v5549_v40 = vadd.f32 %v9622_v52, %v5457_v28 }
 0x2d5   : > { %7728 = vtanh.f32 %v5546_v44 }
 0x2d6   : > { %7730 = vtanh.f32 %v5549_v40  ;;  %v5453_v3 = vpop.permute.xlu1 %5452 }
 0x2d7   : > { %v5547_v58 = vadd.f32 %v9626_v43, %v5453_v3  ;;  %v5463_v36 = vpop.permute.xlu0 %5462 }
 0x2d8   : > { %v5552_v21 = vadd.f32 %v9637_v55, %v5463_v36 }
 0x2d9   : > { %7732 = vtanh.f32 %v5547_v58 }
 0x2da   : > { %7734 = vtanh.f32 %v5552_v21  ;;  %v5465_v31 = vpop.permute.xlu1 %5464 }
 0x2db   : > { %v7727_v38 = vpop.eup %7726  ;;  %v5553_v23 = vadd.f32 %v9642_v57, %v5465_v31  ;;  %v5459_v60 = vpop.permute.xlu0 %5458 }
 0x2dc   : > { %v5550_v59 = vadd.f32 %v9640_v27, %v5459_v60  ;;  %5742 = vrot.lane.b32.xlu0 %v7727_v38, %s7874_s5 }
 0x2dd   : > { %7736 = vtanh.f32 %v5553_v23 }
 0x2de   : > { %7738 = vtanh.f32 %v5550_v59  ;;  %v5461_v5 = vpop.permute.xlu1 %5460 }
 0x2df   : > { %v7729_v52 = vpop.eup %7728  ;;  %v5551_v43 = vadd.f32 %v9644_v32, %v5461_v5  ;;  %v5471_v44 = vpop.permute.xlu0 %5470 }
 0x2e0   : > { %v7731_v8 = vpop.eup %7730  ;;  %v5556_v55 = vadd.f32 %v9655_v6, %v5471_v44  ;;  %5738 = vrot.lane.b32.xlu0 %v7729_v52, %s7874_s5 }
 0x2e1   : > { %7740 = vtanh.f32 %v5551_v43  ;;  %5744 = vrot.lane.b32.xlu1 %v7731_v8, %s7874_s5 }
 0x2e2   : > { %7742 = vtanh.f32 %v5556_v55  ;;  %v5473_v57 = vpop.permute.xlu1 %5472 }
 0x2e3   : > { %v7733_v27 = vpop.eup %7732  ;;  %v5557_v58 = vadd.f32 %v9662_v26, %v5473_v57  ;;  %v5467_v38 = vpop.permute.xlu0 %5466 }
 0x2e4   : > { %v7735_v28 = vpop.eup %7734  ;;  %v5554_v40 = vadd.f32 %v9660_v42, %v5467_v38 }
 0x2e5   : > { %7744 = vtanh.f32 %v5557_v58  ;;  %5740 = vrot.lane.b32.xlu1 %v7733_v27, %s7874_s5  ;;  %5750 = vrot.lane.b32.xlu0 %v7735_v28, %s7874_s5 }
 0x2e6   : > { %7746 = vtanh.f32 %v5554_v40  ;;  %v5469_v32 = vpop.permute.xlu1 %5468 }
 0x2e7   : > { %v7737_v6 = vpop.eup %7736  ;;  %v5555_v3 = vadd.f32 %v9664_v2, %v5469_v32  ;;  %v5479_v36 = vpop.permute.xlu0 %5478 }
 0x2e8   : > { %v7739_v21 = vpop.eup %7738  ;;  %v5560_v31 = vadd.f32 %v9675_v41, %v5479_v36 }
 0x2e9   : > { %7748 = vtanh.f32 %v5555_v3  ;;  %5752 = vrot.lane.b32.xlu1 %v7737_v6, %s7874_s5  ;;  %5746 = vrot.lane.b32.xlu0 %v7739_v21, %s7874_s5 }
 0x2ea   : > { %7750 = vtanh.f32 %v5560_v31  ;;  %v5481_v42 = vpop.permute.xlu1 %5480 }
 0x2eb   : > { %v7741_v26 = vpop.eup %7740  ;;  %v5561_v23 = vadd.f32 %v9682_v22, %v5481_v42  ;;  %v5475_v60 = vpop.permute.xlu0 %5474 }
 0x2ec   : > { %v7743_v59 = vpop.eup %7742  ;;  %v5558_v5 = vadd.f32 %v9680_v50, %v5475_v60 }
 0x2ed   : > { %7752 = vtanh.f32 %v5561_v23  ;;  %5748 = vrot.lane.b32.xlu1 %v7741_v26, %s7874_s5  ;;  %5758 = vrot.lane.b32.xlu0 %v7743_v59, %s7874_s5 }
 0x2ee   : > { %7754 = vtanh.f32 %v5558_v5  ;;  %v5477_v2 = vpop.permute.xlu1 %5476 }
 0x2ef   : > { %v7745_v41 = vpop.eup %7744  ;;  %v5559_v52 = vadd.f32 %v9684_v25, %v5477_v2 }
 0x2f0   : > { %v7747_v44 = vpop.eup %7746 }
 0x2f1   : > { %v5487_v43 = vpop.permute.xlu0 %5486  ;;  %7756 = vtanh.f32 %v5559_v52  ;;  %5760 = vrot.lane.b32.xlu1 %v7745_v41, %s7874_s5  ;;  %5754 = vrot.lane.b32.xlu0 %v7747_v44, %s7874_s5 }
 0x2f2   : > { %v5564_v8 = vadd.f32 %v9697_v49, %v5487_v43 }
 0x2f3   : > { %v5489_v50 = vpop.permute.xlu1 %5488  ;;  %v7749_v22 = vpop.eup %7748 }
 0x2f4   : > { %7758 = vtanh.f32 %v5564_v8  ;;  %v5565_v55 = vadd.f32 %v9702_v34, %v5489_v50  ;;  %v7751_v27 = vpop.eup %7750 }
 0x2f5   : > { %v5483_v57 = vpop.permute.xlu0 %5482  ;;  %5756 = vrot.lane.b32.xlu1 %v7749_v22, %s7874_s5  ;;  %5766 = vrot.lane.b32.xlu0 %v7751_v27, %s7874_s5 }
 0x2f6   : > { %v5562_v58 = vadd.f32 %v9700_v35, %v5483_v57  ;;  %7760 = vtanh.f32 %v5565_v55 }
 0x2f7   : > { %v5485_v25 = vpop.permute.xlu1 %5484  ;;  %v7753_v49 = vpop.eup %7752 }
 0x2f8   : > { %7762 = vtanh.f32 %v5562_v58  ;;  %v5563_v38 = vadd.f32 %v9706_v61, %v5485_v25  ;;  %v7755_v40 = vpop.eup %7754 }
 0x2f9   : > { %v5495_v28 = vpop.permute.xlu0 %5494  ;;  %5768 = vrot.lane.b32.xlu1 %v7753_v49, %s7874_s5  ;;  %5762 = vrot.lane.b32.xlu0 %v7755_v40, %s7874_s5 }
 0x2fa   : > { %v5568_v32 = vadd.f32 %v9715_v19, %v5495_v28  ;;  %7764 = vtanh.f32 %v5563_v38  ;;  %v5676_v38 = vsub.f32 1.0, %v9789_v63 }
 0x2fb   : > { %v5497_v35 = vpop.permute.xlu1 %5496  ;;  %v7757_v34 = vpop.eup %7756 }
 0x2fc   : > { %7766 = vtanh.f32 %v5568_v32  ;;  %v5569_v6 = vadd.f32 %v9722_v51, %v5497_v35  ;;  %v5610_v35 = vld [vmem:[%s10002_s10] sm:$0xff] }
 0x2fd   : > { %v5491_v3 = vpop.permute.xlu0 %5490  ;;  %5764 = vrot.lane.b32.xlu1 %v7757_v34, %s7874_s5 }
 0x2fe   : > { %v7759_v36 = vpop.eup %7758  ;;  %v5566_v21 = vadd.f32 %v9720_v62, %v5491_v3  ;;  %7768 = vtanh.f32 %v5569_v6  ;;  %v5674_v6 = vsub.f32 1.0, %v9792_v24  ;;  %v5613_v3 = vld [vmem:[%s10002_s10 + $0x18] sm:$0xff] }
 0x2ff   : > { %5774 = vrot.lane.b32.xlu0 %v7759_v36, %s7874_s5  ;;  %v5493_v61 = vpop.permute.xlu1 %5492 }
 0x300   : > { %7770 = vtanh.f32 %v5566_v21  ;;  %v7761_v19 = vpop.eup %7760  ;;  %v5567_v31 = vadd.f32 %v9726_v29, %v5493_v61  ;;  %v5677_v21 = vsub.f32 1.0, %v9796_v10 }
 0x301   : > { %v5503_v42 = vpop.permute.xlu0 %5502  ;;  %5776 = vrot.lane.b32.xlu1 %v7761_v19, %s7874_s5 }
 0x302   : > { %v7763_v26 = vpop.eup %7762  ;;  %v5572_v23 = vadd.f32 %v9735_v47, %v5503_v42  ;;  %7772 = vtanh.f32 %v5567_v31  ;;  %v5645_v31 = vmul.f32 %v9796_v10, %v5613_v3 }
 0x303   : > { %5770 = vrot.lane.b32.xlu0 %v7763_v26, %s7874_s5  ;;  %v5505_v62 = vpop.permute.xlu1 %5504 }
 0x304   : > { %7774 = vtanh.f32 %v5572_v23  ;;  %v7765_v51 = vpop.eup %7764  ;;  %v5573_v60 = vadd.f32 %v9742_v56, %v5505_v62  ;;  %v5611_v23 = vld [vmem:[%s10002_s10 + $0x8] sm:$0xff]  ;;  %v5616_v62 = vld [vmem:[%s10002_s10 + $0x30] sm:$0xff] }
 0x305   : > { %v5499_v59 = vpop.permute.xlu0 %5498  ;;  %5772 = vrot.lane.b32.xlu1 %v7765_v51, %s7874_s5  ;;  %v5643_v10 = vmul.f32 %v9802_v9, %v5611_v23 }
 0x306   : > { %v7767_v5 = vpop.eup %7766  ;;  %v5570_v2 = vadd.f32 %v9740_v53, %v5499_v59  ;;  %7776 = vtanh.f32 %v5573_v60  ;;  %v5675_v60 = vsub.f32 1.0, %v9802_v9  ;;  %v5680_v59 = vsub.f32 1.0, %v9805_v37 }
 0x307   : > { %5782 = vrot.lane.b32.xlu0 %v7767_v5, %s7874_s5  ;;  %v5501_v29 = vpop.permute.xlu1 %5500 }
 0x308   : > { %7778 = vtanh.f32 %v5570_v2  ;;  %v7769_v47 = vpop.eup %7768  ;;  %v5571_v41 = vadd.f32 %v9746_v30, %v5501_v29  ;;  %v5648_v29 = vmul.f32 %v9805_v37, %v5616_v62 }
 0x309   : > { %5784 = vrot.lane.b32.xlu1 %v7769_v47, %s7874_s5 }
 0x30a   : > { %v7771_v52 = vpop.eup %7770  ;;  %7780 = vtanh.f32 %v5571_v41  ;;  %v5617_v41 = vld [vmem:[%s10002_s10 + $0x38] sm:$0xff] }
 0x30b   : > { %5778 = vrot.lane.b32.xlu0 %v7771_v52, %s7874_s5  ;;  %v5614_v52 = vld [vmem:[%s10002_s10 + $0x20] sm:$0xff]  ;;  %v5649_v9 = vmul.f32 %v9815_v4, %v5617_v41 }
 0x30c   : > { %v7773_v56 = vpop.eup %7772 }
 0x30d   : > { %v5507_v43 = vpop.permute.xlu0 %5506  ;;  %5780 = vrot.lane.b32.xlu1 %v7773_v56, %s7874_s5 }
 0x30e   : > { %v7775_v44 = vpop.eup %7774  ;;  %v5574_v53 = vadd.f32 %v9760_v13, %v5507_v43 }
 0x30f   : > { %v5509_v8 = vpop.permute.xlu1 %5508  ;;  %5790 = vrot.lane.b32.xlu0 %v7775_v44, %s7874_s5  ;;  %v5681_v44 = vsub.f32 1.0, %v9815_v4 }
 0x310   : > { %7782 = vtanh.f32 %v5574_v53  ;;  %v5575_v50 = vadd.f32 %v9766_v12, %v5509_v8  ;;  %v7777_v30 = vpop.eup %7776  ;;  %v5678_v53 = vsub.f32 1.0, %v9809_v11 }
 0x311   : > { %v5511_v22 = vpop.permute.xlu0 %5510  ;;  %5792 = vrot.lane.b32.xlu1 %v7777_v30, %s7874_s5  ;;  %v5646_v30 = vmul.f32 %v9809_v11, %v5614_v52 }
 0x312   : > { %v7779_v55 = vpop.eup %7778  ;;  %7784 = vtanh.f32 %v5575_v50  ;;  %v5576_v57 = vadd.f32 %v9755_v15, %v5511_v22 }
 0x313   : > { %v5513_v27 = vpop.permute.xlu1 %5512  ;;  %5786 = vrot.lane.b32.xlu0 %v7779_v55, %s7874_s5  ;;  %v5615_v55 = vld [vmem:[%s10002_s10 + $0x28] sm:$0xff] }
 0x314   : > { %7786 = vtanh.f32 %v5576_v57  ;;  %v5577_v13 = vadd.f32 %v9762_v16, %v5513_v27  ;;  %v7781_v58 = vpop.eup %7780  ;;  %v5612_v16 = vld [vmem:[%s10002_s10 + $0x10] sm:$0xff]  ;;  %v5647_v11 = vmul.f32 %v9820_v17, %v5615_v55 }
 0x315   : > { %5788 = vrot.lane.b32.xlu1 %v7781_v58, %s7874_s5  ;;  %v5644_v40 = vmul.f32 %v9789_v63, %v5612_v16  ;;  %v5642_v63 = vmul.f32 %v9792_v24, %v5610_v35  ;;  %v5620_v57 = vld [vmem:[%s10002_s10 + $0x50] sm:$0xff]  ;;  %v5679_v58 = vsub.f32 1.0, %v9820_v17  ;;  %v5685_v35 = vsub.f32 1.0, %v9833_v0 }
 0x316   : > { %7788 = vtanh.f32 %v5577_v13 }
 0x31a   : > { %v7783_v12 = vpop.eup %7782 }
 0x31b   : > { %5794 = vrot.lane.b32.xlu0 %v7783_v12, %s7874_s5  ;;  %v5684_v12 = vsub.f32 1.0, %v9825_v39 }
 0x31c   : > { %v7785_v25 = vpop.eup %7784 }
 0x31d   : > { %5796 = vrot.lane.b32.xlu1 %v7785_v25, %s7874_s5 }
 0x31e   : > { %v7787_v15 = vpop.eup %7786 }
 0x31f   : > { %5798 = vrot.lane.b32.xlu0 %v7787_v15, %s7874_s5 }
 0x320   : > { %v7789_v49 = vpop.eup %7788 }
 0x321   : > { %5800 = vrot.lane.b32.xlu1 %v7789_v49, %s7874_s5  ;;  %v5652_v49 = vmul.f32 %v9825_v39, %v5620_v57  ;;  %s7816_s5 = scalar_lea.vmem %s7815_s30, 8192 }
 0x322   : > { %p7818_p1 = scmp.lt.s32.totalorder %s7816_s5, %s7810_s29 }
 0x324   : > { %p7819_p2 = por %p7818_p1, %p7817_p0 }
 0x326   : > { %p7820_p3 = pnand %p7819_p2, %p7813_p13 }
 0x34e   : > { %v5743_v28 = vpop.permute.xlu0 %5742 }
 0x34f   : > { %v5836_v32 = vmul.f32 %v5743_v28, %v5676_v38  ;;  %v5621_v38 = vld [vmem:[%s10002_s10 + $0x58] sm:$0xff]  ;;  %v5618_v28 = vld [vmem:[%s10002_s10 + $0x40] sm:$0xff] }
 0x350   : > { %v5653_v17 = vmul.f32 %v9833_v0, %v5621_v38  ;;  %v5690_v38 = vsub.f32 1.0, %v9876_v18 }
 0x351   : > { %v5868_v34 = vadd.f32 %v5836_v32, %v5644_v40 }
 0x352   : > { %v5739_v36 = vpop.permute.xlu0 %5738 }
 0x353   : > { %5901 = vst.msk [vmem:[%s10014_s11 + $0x10] sm:$0xff] %vm5898_vm8, %v5868_v34  ;;  %v5834_v61 = vmul.f32 %v5739_v36, %v5674_v6  ;;  %v5745_v19 = vpop.permute.xlu1 %5744  ;;  %v5682_v34 = vsub.f32 1.0, %v9837_v20  ;;  %v5650_v36 = vmul.f32 %v9837_v20, %v5618_v28 }
 0x354   : > { %v5837_v42 = vmul.f32 %v5745_v19, %v5677_v21 }
 0x355   : > { %v5866_v26 = vadd.f32 %v5834_v61, %v5642_v63  ;;  %v5619_v63 = vld [vmem:[%s10002_s10 + $0x48] sm:$0xff]  ;;  %v5624_v61 = vld [vmem:[%s10002_s10 + $0x70] sm:$0xff] }
 0x356   : > { %v5869_v51 = vadd.f32 %v5837_v42, %v5645_v31  ;;  %v5683_v42 = vsub.f32 1.0, %v9841_v54  ;;  %v5651_v0 = vmul.f32 %v9841_v54, %v5619_v63 }
 0x357   : > { %5899 = vst.msk [vmem:[%s10014_s11] sm:$0xff] %vm5898_vm8, %v5866_v26  ;;  %v5741_v5 = vpop.permute.xlu1 %5740  ;;  %v5751_v24 = vpop.permute.xlu0 %5750  ;;  %v5688_v26 = vsub.f32 1.0, %v9847_v33 }
 0x358   : > { %5902 = vst.msk [vmem:[%s10014_s11 + $0x18] sm:$0xff] %vm5898_vm8, %v5869_v51  ;;  %v5835_v2 = vmul.f32 %v5741_v5, %v5675_v60  ;;  %v5840_v47 = vmul.f32 %v5751_v24, %v5680_v59  ;;  %v5656_v51 = vmul.f32 %v9847_v33, %v5624_v61  ;;  %v5625_v59 = vld [vmem:[%s10002_s10 + $0x78] sm:$0xff]  ;;  %v5622_v5 = vld [vmem:[%s10002_s10 + $0x60] sm:$0xff] }
 0x359   : > { %v10275_v61 = vld [vmem:[#allocation10_spill] sm:$0xff] }
 0x35a   : > { %v5867_v56 = vadd.f32 %v5835_v2, %v5643_v10  ;;  %v5872_v43 = vadd.f32 %v5840_v47, %v5648_v29  ;;  %v10270_v2 = vld [vmem:[#allocation5_spill] sm:$0xff]  ;;  %v10271_v47 = vld [vmem:[#allocation6_spill] sm:$0xff] }
 0x35b   : > { %v5753_v8 = vpop.permute.xlu1 %5752  ;;  %v5747_v50 = vpop.permute.xlu0 %5746  ;;  %v5689_v29 = vsub.f32 1.0, %v10270_v2  ;;  %v5686_v41 = vsub.f32 1.0, %v10271_v47  ;;  %v5657_v54 = vmul.f32 %v10270_v2, %v5625_v59 }
 0x35c   : > { %5900 = vst.msk [vmem:[%s10014_s11 + $0x8] sm:$0xff] %vm5898_vm8, %v5867_v56  ;;  %5905 = vst.msk [vmem:[%s10014_s11 + $0x30] sm:$0xff] %vm5898_vm8, %v5872_v43  ;;  %v5841_v37 = vmul.f32 %v5753_v8, %v5681_v44  ;;  %v5838_v22 = vmul.f32 %v5747_v50, %v5678_v53  ;;  %v5654_v43 = vmul.f32 %v10271_v47, %v5622_v5  ;;  %v5623_v53 = vld [vmem:[%s10002_s10 + $0x68] sm:$0xff]  ;;  %v5628_v8 = vld [vmem:[%s10002_s10 + $0x90] sm:$0xff]  ;;  %v5694_v5 = vsub.f32 1.0, %v9892_v14 }
 0x35e   : > { %v5873_v27 = vadd.f32 %v5841_v37, %v5649_v9  ;;  %v5870_v13 = vadd.f32 %v5838_v22, %v5646_v30  ;;  %v10272_v37 = vld [vmem:[#allocation7_spill] sm:$0xff]  ;;  %v10273_v22 = vld [vmem:[#allocation8_spill] sm:$0xff] }
 0x35f   : > { %v5749_v25 = vpop.permute.xlu1 %5748  ;;  %v5759_v15 = vpop.permute.xlu0 %5758  ;;  %v5687_v30 = vsub.f32 1.0, %v10272_v37  ;;  %v5692_v55 = vsub.f32 1.0, %v10273_v22 }
 0x360   : > { %5906 = vst.msk [vmem:[%s10014_s11 + $0x38] sm:$0xff] %vm5898_vm8, %v5873_v27  ;;  %5903 = vst.msk [vmem:[%s10014_s11 + $0x20] sm:$0xff] %vm5898_vm8, %v5870_v13  ;;  %v5839_v4 = vmul.f32 %v5749_v25, %v5679_v58  ;;  %v5844_v16 = vmul.f32 %v5759_v15, %v5684_v12  ;;  %v5655_v13 = vmul.f32 %v10272_v37, %v5623_v53  ;;  %v5629_v15 = vld [vmem:[%s10002_s10 + $0x98] sm:$0xff]  ;;  %v5700_v53 = vsub.f32 1.0, %v9900_v1 }
 0x361   : > { %v5660_v12 = vmul.f32 %v10273_v22, %v5628_v8  ;;  %v5637_v22 = vld [vmem:[%s10002_s10 + $0xd8] sm:$0xff] }
 0x362   : > { %v5871_v40 = vadd.f32 %v5839_v4, %v5647_v11  ;;  %v5876_v32 = vadd.f32 %v5844_v16, %v5652_v49  ;;  %v5626_v11 = vld [vmem:[%s10002_s10 + $0x80] sm:$0xff]  ;;  %v5693_v16 = vsub.f32 1.0, %v9869_v7 }
 0x363   : > { %v5761_v6 = vpop.permute.xlu1 %5760  ;;  %v5755_v3 = vpop.permute.xlu0 %5754 }
 0x364   : > { %5904 = vst.msk [vmem:[%s10014_s11 + $0x28] sm:$0xff] %vm5898_vm8, %v5871_v40  ;;  %5909 = vst.msk [vmem:[%s10014_s11 + $0x50] sm:$0xff] %vm5898_vm8, %v5876_v32  ;;  %v5845_v39 = vmul.f32 %v5761_v6, %v5685_v35  ;;  %v5842_v21 = vmul.f32 %v5755_v3, %v5682_v34  ;;  %v5661_v32 = vmul.f32 %v9869_v7, %v5629_v15  ;;  %v5627_v3 = vld [vmem:[%s10002_s10 + $0x88] sm:$0xff] }
 0x365   : > { %v5658_v34 = vmul.f32 %v9876_v18, %v5626_v11 }
 0x366   : > { %v5877_v19 = vadd.f32 %v5845_v39, %v5653_v17  ;;  %v5874_v31 = vadd.f32 %v5842_v21, %v5650_v36  ;;  %v5632_v17 = vld [vmem:[%s10002_s10 + $0xb0] sm:$0xff] }
 0x367   : > { %v5757_v23 = vpop.permute.xlu1 %5756  ;;  %v5767_v62 = vpop.permute.xlu0 %5766  ;;  %v10274_v21 = vld [vmem:[#allocation9_spill] sm:$0xff] }
 0x368   : > { %5910 = vst.msk [vmem:[%s10014_s11 + $0x58] sm:$0xff] %vm5898_vm8, %v5877_v19  ;;  %5907 = vst.msk [vmem:[%s10014_s11 + $0x40] sm:$0xff] %vm5898_vm8, %v5874_v31  ;;  %v5843_v20 = vmul.f32 %v5757_v23, %v5683_v42  ;;  %v5848_v60 = vmul.f32 %v5767_v62, %v5688_v26  ;;  %v5691_v63 = vsub.f32 1.0, %v10274_v21  ;;  %v5696_v19 = vsub.f32 1.0, %v10275_v61  ;;  %v5633_v62 = vld [vmem:[%s10002_s10 + $0xb8] sm:$0xff] }
 0x369   : > { %v5659_v7 = vmul.f32 %v10274_v21, %v5627_v3  ;;  %v5664_v26 = vmul.f32 %v10275_v61, %v5632_v17  ;;  %v5639_v17 = vld [vmem:[%s10002_s10 + $0xe8] sm:$0xff]  ;;  %v10279_v21 = vld [vmem:[#allocation14_spill] sm:$0xff] }
 0x36a   : > { %v5875_v24 = vadd.f32 %v5843_v20, %v5651_v0  ;;  %v5880_v10 = vadd.f32 %v5848_v60, %v5656_v51  ;;  %v5630_v0 = vld [vmem:[%s10002_s10 + $0xa0] sm:$0xff] }
 0x36b   : > { %v5769_v52 = vpop.permute.xlu1 %5768  ;;  %v5763_v56 = vpop.permute.xlu0 %5762  ;;  %v10276_v60 = vld [vmem:[#allocation11_spill] sm:$0xff]  ;;  %v5662_v47 = vmul.f32 %v9892_v14, %v5630_v0 }
 0x36c   : > { %5908 = vst.msk [vmem:[%s10014_s11 + $0x48] sm:$0xff] %vm5898_vm8, %v5875_v24  ;;  %5913 = vst.msk [vmem:[%s10014_s11 + $0x70] sm:$0xff] %vm5898_vm8, %v5880_v10  ;;  %v5849_v33 = vmul.f32 %v5769_v52, %v5689_v29  ;;  %v5846_v44 = vmul.f32 %v5763_v56, %v5686_v41  ;;  %v5697_v59 = vsub.f32 1.0, %v10276_v60  ;;  %v5665_v2 = vmul.f32 %v10276_v60, %v5633_v62  ;;  %v5631_v52 = vld [vmem:[%s10002_s10 + $0xa8] sm:$0xff]  ;;  %v5636_v56 = vld [vmem:[%s10002_s10 + $0xd0] sm:$0xff] }
 0x36d   : > { %v5668_v37 = vmul.f32 %v9900_v1, %v5636_v56  ;;  %v5669_v1 = vmul.f32 %v9905_v48, %v5637_v22 }
 0x36e   : > { %v5881_v50 = vadd.f32 %v5849_v33, %v5657_v54  ;;  %v5878_v9 = vadd.f32 %v5846_v44, %v5654_v43  ;;  %v10277_v43 = vld [vmem:[#allocation12_spill] sm:$0xff] }
 0x36f   : > { %v5765_v57 = vpop.permute.xlu1 %5764  ;;  %v5695_v44 = vsub.f32 1.0, %v10277_v43  ;;  %v5663_v14 = vmul.f32 %v10277_v43, %v5631_v52 }
 0x370   : > { %5914 = vst.msk [vmem:[%s10014_s11 + $0x78] sm:$0xff] %vm5898_vm8, %v5881_v50  ;;  %5911 = vst.msk [vmem:[%s10014_s11 + $0x60] sm:$0xff] %vm5898_vm8, %v5878_v9  ;;  %v5847_v58 = vmul.f32 %v5765_v57, %v5687_v30 }
 0x371   : > { %v5775_v27 = vpop.permute.xlu0 %5774 }
 0x372   : > { %v5852_v25 = vmul.f32 %v5775_v27, %v5692_v55  ;;  %v5879_v4 = vadd.f32 %v5847_v58, %v5655_v13  ;;  %v5634_v55 = vld [vmem:[%s10002_s10 + $0xc0] sm:$0xff]  ;;  %v5701_v13 = vsub.f32 1.0, %v9905_v48  ;;  %v5698_v58 = vsub.f32 1.0, %v9908_v45 }
 0x373   : > { %v5777_v28 = vpop.permute.xlu1 %5776  ;;  %v5666_v11 = vmul.f32 %v9908_v45, %v5634_v55  ;;  %v10278_v45 = vld [vmem:[#allocation13_spill] sm:$0xff] }
 0x374   : > { %v5884_v49 = vadd.f32 %v5852_v25, %v5660_v12  ;;  %5912 = vst.msk [vmem:[%s10014_s11 + $0x68] sm:$0xff] %vm5898_vm8, %v5879_v4  ;;  %v5853_v35 = vmul.f32 %v5777_v28, %v5693_v16  ;;  %v5699_v28 = vsub.f32 1.0, %v9913_v46 }
 0x375   : > { %v5771_v40 = vpop.permute.xlu0 %5770 }
 0x376   : > { %5917 = vst.msk [vmem:[%s10014_s11 + $0x90] sm:$0xff] %vm5898_vm8, %v5884_v49  ;;  %v5850_v6 = vmul.f32 %v5771_v40, %v5690_v38  ;;  %v5885_v39 = vadd.f32 %v5853_v35, %v5661_v32  ;;  %v5635_v49 = vld [vmem:[%s10002_s10 + $0xc8] sm:$0xff]  ;;  %v5638_v35 = vld [vmem:[%s10002_s10 + $0xe0] sm:$0xff] }
 0x377   : > { %v5773_v31 = vpop.permute.xlu1 %5772  ;;  %v5667_v32 = vmul.f32 %v9913_v46, %v5635_v49  ;;  %v5640_v46 = vld [vmem:[%s10002_s10 + $0xf0] sm:$0xff] }
 0x378   : > { %v5882_v36 = vadd.f32 %v5850_v6, %v5658_v34  ;;  %5918 = vst.msk [vmem:[%s10014_s11 + $0x98] sm:$0xff] %vm5898_vm8, %v5885_v39  ;;  %v5851_v18 = vmul.f32 %v5773_v31, %v5691_v63  ;;  %v5702_v6 = vsub.f32 1.0, %v10278_v45  ;;  %v5670_v39 = vmul.f32 %v10278_v45, %v5638_v35 }
 0x379   : > { %v5783_v42 = vpop.permute.xlu0 %5782  ;;  %v5703_v63 = vsub.f32 1.0, %v10279_v21  ;;  %v5671_v31 = vmul.f32 %v10279_v21, %v5639_v17 }
 0x37a   : > { %5915 = vst.msk [vmem:[%s10014_s11 + $0x80] sm:$0xff] %vm5898_vm8, %v5882_v36  ;;  %v5856_v23 = vmul.f32 %v5783_v42, %v5696_v19  ;;  %v5883_v20 = vadd.f32 %v5851_v18, %v5659_v7  ;;  %v10280_v7 = vld [vmem:[#allocation15_spill] sm:$0xff] }
 0x37b   : > { %v5785_v24 = vpop.permute.xlu1 %5784  ;;  %v5704_v18 = vsub.f32 1.0, %v10280_v7  ;;  %v5672_v0 = vmul.f32 %v10280_v7, %v5640_v46 }
 0x37c   : > { %v5888_v51 = vadd.f32 %v5856_v23, %v5664_v26  ;;  %5916 = vst.msk [vmem:[%s10014_s11 + $0x88] sm:$0xff] %vm5898_vm8, %v5883_v20  ;;  %v5857_v29 = vmul.f32 %v5785_v24, %v5697_v59  ;;  %v5641_v23 = vld [vmem:[%s10002_s10 + $0xf8] sm:$0xff] }
 0x37d   : > { %v5779_v10 = vpop.permute.xlu0 %5778 }
 0x37e   : > { %5921 = vst.msk [vmem:[%s10014_s11 + $0xb0] sm:$0xff] %vm5898_vm8, %v5888_v51  ;;  %v5854_v41 = vmul.f32 %v5779_v10, %v5694_v5  ;;  %v5889_v54 = vadd.f32 %v5857_v29, %v5665_v2  ;;  %v10281_v51 = vld [vmem:[#allocation16_spill] sm:$0xff] }
 0x37f   : > { %v5781_v8 = vpop.permute.xlu1 %5780  ;;  %v5705_v60 = vsub.f32 1.0, %v10281_v51  ;;  %v5673_v24 = vmul.f32 %v10281_v51, %v5641_v23 }
 0x380   : > { %v5886_v33 = vadd.f32 %v5854_v41, %v5662_v47  ;;  %5922 = vst.msk [vmem:[%s10014_s11 + $0xb8] sm:$0xff] %vm5898_vm8, %v5889_v54  ;;  %v5855_v9 = vmul.f32 %v5781_v8, %v5695_v44 }
 0x381   : > { %v5791_v50 = vpop.permute.xlu0 %5790 }
 0x382   : > { %5919 = vst.msk [vmem:[%s10014_s11 + $0xa0] sm:$0xff] %vm5898_vm8, %v5886_v33  ;;  %v5860_v30 = vmul.f32 %v5791_v50, %v5700_v53  ;;  %v5887_v57 = vadd.f32 %v5855_v9, %v5663_v14 }
 0x383   : > { %v5793_v12 = vpop.permute.xlu1 %5792 }
 0x384   : > { %v5892_v27 = vadd.f32 %v5860_v30, %v5668_v37  ;;  %5920 = vst.msk [vmem:[%s10014_s11 + $0xa8] sm:$0xff] %vm5898_vm8, %v5887_v57  ;;  %v5861_v15 = vmul.f32 %v5793_v12, %v5701_v13 }
 0x385   : > { %v5787_v25 = vpop.permute.xlu0 %5786 }
 0x386   : > { %5925 = vst.msk [vmem:[%s10014_s11 + $0xd0] sm:$0xff] %vm5898_vm8, %v5892_v27  ;;  %v5858_v4 = vmul.f32 %v5787_v25, %v5698_v58  ;;  %v5893_v16 = vadd.f32 %v5861_v15, %v5669_v1 }
 0x387   : > { %v5789_v40 = vpop.permute.xlu1 %5788 }
 0x388   : > { %v5890_v38 = vadd.f32 %v5858_v4, %v5666_v11  ;;  %5926 = vst.msk [vmem:[%s10014_s11 + $0xd8] sm:$0xff] %vm5898_vm8, %v5893_v16  ;;  %v5859_v48 = vmul.f32 %v5789_v40, %v5699_v28 }
 0x38a   : > { %5923 = vst.msk [vmem:[%s10014_s11 + $0xc0] sm:$0xff] %vm5898_vm8, %v5890_v38  ;;  %v5891_v34 = vadd.f32 %v5859_v48, %v5667_v32 }
 0x38c   : > { %5924 = vst.msk [vmem:[%s10014_s11 + $0xc8] sm:$0xff] %vm5898_vm8, %v5891_v34 }
 0x38d   : > { %v5795_v3 = vpop.permute.xlu0 %5794 }
 0x38e   : > { %v5862_v36 = vmul.f32 %v5795_v3, %v5702_v6 }
 0x38f   : > { %v5797_v61 = vpop.permute.xlu1 %5796 }
 0x390   : > { %v5894_v19 = vadd.f32 %v5862_v36, %v5670_v39  ;;  %v5863_v42 = vmul.f32 %v5797_v61, %v5703_v63 }
 0x391   : > { %v5799_v26 = vpop.permute.xlu0 %5798 }
 0x392   : > { %5927 = vst.msk [vmem:[%s10014_s11 + $0xe0] sm:$0xff] %vm5898_vm8, %v5894_v19  ;;  %v5895_v62 = vadd.f32 %v5863_v42, %v5671_v31  ;;  %v5864_v20 = vmul.f32 %v5799_v26, %v5704_v18 }
 0x393   : > { %v5801_v59 = vpop.permute.xlu1 %5800 }
 0x394   : > { %5928 = vst.msk [vmem:[%s10014_s11 + $0xe8] sm:$0xff] %vm5898_vm8, %v5895_v62  ;;  %v5896_v5 = vadd.f32 %v5864_v20, %v5672_v0  ;;  %v5865_v10 = vmul.f32 %v5801_v59, %v5705_v60 }
 0x396   : > { %5929 = vst.msk [vmem:[%s10014_s11 + $0xf0] sm:$0xff] %vm5898_vm8, %v5896_v5  ;;  %v5897_v2 = vadd.f32 %v5865_v10, %v5673_v24 }
 0x398   : > { %5930 = vst.msk [vmem:[%s10014_s11 + $0xf8] sm:$0xff] %vm5898_vm8, %v5897_v2 }
 0x399   : > { %7823 = shalt.err (!%p7820_p3)
}
 0x39a   : > { %s7824_s6 = scalar_lea.hbm %s10170_s27, 4096  ;;  %s7828_s9 = scalar_lea.hbm %s10225_s4, 8192 }
 0x39b   : > { %p7825_p4 = scmp.ne.s32.totalorder %s10170_s27, %s7824_s6  ;;  %p7829_p9 = scmp.lt.u32.totalorder %s10170_s27, %s10225_s4 }
 0x39c   : > { %p7830_p10 = scmp.lt.u32.totalorder %s7828_s9, %s7824_s6  ;;  %p7832_p12 = scmp.lt.u32.totalorder %s7824_s6, %s10170_s27 }
 0x39d   : > { %p7826_p7 = pnand %p7825_p4, %p7942_p5 }
 0x39e   : > { %p7831_p11 = por %p7830_p10, %p7829_p9 }
 0x39f   : > { %p7827_p8 = pneg %p7826_p7 }
 0x3a0   : > { %p7833_p13 = por %p7832_p12, %p7831_p11 }
 0x3a2   : > { %p7834_p0 = pnand %p7833_p13, %p7827_p8 }
 0x3a4   : > { %7837 = shalt.err (!%p7834_p0)
}
 0x3a5   : > { %s7877_s13 = smov 128   ;;  %s7878_s11 = smov 8  }
 0x3a6   : > { %7480 = dma.vmem_to_hbm [thread:$0]  (%p7942_p5), %s10172_s20, 4096, %s10170_s27, %s10180_s19, %s7877_s13, %s7877_s13, %s7878_s11  }
 0x3a7 PF: > { %p7486_p1 = scmp.ge.s32.totalorder %s7872_s18, 2  ;;  %s5960_s14 = sand.u32 1, %s7860_s15  }
 0x3a8   : > { %s5961_s22 = scalar_lea.sflag [#allocation3], %s5960_s14 }
 0x3a9   : > { %p7483_p2 = pnand %p7486_p1, %p7946_p6 }
 0x3ab   : > { %7855 = dma.done.wait (!%p7483_p2), %s5961_s22, 4096  }
 0x3ac   : > { %7857 = vsyncadd (!%p7483_p2), %s5961_s22, 4294963200  ;;  %p14_p3 = scmp.ge.s32.totalorder %s7929_s21, 4   ;;  %s10282_s15 = smov %s7864_s16 }
 0x3ad   : > { %s10283_s16 = smov %s7868_s17  ;;  %s10284_s17 = smov %s7940_s24 }
 0x3ae   : > { %s10285_s18 = smov %s7929_s21  ;;  %16 = sbr.rel (!%p14_p3) target bundleno = 3 (0x3), region = 84 }
 0x3b5   :  { %5966 = vsyncpa [#allocation3], 1 }
 0x3b6   :  { %5968 = vsyncpa [#allocation3 + $0x1], 1 }

</bundles_post_ra>
